<compile_context>
chip_gen: v6e
topology: v6e:2x2x1
jax: 0.10.0
libtpu: 0.0.40
codegen_flags: <defaults>
</compile_context>

<pallas_src>
import jax
import jax.numpy as jnp
from jax.experimental import pallas as pl
from jax.experimental.pallas import tpu as pltpu


def _upconv_kernel(w_ref, b_ref, x_ref, o_ref):
    """3x3 / stride-1 conv on one (Cin, tr+2, OW+2) row-tile of the padded input.

    w_ref: (9*Cin*Cout,) f32 SMEM, flattened (kh, kw, ci, co) row-major
    b_ref: (Cout,)       f32 SMEM
    x_ref: (Cin, tr+2, OW+2) VMEM (padded, upsampled rows for this tile)
    o_ref: (Cout, tr, OW)    VMEM
    """
    cin = x_ref.shape[0]
    cout, tr, ow = o_ref.shape

    accs = [jnp.zeros((tr, ow), jnp.float32) for _ in range(cout)]
    for kh in range(3):
        for kw in range(3):
            for ci in range(cin):
                patch = x_ref[ci, kh:kh + tr, kw:kw + ow].astype(jnp.float32)
                base = ((kh * 3 + kw) * cin + ci) * cout
                for co in range(cout):
                    accs[co] = accs[co] + w_ref[base + co] * patch
    for co in range(cout):
        o_ref[co] = (accs[co] + b_ref[co]).astype(o_ref.dtype)


def upsample_conv(x_nchw, weight, bias, *, tr=16):
    """nearest-2x upsample followed by Conv2d(Cin, Cout, 3, stride=1, padding=1).

    x_nchw: (N, Cin, H, W)
    weight: (3, 3, Cin, Cout)   (HWIO)
    bias:   (Cout,)
    returns (N, Cout, 2H, 2W)   (NCHW, same as the torch module)
    """
    N, Cin, H, W = x_nchw.shape
    Cout = weight.shape[-1]
    OH, OW = 2 * H, 2 * W
    OWp = OW + 2

    # ---- glue (plain JAX; XLA fuses repeat+pad into one producer) ----
    xu = jnp.repeat(jnp.repeat(x_nchw, 2, axis=2), 2, axis=3)      # (N, C, OH, OW)

    tr = max(8, (min(tr, OH) // 8) * 8)                            # keep sublane-aligned
    T = pl.cdiv(OH, tr)
    OHt = T * tr
    # conv padding=1 on each side, plus extra bottom rows so OH tiles evenly
    xp = jnp.pad(xu, ((0, 0), (0, 0), (1, 1 + OHt - OH), (1, 1)))  # (N, C, OHt+2, OWp)

    # halo-duplicated row tiles: tile t holds padded rows [t*tr, t*tr + tr + 2)
    row_idx = jnp.arange(T)[:, None] * tr + jnp.arange(tr + 2)[None, :]
    xt = xp[:, :, row_idx, :]                                      # (N, C, T, tr+2, OWp)

    w_flat = weight.reshape(-1).astype(jnp.float32)                # (9*Cin*Cout,)
    b_flat = bias.reshape(-1).astype(jnp.float32)                  # (Cout,)

    out = pl.pallas_call(
        _upconv_kernel,
        out_shape=jax.ShapeDtypeStruct((N, Cout, OHt, OW), x_nchw.dtype),
        grid_spec=pltpu.PrefetchScalarGridSpec(
            num_scalar_prefetch=0,
            grid=(N, T),
            in_specs=[
                pl.BlockSpec(memory_space=pltpu.MemorySpace.SMEM),   # weights
                pl.BlockSpec(memory_space=pltpu.MemorySpace.SMEM),   # bias
                pl.BlockSpec((None, Cin, None, tr + 2, OWp),
                             lambda n, t: (n, 0, t, 0, 0)),          # activation tile
            ],
            out_specs=pl.BlockSpec((None, Cout, tr, OW),
                                   lambda n, t: (n, 0, t, 0)),
        ),
        compiler_params=pltpu.CompilerParams(
            dimension_semantics=("parallel", "parallel")),
    )(w_flat, b_flat, xt)

    return out[:, :, :OH, :]


if __name__ == "__main__":
    key = jax.random.PRNGKey(0)
    k_x, k_w, k_b = jax.random.split(key, 3)

    # small shapes consistent with the module (n_channels = 4)
    N, C, H, W = 2, 4, 16, 16
    x = jax.random.normal(k_x, (N, C, H, W), jnp.float32)

    # deterministic PyTorch-style init: U(-1/sqrt(fan_in), 1/sqrt(fan_in))
    fan_in = C * 3 * 3
    bound = 1.0 / (fan_in ** 0.5)
    weight = jax.random.uniform(k_w, (3, 3, C, C), jnp.float32, -bound, bound)
    bias = jax.random.uniform(k_b, (C,), jnp.float32, -bound, bound)

    y = upsample_conv(x, weight, bias)
    y = jax.block_until_ready(y)

    # reference: nearest 2x upsample + XLA conv (same semantics as the torch module)
    xu_ref = jnp.repeat(jnp.repeat(x, 2, axis=2), 2, axis=3)
    w_oihw = jnp.transpose(weight, (3, 2, 0, 1))                   # (Cout, Cin, kh, kw)
    ref = jax.lax.conv_general_dilated(
        xu_ref, w_oihw, window_strides=(1, 1), padding=((1, 1), (1, 1)),
        dimension_numbers=("NCHW", "OIHW", "NCHW")) + bias.reshape(1, C, 1, 1)

    assert y.shape == (N, C, 2 * H, 2 * W), y.shape
    assert jnp.allclose(y, ref, atol=1e-5, rtol=1e-5)
    print("KERNEL_OK")
</pallas_src>

<mosaic_0001>
module attributes {stable_mosaic.version = 11 : i64} {
  func.func @_upconv_kernel(%arg0: i32, %arg1: i32, %arg2: memref<144xf32, #tpu.memory_space<smem>>, %arg3: memref<4xf32, #tpu.memory_space<smem>>, %arg4: memref<1x4x1x18x34xf32, #tpu.memory_space<vmem>>, %arg5: memref<1x4x16x32xf32, #tpu.memory_space<vmem>>) attributes {dimension_semantics = [#tpu.dimension_semantics<parallel>, #tpu.dimension_semantics<parallel>], iteration_bounds = array<i64: 2, 2>, scalar_prefetch = 0 : i64, scratch_operands = 0 : i64, tpu.core_type = #tpu.core_type<tc>, window_params = [{transform_indices = @transform_0, window_bounds = array<i64: 144>}, {transform_indices = @transform_1, window_bounds = array<i64: 4>}, {transform_indices = @transform_2, window_bounds = array<i64: 1, 4, 1, 18, 34>}, {transform_indices = @transform_3, window_bounds = array<i64: 1, 4, 16, 32>}]} {
    %cst = arith.constant 0.000000e+00 : f32
    %0 = vector.broadcast %cst : f32 to vector<16x32xf32>
    %cst_0 = arith.constant 0.000000e+00 : f32
    %1 = vector.broadcast %cst_0 : f32 to vector<16x32xf32>
    %cst_1 = arith.constant 0.000000e+00 : f32
    %2 = vector.broadcast %cst_1 : f32 to vector<16x32xf32>
    %cst_2 = arith.constant 0.000000e+00 : f32
    %3 = vector.broadcast %cst_2 : f32 to vector<16x32xf32>
    %c0 = arith.constant 0 : index
    %c0_3 = arith.constant 0 : index
    %c0_4 = arith.constant 0 : index
    %c0_5 = arith.constant 0 : index
    %c0_6 = arith.constant 0 : index
    %4 = vector.load %arg4[%c0, %c0_3, %c0_4, %c0_5, %c0_6] : memref<1x4x1x18x34xf32, #tpu.memory_space<vmem>>, vector<1x1x1x16x32xf32>
    %5 = vector.shape_cast %4 : vector<1x1x1x16x32xf32> to vector<16x32xf32>
    %c0_7 = arith.constant 0 : index
    %6 = memref.load %arg2[%c0_7] : memref<144xf32, #tpu.memory_space<smem>>
    %7 = vector.broadcast %6 : f32 to vector<16x32xf32>
    %8 = arith.mulf %7, %5 : vector<16x32xf32>
    %9 = arith.addf %0, %8 : vector<16x32xf32>
    %c1 = arith.constant 1 : index
    %10 = memref.load %arg2[%c1] : memref<144xf32, #tpu.memory_space<smem>>
    %11 = vector.broadcast %10 : f32 to vector<16x32xf32>
    %12 = arith.mulf %11, %5 : vector<16x32xf32>
    %13 = arith.addf %1, %12 : vector<16x32xf32>
    %c2 = arith.constant 2 : index
    %14 = memref.load %arg2[%c2] : memref<144xf32, #tpu.memory_space<smem>>
    %15 = vector.broadcast %14 : f32 to vector<16x32xf32>
    %16 = arith.mulf %15, %5 : vector<16x32xf32>
    %17 = arith.addf %2, %16 : vector<16x32xf32>
    %c3 = arith.constant 3 : index
    %18 = memref.load %arg2[%c3] : memref<144xf32, #tpu.memory_space<smem>>
    %19 = vector.broadcast %18 : f32 to vector<16x32xf32>
    %20 = arith.mulf %19, %5 : vector<16x32xf32>
    %21 = arith.addf %3, %20 : vector<16x32xf32>
    %c0_8 = arith.constant 0 : index
    %c1_9 = arith.constant 1 : index
    %c0_10 = arith.constant 0 : index
    %c0_11 = arith.constant 0 : index
    %c0_12 = arith.constant 0 : index
    %22 = vector.load %arg4[%c0_8, %c1_9, %c0_10, %c0_11, %c0_12] : memref<1x4x1x18x34xf32, #tpu.memory_space<vmem>>, vector<1x1x1x16x32xf32>
    %23 = vector.shape_cast %22 : vector<1x1x1x16x32xf32> to vector<16x32xf32>
    %c4 = arith.constant 4 : index
    %24 = memref.load %arg2[%c4] : memref<144xf32, #tpu.memory_space<smem>>
    %25 = vector.broadcast %24 : f32 to vector<16x32xf32>
    %26 = arith.mulf %25, %23 : vector<16x32xf32>
    %27 = arith.addf %9, %26 : vector<16x32xf32>
    %c5 = arith.constant 5 : index
    %28 = memref.load %arg2[%c5] : memref<144xf32, #tpu.memory_space<smem>>
    %29 = vector.broadcast %28 : f32 to vector<16x32xf32>
    %30 = arith.mulf %29, %23 : vector<16x32xf32>
    %31 = arith.addf %13, %30 : vector<16x32xf32>
    %c6 = arith.constant 6 : index
    %32 = memref.load %arg2[%c6] : memref<144xf32, #tpu.memory_space<smem>>
    %33 = vector.broadcast %32 : f32 to vector<16x32xf32>
    %34 = arith.mulf %33, %23 : vector<16x32xf32>
    %35 = arith.addf %17, %34 : vector<16x32xf32>
    %c7 = arith.constant 7 : index
    %36 = memref.load %arg2[%c7] : memref<144xf32, #tpu.memory_space<smem>>
    %37 = vector.broadcast %36 : f32 to vector<16x32xf32>
    %38 = arith.mulf %37, %23 : vector<16x32xf32>
    %39 = arith.addf %21, %38 : vector<16x32xf32>
    %c0_13 = arith.constant 0 : index
    %c2_14 = arith.constant 2 : index
    %c0_15 = arith.constant 0 : index
    %c0_16 = arith.constant 0 : index
    %c0_17 = arith.constant 0 : index
    %40 = vector.load %arg4[%c0_13, %c2_14, %c0_15, %c0_16, %c0_17] : memref<1x4x1x18x34xf32, #tpu.memory_space<vmem>>, vector<1x1x1x16x32xf32>
    %41 = vector.shape_cast %40 : vector<1x1x1x16x32xf32> to vector<16x32xf32>
    %c8 = arith.constant 8 : index
    %42 = memref.load %arg2[%c8] : memref<144xf32, #tpu.memory_space<smem>>
    %43 = vector.broadcast %42 : f32 to vector<16x32xf32>
    %44 = arith.mulf %43, %41 : vector<16x32xf32>
    %45 = arith.addf %27, %44 : vector<16x32xf32>
    %c9 = arith.constant 9 : index
    %46 = memref.load %arg2[%c9] : memref<144xf32, #tpu.memory_space<smem>>
    %47 = vector.broadcast %46 : f32 to vector<16x32xf32>
    %48 = arith.mulf %47, %41 : vector<16x32xf32>
    %49 = arith.addf %31, %48 : vector<16x32xf32>
    %c10 = arith.constant 10 : index
    %50 = memref.load %arg2[%c10] : memref<144xf32, #tpu.memory_space<smem>>
    %51 = vector.broadcast %50 : f32 to vector<16x32xf32>
    %52 = arith.mulf %51, %41 : vector<16x32xf32>
    %53 = arith.addf %35, %52 : vector<16x32xf32>
    %c11 = arith.constant 11 : index
    %54 = memref.load %arg2[%c11] : memref<144xf32, #tpu.memory_space<smem>>
    %55 = vector.broadcast %54 : f32 to vector<16x32xf32>
    %56 = arith.mulf %55, %41 : vector<16x32xf32>
    %57 = arith.addf %39, %56 : vector<16x32xf32>
    %c0_18 = arith.constant 0 : index
    %c3_19 = arith.constant 3 : index
    %c0_20 = arith.constant 0 : index
    %c0_21 = arith.constant 0 : index
    %c0_22 = arith.constant 0 : index
    %58 = vector.load %arg4[%c0_18, %c3_19, %c0_20, %c0_21, %c0_22] : memref<1x4x1x18x34xf32, #tpu.memory_space<vmem>>, vector<1x1x1x16x32xf32>
    %59 = vector.shape_cast %58 : vector<1x1x1x16x32xf32> to vector<16x32xf32>
    %c12 = arith.constant 12 : index
    %60 = memref.load %arg2[%c12] : memref<144xf32, #tpu.memory_space<smem>>
    %61 = vector.broadcast %60 : f32 to vector<16x32xf32>
    %62 = arith.mulf %61, %59 : vector<16x32xf32>
    %63 = arith.addf %45, %62 : vector<16x32xf32>
    %c13 = arith.constant 13 : index
    %64 = memref.load %arg2[%c13] : memref<144xf32, #tpu.memory_space<smem>>
    %65 = vector.broadcast %64 : f32 to vector<16x32xf32>
    %66 = arith.mulf %65, %59 : vector<16x32xf32>
    %67 = arith.addf %49, %66 : vector<16x32xf32>
    %c14 = arith.constant 14 : index
    %68 = memref.load %arg2[%c14] : memref<144xf32, #tpu.memory_space<smem>>
    %69 = vector.broadcast %68 : f32 to vector<16x32xf32>
    %70 = arith.mulf %69, %59 : vector<16x32xf32>
    %71 = arith.addf %53, %70 : vector<16x32xf32>
    %c15 = arith.constant 15 : index
    %72 = memref.load %arg2[%c15] : memref<144xf32, #tpu.memory_space<smem>>
    %73 = vector.broadcast %72 : f32 to vector<16x32xf32>
    %74 = arith.mulf %73, %59 : vector<16x32xf32>
    %75 = arith.addf %57, %74 : vector<16x32xf32>
    %c0_23 = arith.constant 0 : index
    %c0_24 = arith.constant 0 : index
    %c0_25 = arith.constant 0 : index
    %c0_26 = arith.constant 0 : index
    %c1_27 = arith.constant 1 : index
    %76 = vector.load %arg4[%c0_23, %c0_24, %c0_25, %c0_26, %c1_27] : memref<1x4x1x18x34xf32, #tpu.memory_space<vmem>>, vector<1x1x1x16x32xf32>
    %77 = vector.shape_cast %76 : vector<1x1x1x16x32xf32> to vector<16x32xf32>
    %c16 = arith.constant 16 : index
    %78 = memref.load %arg2[%c16] : memref<144xf32, #tpu.memory_space<smem>>
    %79 = vector.broadcast %78 : f32 to vector<16x32xf32>
    %80 = arith.mulf %79, %77 : vector<16x32xf32>
    %81 = arith.addf %63, %80 : vector<16x32xf32>
    %c17 = arith.constant 17 : index
    %82 = memref.load %arg2[%c17] : memref<144xf32, #tpu.memory_space<smem>>
    %83 = vector.broadcast %82 : f32 to vector<16x32xf32>
    %84 = arith.mulf %83, %77 : vector<16x32xf32>
    %85 = arith.addf %67, %84 : vector<16x32xf32>
    %c18 = arith.constant 18 : index
    %86 = memref.load %arg2[%c18] : memref<144xf32, #tpu.memory_space<smem>>
    %87 = vector.broadcast %86 : f32 to vector<16x32xf32>
    %88 = arith.mulf %87, %77 : vector<16x32xf32>
    %89 = arith.addf %71, %88 : vector<16x32xf32>
    %c19 = arith.constant 19 : index
    %90 = memref.load %arg2[%c19] : memref<144xf32, #tpu.memory_space<smem>>
    %91 = vector.broadcast %90 : f32 to vector<16x32xf32>
    %92 = arith.mulf %91, %77 : vector<16x32xf32>
    %93 = arith.addf %75, %92 : vector<16x32xf32>
    %c0_28 = arith.constant 0 : index
    %c1_29 = arith.constant 1 : index
    %c0_30 = arith.constant 0 : index
    %c0_31 = arith.constant 0 : index
    %c1_32 = arith.constant 1 : index
    %94 = vector.load %arg4[%c0_28, %c1_29, %c0_30, %c0_31, %c1_32] : memref<1x4x1x18x34xf32, #tpu.memory_space<vmem>>, vector<1x1x1x16x32xf32>
    %95 = vector.shape_cast %94 : vector<1x1x1x16x32xf32> to vector<16x32xf32>
    %c20 = arith.constant 20 : index
    %96 = memref.load %arg2[%c20] : memref<144xf32, #tpu.memory_space<smem>>
    %97 = vector.broadcast %96 : f32 to vector<16x32xf32>
    %98 = arith.mulf %97, %95 : vector<16x32xf32>
    %99 = arith.addf %81, %98 : vector<16x32xf32>
    %c21 = arith.constant 21 : index
    %100 = memref.load %arg2[%c21] : memref<144xf32, #tpu.memory_space<smem>>
    %101 = vector.broadcast %100 : f32 to vector<16x32xf32>
    %102 = arith.mulf %101, %95 : vector<16x32xf32>
    %103 = arith.addf %85, %102 : vector<16x32xf32>
    %c22 = arith.constant 22 : index
    %104 = memref.load %arg2[%c22] : memref<144xf32, #tpu.memory_space<smem>>
    %105 = vector.broadcast %104 : f32 to vector<16x32xf32>
    %106 = arith.mulf %105, %95 : vector<16x32xf32>
    %107 = arith.addf %89, %106 : vector<16x32xf32>
    %c23 = arith.constant 23 : index
    %108 = memref.load %arg2[%c23] : memref<144xf32, #tpu.memory_space<smem>>
    %109 = vector.broadcast %108 : f32 to vector<16x32xf32>
    %110 = arith.mulf %109, %95 : vector<16x32xf32>
    %111 = arith.addf %93, %110 : vector<16x32xf32>
    %c0_33 = arith.constant 0 : index
    %c2_34 = arith.constant 2 : index
    %c0_35 = arith.constant 0 : index
    %c0_36 = arith.constant 0 : index
    %c1_37 = arith.constant 1 : index
    %112 = vector.load %arg4[%c0_33, %c2_34, %c0_35, %c0_36, %c1_37] : memref<1x4x1x18x34xf32, #tpu.memory_space<vmem>>, vector<1x1x1x16x32xf32>
    %113 = vector.shape_cast %112 : vector<1x1x1x16x32xf32> to vector<16x32xf32>
    %c24 = arith.constant 24 : index
    %114 = memref.load %arg2[%c24] : memref<144xf32, #tpu.memory_space<smem>>
    %115 = vector.broadcast %114 : f32 to vector<16x32xf32>
    %116 = arith.mulf %115, %113 : vector<16x32xf32>
    %117 = arith.addf %99, %116 : vector<16x32xf32>
    %c25 = arith.constant 25 : index
    %118 = memref.load %arg2[%c25] : memref<144xf32, #tpu.memory_space<smem>>
    %119 = vector.broadcast %118 : f32 to vector<16x32xf32>
    %120 = arith.mulf %119, %113 : vector<16x32xf32>
    %121 = arith.addf %103, %120 : vector<16x32xf32>
    %c26 = arith.constant 26 : index
    %122 = memref.load %arg2[%c26] : memref<144xf32, #tpu.memory_space<smem>>
    %123 = vector.broadcast %122 : f32 to vector<16x32xf32>
    %124 = arith.mulf %123, %113 : vector<16x32xf32>
    %125 = arith.addf %107, %124 : vector<16x32xf32>
    %c27 = arith.constant 27 : index
    %126 = memref.load %arg2[%c27] : memref<144xf32, #tpu.memory_space<smem>>
    %127 = vector.broadcast %126 : f32 to vector<16x32xf32>
    %128 = arith.mulf %127, %113 : vector<16x32xf32>
    %129 = arith.addf %111, %128 : vector<16x32xf32>
    %c0_38 = arith.constant 0 : index
    %c3_39 = arith.constant 3 : index
    %c0_40 = arith.constant 0 : index
    %c0_41 = arith.constant 0 : index
    %c1_42 = arith.constant 1 : index
    %130 = vector.load %arg4[%c0_38, %c3_39, %c0_40, %c0_41, %c1_42] : memref<1x4x1x18x34xf32, #tpu.memory_space<vmem>>, vector<1x1x1x16x32xf32>
    %131 = vector.shape_cast %130 : vector<1x1x1x16x32xf32> to vector<16x32xf32>
    %c28 = arith.constant 28 : index
    %132 = memref.load %arg2[%c28] : memref<144xf32, #tpu.memory_space<smem>>
    %133 = vector.broadcast %132 : f32 to vector<16x32xf32>
    %134 = arith.mulf %133, %131 : vector<16x32xf32>
    %135 = arith.addf %117, %134 : vector<16x32xf32>
    %c29 = arith.constant 29 : index
    %136 = memref.load %arg2[%c29] : memref<144xf32, #tpu.memory_space<smem>>
    %137 = vector.broadcast %136 : f32 to vector<16x32xf32>
    %138 = arith.mulf %137, %131 : vector<16x32xf32>
    %139 = arith.addf %121, %138 : vector<16x32xf32>
    %c30 = arith.constant 30 : index
    %140 = memref.load %arg2[%c30] : memref<144xf32, #tpu.memory_space<smem>>
    %141 = vector.broadcast %140 : f32 to vector<16x32xf32>
    %142 = arith.mulf %141, %131 : vector<16x32xf32>
    %143 = arith.addf %125, %142 : vector<16x32xf32>
    %c31 = arith.constant 31 : index
    %144 = memref.load %arg2[%c31] : memref<144xf32, #tpu.memory_space<smem>>
    %145 = vector.broadcast %144 : f32 to vector<16x32xf32>
    %146 = arith.mulf %145, %131 : vector<16x32xf32>
    %147 = arith.addf %129, %146 : vector<16x32xf32>
    %c0_43 = arith.constant 0 : index
    %c0_44 = arith.constant 0 : index
    %c0_45 = arith.constant 0 : index
    %c0_46 = arith.constant 0 : index
    %c2_47 = arith.constant 2 : index
    %148 = vector.load %arg4[%c0_43, %c0_44, %c0_45, %c0_46, %c2_47] : memref<1x4x1x18x34xf32, #tpu.memory_space<vmem>>, vector<1x1x1x16x32xf32>
    %149 = vector.shape_cast %148 : vector<1x1x1x16x32xf32> to vector<16x32xf32>
    %c32 = arith.constant 32 : index
    %150 = memref.load %arg2[%c32] : memref<144xf32, #tpu.memory_space<smem>>
    %151 = vector.broadcast %150 : f32 to vector<16x32xf32>
    %152 = arith.mulf %151, %149 : vector<16x32xf32>
    %153 = arith.addf %135, %152 : vector<16x32xf32>
    %c33 = arith.constant 33 : index
    %154 = memref.load %arg2[%c33] : memref<144xf32, #tpu.memory_space<smem>>
    %155 = vector.broadcast %154 : f32 to vector<16x32xf32>
    %156 = arith.mulf %155, %149 : vector<16x32xf32>
    %157 = arith.addf %139, %156 : vector<16x32xf32>
    %c34 = arith.constant 34 : index
    %158 = memref.load %arg2[%c34] : memref<144xf32, #tpu.memory_space<smem>>
    %159 = vector.broadcast %158 : f32 to vector<16x32xf32>
    %160 = arith.mulf %159, %149 : vector<16x32xf32>
    %161 = arith.addf %143, %160 : vector<16x32xf32>
    %c35 = arith.constant 35 : index
    %162 = memref.load %arg2[%c35] : memref<144xf32, #tpu.memory_space<smem>>
    %163 = vector.broadcast %162 : f32 to vector<16x32xf32>
    %164 = arith.mulf %163, %149 : vector<16x32xf32>
    %165 = arith.addf %147, %164 : vector<16x32xf32>
    %c0_48 = arith.constant 0 : index
    %c1_49 = arith.constant 1 : index
    %c0_50 = arith.constant 0 : index
    %c0_51 = arith.constant 0 : index
    %c2_52 = arith.constant 2 : index
    %166 = vector.load %arg4[%c0_48, %c1_49, %c0_50, %c0_51, %c2_52] : memref<1x4x1x18x34xf32, #tpu.memory_space<vmem>>, vector<1x1x1x16x32xf32>
    %167 = vector.shape_cast %166 : vector<1x1x1x16x32xf32> to vector<16x32xf32>
    %c36 = arith.constant 36 : index
    %168 = memref.load %arg2[%c36] : memref<144xf32, #tpu.memory_space<smem>>
    %169 = vector.broadcast %168 : f32 to vector<16x32xf32>
    %170 = arith.mulf %169, %167 : vector<16x32xf32>
    %171 = arith.addf %153, %170 : vector<16x32xf32>
    %c37 = arith.constant 37 : index
    %172 = memref.load %arg2[%c37] : memref<144xf32, #tpu.memory_space<smem>>
    %173 = vector.broadcast %172 : f32 to vector<16x32xf32>
    %174 = arith.mulf %173, %167 : vector<16x32xf32>
    %175 = arith.addf %157, %174 : vector<16x32xf32>
    %c38 = arith.constant 38 : index
    %176 = memref.load %arg2[%c38] : memref<144xf32, #tpu.memory_space<smem>>
    %177 = vector.broadcast %176 : f32 to vector<16x32xf32>
    %178 = arith.mulf %177, %167 : vector<16x32xf32>
    %179 = arith.addf %161, %178 : vector<16x32xf32>
    %c39 = arith.constant 39 : index
    %180 = memref.load %arg2[%c39] : memref<144xf32, #tpu.memory_space<smem>>
    %181 = vector.broadcast %180 : f32 to vector<16x32xf32>
    %182 = arith.mulf %181, %167 : vector<16x32xf32>
    %183 = arith.addf %165, %182 : vector<16x32xf32>
    %c0_53 = arith.constant 0 : index
    %c2_54 = arith.constant 2 : index
    %c0_55 = arith.constant 0 : index
    %c0_56 = arith.constant 0 : index
    %c2_57 = arith.constant 2 : index
    %184 = vector.load %arg4[%c0_53, %c2_54, %c0_55, %c0_56, %c2_57] : memref<1x4x1x18x34xf32, #tpu.memory_space<vmem>>, vector<1x1x1x16x32xf32>
    %185 = vector.shape_cast %184 : vector<1x1x1x16x32xf32> to vector<16x32xf32>
    %c40 = arith.constant 40 : index
    %186 = memref.load %arg2[%c40] : memref<144xf32, #tpu.memory_space<smem>>
    %187 = vector.broadcast %186 : f32 to vector<16x32xf32>
    %188 = arith.mulf %187, %185 : vector<16x32xf32>
    %189 = arith.addf %171, %188 : vector<16x32xf32>
    %c41 = arith.constant 41 : index
    %190 = memref.load %arg2[%c41] : memref<144xf32, #tpu.memory_space<smem>>
    %191 = vector.broadcast %190 : f32 to vector<16x32xf32>
    %192 = arith.mulf %191, %185 : vector<16x32xf32>
    %193 = arith.addf %175, %192 : vector<16x32xf32>
    %c42 = arith.constant 42 : index
    %194 = memref.load %arg2[%c42] : memref<144xf32, #tpu.memory_space<smem>>
    %195 = vector.broadcast %194 : f32 to vector<16x32xf32>
    %196 = arith.mulf %195, %185 : vector<16x32xf32>
    %197 = arith.addf %179, %196 : vector<16x32xf32>
    %c43 = arith.constant 43 : index
    %198 = memref.load %arg2[%c43] : memref<144xf32, #tpu.memory_space<smem>>
    %199 = vector.broadcast %198 : f32 to vector<16x32xf32>
    %200 = arith.mulf %199, %185 : vector<16x32xf32>
    %201 = arith.addf %183, %200 : vector<16x32xf32>
    %c0_58 = arith.constant 0 : index
    %c3_59 = arith.constant 3 : index
    %c0_60 = arith.constant 0 : index
    %c0_61 = arith.constant 0 : index
    %c2_62 = arith.constant 2 : index
    %202 = vector.load %arg4[%c0_58, %c3_59, %c0_60, %c0_61, %c2_62] : memref<1x4x1x18x34xf32, #tpu.memory_space<vmem>>, vector<1x1x1x16x32xf32>
    %203 = vector.shape_cast %202 : vector<1x1x1x16x32xf32> to vector<16x32xf32>
    %c44 = arith.constant 44 : index
    %204 = memref.load %arg2[%c44] : memref<144xf32, #tpu.memory_space<smem>>
    %205 = vector.broadcast %204 : f32 to vector<16x32xf32>
    %206 = arith.mulf %205, %203 : vector<16x32xf32>
    %207 = arith.addf %189, %206 : vector<16x32xf32>
    %c45 = arith.constant 45 : index
    %208 = memref.load %arg2[%c45] : memref<144xf32, #tpu.memory_space<smem>>
    %209 = vector.broadcast %208 : f32 to vector<16x32xf32>
    %210 = arith.mulf %209, %203 : vector<16x32xf32>
    %211 = arith.addf %193, %210 : vector<16x32xf32>
    %c46 = arith.constant 46 : index
    %212 = memref.load %arg2[%c46] : memref<144xf32, #tpu.memory_space<smem>>
    %213 = vector.broadcast %212 : f32 to vector<16x32xf32>
    %214 = arith.mulf %213, %203 : vector<16x32xf32>
    %215 = arith.addf %197, %214 : vector<16x32xf32>
    %c47 = arith.constant 47 : index
    %216 = memref.load %arg2[%c47] : memref<144xf32, #tpu.memory_space<smem>>
    %217 = vector.broadcast %216 : f32 to vector<16x32xf32>
    %218 = arith.mulf %217, %203 : vector<16x32xf32>
    %219 = arith.addf %201, %218 : vector<16x32xf32>
    %c0_63 = arith.constant 0 : index
    %c0_64 = arith.constant 0 : index
    %c0_65 = arith.constant 0 : index
    %c1_66 = arith.constant 1 : index
    %c0_67 = arith.constant 0 : index
    %220 = vector.load %arg4[%c0_63, %c0_64, %c0_65, %c1_66, %c0_67] : memref<1x4x1x18x34xf32, #tpu.memory_space<vmem>>, vector<1x1x1x16x32xf32>
    %221 = vector.shape_cast %220 : vector<1x1x1x16x32xf32> to vector<16x32xf32>
    %c48 = arith.constant 48 : index
    %222 = memref.load %arg2[%c48] : memref<144xf32, #tpu.memory_space<smem>>
    %223 = vector.broadcast %222 : f32 to vector<16x32xf32>
    %224 = arith.mulf %223, %221 : vector<16x32xf32>
    %225 = arith.addf %207, %224 : vector<16x32xf32>
    %c49 = arith.constant 49 : index
    %226 = memref.load %arg2[%c49] : memref<144xf32, #tpu.memory_space<smem>>
    %227 = vector.broadcast %226 : f32 to vector<16x32xf32>
    %228 = arith.mulf %227, %221 : vector<16x32xf32>
    %229 = arith.addf %211, %228 : vector<16x32xf32>
    %c50 = arith.constant 50 : index
    %230 = memref.load %arg2[%c50] : memref<144xf32, #tpu.memory_space<smem>>
    %231 = vector.broadcast %230 : f32 to vector<16x32xf32>
    %232 = arith.mulf %231, %221 : vector<16x32xf32>
    %233 = arith.addf %215, %232 : vector<16x32xf32>
    %c51 = arith.constant 51 : index
    %234 = memref.load %arg2[%c51] : memref<144xf32, #tpu.memory_space<smem>>
    %235 = vector.broadcast %234 : f32 to vector<16x32xf32>
    %236 = arith.mulf %235, %221 : vector<16x32xf32>
    %237 = arith.addf %219, %236 : vector<16x32xf32>
    %c0_68 = arith.constant 0 : index
    %c1_69 = arith.constant 1 : index
    %c0_70 = arith.constant 0 : index
    %c1_71 = arith.constant 1 : index
    %c0_72 = arith.constant 0 : index
    %238 = vector.load %arg4[%c0_68, %c1_69, %c0_70, %c1_71, %c0_72] : memref<1x4x1x18x34xf32, #tpu.memory_space<vmem>>, vector<1x1x1x16x32xf32>
    %239 = vector.shape_cast %238 : vector<1x1x1x16x32xf32> to vector<16x32xf32>
    %c52 = arith.constant 52 : index
    %240 = memref.load %arg2[%c52] : memref<144xf32, #tpu.memory_space<smem>>
    %241 = vector.broadcast %240 : f32 to vector<16x32xf32>
    %242 = arith.mulf %241, %239 : vector<16x32xf32>
    %243 = arith.addf %225, %242 : vector<16x32xf32>
    %c53 = arith.constant 53 : index
    %244 = memref.load %arg2[%c53] : memref<144xf32, #tpu.memory_space<smem>>
    %245 = vector.broadcast %244 : f32 to vector<16x32xf32>
    %246 = arith.mulf %245, %239 : vector<16x32xf32>
    %247 = arith.addf %229, %246 : vector<16x32xf32>
    %c54 = arith.constant 54 : index
    %248 = memref.load %arg2[%c54] : memref<144xf32, #tpu.memory_space<smem>>
    %249 = vector.broadcast %248 : f32 to vector<16x32xf32>
    %250 = arith.mulf %249, %239 : vector<16x32xf32>
    %251 = arith.addf %233, %250 : vector<16x32xf32>
    %c55 = arith.constant 55 : index
    %252 = memref.load %arg2[%c55] : memref<144xf32, #tpu.memory_space<smem>>
    %253 = vector.broadcast %252 : f32 to vector<16x32xf32>
    %254 = arith.mulf %253, %239 : vector<16x32xf32>
    %255 = arith.addf %237, %254 : vector<16x32xf32>
    %c0_73 = arith.constant 0 : index
    %c2_74 = arith.constant 2 : index
    %c0_75 = arith.constant 0 : index
    %c1_76 = arith.constant 1 : index
    %c0_77 = arith.constant 0 : index
    %256 = vector.load %arg4[%c0_73, %c2_74, %c0_75, %c1_76, %c0_77] : memref<1x4x1x18x34xf32, #tpu.memory_space<vmem>>, vector<1x1x1x16x32xf32>
    %257 = vector.shape_cast %256 : vector<1x1x1x16x32xf32> to vector<16x32xf32>
    %c56 = arith.constant 56 : index
    %258 = memref.load %arg2[%c56] : memref<144xf32, #tpu.memory_space<smem>>
    %259 = vector.broadcast %258 : f32 to vector<16x32xf32>
    %260 = arith.mulf %259, %257 : vector<16x32xf32>
    %261 = arith.addf %243, %260 : vector<16x32xf32>
    %c57 = arith.constant 57 : index
    %262 = memref.load %arg2[%c57] : memref<144xf32, #tpu.memory_space<smem>>
    %263 = vector.broadcast %262 : f32 to vector<16x32xf32>
    %264 = arith.mulf %263, %257 : vector<16x32xf32>
    %265 = arith.addf %247, %264 : vector<16x32xf32>
    %c58 = arith.constant 58 : index
    %266 = memref.load %arg2[%c58] : memref<144xf32, #tpu.memory_space<smem>>
    %267 = vector.broadcast %266 : f32 to vector<16x32xf32>
    %268 = arith.mulf %267, %257 : vector<16x32xf32>
    %269 = arith.addf %251, %268 : vector<16x32xf32>
    %c59 = arith.constant 59 : index
    %270 = memref.load %arg2[%c59] : memref<144xf32, #tpu.memory_space<smem>>
    %271 = vector.broadcast %270 : f32 to vector<16x32xf32>
    %272 = arith.mulf %271, %257 : vector<16x32xf32>
    %273 = arith.addf %255, %272 : vector<16x32xf32>
    %c0_78 = arith.constant 0 : index
    %c3_79 = arith.constant 3 : index
    %c0_80 = arith.constant 0 : index
    %c1_81 = arith.constant 1 : index
    %c0_82 = arith.constant 0 : index
    %274 = vector.load %arg4[%c0_78, %c3_79, %c0_80, %c1_81, %c0_82] : memref<1x4x1x18x34xf32, #tpu.memory_space<vmem>>, vector<1x1x1x16x32xf32>
    %275 = vector.shape_cast %274 : vector<1x1x1x16x32xf32> to vector<16x32xf32>
    %c60 = arith.constant 60 : index
    %276 = memref.load %arg2[%c60] : memref<144xf32, #tpu.memory_space<smem>>
    %277 = vector.broadcast %276 : f32 to vector<16x32xf32>
    %278 = arith.mulf %277, %275 : vector<16x32xf32>
    %279 = arith.addf %261, %278 : vector<16x32xf32>
    %c61 = arith.constant 61 : index
    %280 = memref.load %arg2[%c61] : memref<144xf32, #tpu.memory_space<smem>>
    %281 = vector.broadcast %280 : f32 to vector<16x32xf32>
    %282 = arith.mulf %281, %275 : vector<16x32xf32>
    %283 = arith.addf %265, %282 : vector<16x32xf32>
    %c62 = arith.constant 62 : index
    %284 = memref.load %arg2[%c62] : memref<144xf32, #tpu.memory_space<smem>>
    %285 = vector.broadcast %284 : f32 to vector<16x32xf32>
    %286 = arith.mulf %285, %275 : vector<16x32xf32>
    %287 = arith.addf %269, %286 : vector<16x32xf32>
    %c63 = arith.constant 63 : index
    %288 = memref.load %arg2[%c63] : memref<144xf32, #tpu.memory_space<smem>>
    %289 = vector.broadcast %288 : f32 to vector<16x32xf32>
    %290 = arith.mulf %289, %275 : vector<16x32xf32>
    %291 = arith.addf %273, %290 : vector<16x32xf32>
    %c0_83 = arith.constant 0 : index
    %c0_84 = arith.constant 0 : index
    %c0_85 = arith.constant 0 : index
    %c1_86 = arith.constant 1 : index
    %c1_87 = arith.constant 1 : index
    %292 = vector.load %arg4[%c0_83, %c0_84, %c0_85, %c1_86, %c1_87] : memref<1x4x1x18x34xf32, #tpu.memory_space<vmem>>, vector<1x1x1x16x32xf32>
    %293 = vector.shape_cast %292 : vector<1x1x1x16x32xf32> to vector<16x32xf32>
    %c64 = arith.constant 64 : index
    %294 = memref.load %arg2[%c64] : memref<144xf32, #tpu.memory_space<smem>>
    %295 = vector.broadcast %294 : f32 to vector<16x32xf32>
    %296 = arith.mulf %295, %293 : vector<16x32xf32>
    %297 = arith.addf %279, %296 : vector<16x32xf32>
    %c65 = arith.constant 65 : index
    %298 = memref.load %arg2[%c65] : memref<144xf32, #tpu.memory_space<smem>>
    %299 = vector.broadcast %298 : f32 to vector<16x32xf32>
    %300 = arith.mulf %299, %293 : vector<16x32xf32>
    %301 = arith.addf %283, %300 : vector<16x32xf32>
    %c66 = arith.constant 66 : index
    %302 = memref.load %arg2[%c66] : memref<144xf32, #tpu.memory_space<smem>>
    %303 = vector.broadcast %302 : f32 to vector<16x32xf32>
    %304 = arith.mulf %303, %293 : vector<16x32xf32>
    %305 = arith.addf %287, %304 : vector<16x32xf32>
    %c67 = arith.constant 67 : index
    %306 = memref.load %arg2[%c67] : memref<144xf32, #tpu.memory_space<smem>>
    %307 = vector.broadcast %306 : f32 to vector<16x32xf32>
    %308 = arith.mulf %307, %293 : vector<16x32xf32>
    %309 = arith.addf %291, %308 : vector<16x32xf32>
    %c0_88 = arith.constant 0 : index
    %c1_89 = arith.constant 1 : index
    %c0_90 = arith.constant 0 : index
    %c1_91 = arith.constant 1 : index
    %c1_92 = arith.constant 1 : index
    %310 = vector.load %arg4[%c0_88, %c1_89, %c0_90, %c1_91, %c1_92] : memref<1x4x1x18x34xf32, #tpu.memory_space<vmem>>, vector<1x1x1x16x32xf32>
    %311 = vector.shape_cast %310 : vector<1x1x1x16x32xf32> to vector<16x32xf32>
    %c68 = arith.constant 68 : index
    %312 = memref.load %arg2[%c68] : memref<144xf32, #tpu.memory_space<smem>>
    %313 = vector.broadcast %312 : f32 to vector<16x32xf32>
    %314 = arith.mulf %313, %311 : vector<16x32xf32>
    %315 = arith.addf %297, %314 : vector<16x32xf32>
    %c69 = arith.constant 69 : index
    %316 = memref.load %arg2[%c69] : memref<144xf32, #tpu.memory_space<smem>>
    %317 = vector.broadcast %316 : f32 to vector<16x32xf32>
    %318 = arith.mulf %317, %311 : vector<16x32xf32>
    %319 = arith.addf %301, %318 : vector<16x32xf32>
    %c70 = arith.constant 70 : index
    %320 = memref.load %arg2[%c70] : memref<144xf32, #tpu.memory_space<smem>>
    %321 = vector.broadcast %320 : f32 to vector<16x32xf32>
    %322 = arith.mulf %321, %311 : vector<16x32xf32>
    %323 = arith.addf %305, %322 : vector<16x32xf32>
    %c71 = arith.constant 71 : index
    %324 = memref.load %arg2[%c71] : memref<144xf32, #tpu.memory_space<smem>>
    %325 = vector.broadcast %324 : f32 to vector<16x32xf32>
    %326 = arith.mulf %325, %311 : vector<16x32xf32>
    %327 = arith.addf %309, %326 : vector<16x32xf32>
    %c0_93 = arith.constant 0 : index
    %c2_94 = arith.constant 2 : index
    %c0_95 = arith.constant 0 : index
    %c1_96 = arith.constant 1 : index
    %c1_97 = arith.constant 1 : index
    %328 = vector.load %arg4[%c0_93, %c2_94, %c0_95, %c1_96, %c1_97] : memref<1x4x1x18x34xf32, #tpu.memory_space<vmem>>, vector<1x1x1x16x32xf32>
    %329 = vector.shape_cast %328 : vector<1x1x1x16x32xf32> to vector<16x32xf32>
    %c72 = arith.constant 72 : index
    %330 = memref.load %arg2[%c72] : memref<144xf32, #tpu.memory_space<smem>>
    %331 = vector.broadcast %330 : f32 to vector<16x32xf32>
    %332 = arith.mulf %331, %329 : vector<16x32xf32>
    %333 = arith.addf %315, %332 : vector<16x32xf32>
    %c73 = arith.constant 73 : index
    %334 = memref.load %arg2[%c73] : memref<144xf32, #tpu.memory_space<smem>>
    %335 = vector.broadcast %334 : f32 to vector<16x32xf32>
    %336 = arith.mulf %335, %329 : vector<16x32xf32>
    %337 = arith.addf %319, %336 : vector<16x32xf32>
    %c74 = arith.constant 74 : index
    %338 = memref.load %arg2[%c74] : memref<144xf32, #tpu.memory_space<smem>>
    %339 = vector.broadcast %338 : f32 to vector<16x32xf32>
    %340 = arith.mulf %339, %329 : vector<16x32xf32>
    %341 = arith.addf %323, %340 : vector<16x32xf32>
    %c75 = arith.constant 75 : index
    %342 = memref.load %arg2[%c75] : memref<144xf32, #tpu.memory_space<smem>>
    %343 = vector.broadcast %342 : f32 to vector<16x32xf32>
    %344 = arith.mulf %343, %329 : vector<16x32xf32>
    %345 = arith.addf %327, %344 : vector<16x32xf32>
    %c0_98 = arith.constant 0 : index
    %c3_99 = arith.constant 3 : index
    %c0_100 = arith.constant 0 : index
    %c1_101 = arith.constant 1 : index
    %c1_102 = arith.constant 1 : index
    %346 = vector.load %arg4[%c0_98, %c3_99, %c0_100, %c1_101, %c1_102] : memref<1x4x1x18x34xf32, #tpu.memory_space<vmem>>, vector<1x1x1x16x32xf32>
    %347 = vector.shape_cast %346 : vector<1x1x1x16x32xf32> to vector<16x32xf32>
    %c76 = arith.constant 76 : index
    %348 = memref.load %arg2[%c76] : memref<144xf32, #tpu.memory_space<smem>>
    %349 = vector.broadcast %348 : f32 to vector<16x32xf32>
    %350 = arith.mulf %349, %347 : vector<16x32xf32>
    %351 = arith.addf %333, %350 : vector<16x32xf32>
    %c77 = arith.constant 77 : index
    %352 = memref.load %arg2[%c77] : memref<144xf32, #tpu.memory_space<smem>>
    %353 = vector.broadcast %352 : f32 to vector<16x32xf32>
    %354 = arith.mulf %353, %347 : vector<16x32xf32>
    %355 = arith.addf %337, %354 : vector<16x32xf32>
    %c78 = arith.constant 78 : index
    %356 = memref.load %arg2[%c78] : memref<144xf32, #tpu.memory_space<smem>>
    %357 = vector.broadcast %356 : f32 to vector<16x32xf32>
    %358 = arith.mulf %357, %347 : vector<16x32xf32>
    %359 = arith.addf %341, %358 : vector<16x32xf32>
    %c79 = arith.constant 79 : index
    %360 = memref.load %arg2[%c79] : memref<144xf32, #tpu.memory_space<smem>>
    %361 = vector.broadcast %360 : f32 to vector<16x32xf32>
    %362 = arith.mulf %361, %347 : vector<16x32xf32>
    %363 = arith.addf %345, %362 : vector<16x32xf32>
    %c0_103 = arith.constant 0 : index
    %c0_104 = arith.constant 0 : index
    %c0_105 = arith.constant 0 : index
    %c1_106 = arith.constant 1 : index
    %c2_107 = arith.constant 2 : index
    %364 = vector.load %arg4[%c0_103, %c0_104, %c0_105, %c1_106, %c2_107] : memref<1x4x1x18x34xf32, #tpu.memory_space<vmem>>, vector<1x1x1x16x32xf32>
    %365 = vector.shape_cast %364 : vector<1x1x1x16x32xf32> to vector<16x32xf32>
    %c80 = arith.constant 80 : index
    %366 = memref.load %arg2[%c80] : memref<144xf32, #tpu.memory_space<smem>>
    %367 = vector.broadcast %366 : f32 to vector<16x32xf32>
    %368 = arith.mulf %367, %365 : vector<16x32xf32>
    %369 = arith.addf %351, %368 : vector<16x32xf32>
    %c81 = arith.constant 81 : index
    %370 = memref.load %arg2[%c81] : memref<144xf32, #tpu.memory_space<smem>>
    %371 = vector.broadcast %370 : f32 to vector<16x32xf32>
    %372 = arith.mulf %371, %365 : vector<16x32xf32>
    %373 = arith.addf %355, %372 : vector<16x32xf32>
    %c82 = arith.constant 82 : index
    %374 = memref.load %arg2[%c82] : memref<144xf32, #tpu.memory_space<smem>>
    %375 = vector.broadcast %374 : f32 to vector<16x32xf32>
    %376 = arith.mulf %375, %365 : vector<16x32xf32>
    %377 = arith.addf %359, %376 : vector<16x32xf32>
    %c83 = arith.constant 83 : index
    %378 = memref.load %arg2[%c83] : memref<144xf32, #tpu.memory_space<smem>>
    %379 = vector.broadcast %378 : f32 to vector<16x32xf32>
    %380 = arith.mulf %379, %365 : vector<16x32xf32>
    %381 = arith.addf %363, %380 : vector<16x32xf32>
    %c0_108 = arith.constant 0 : index
    %c1_109 = arith.constant 1 : index
    %c0_110 = arith.constant 0 : index
    %c1_111 = arith.constant 1 : index
    %c2_112 = arith.constant 2 : index
    %382 = vector.load %arg4[%c0_108, %c1_109, %c0_110, %c1_111, %c2_112] : memref<1x4x1x18x34xf32, #tpu.memory_space<vmem>>, vector<1x1x1x16x32xf32>
    %383 = vector.shape_cast %382 : vector<1x1x1x16x32xf32> to vector<16x32xf32>
    %c84 = arith.constant 84 : index
    %384 = memref.load %arg2[%c84] : memref<144xf32, #tpu.memory_space<smem>>
    %385 = vector.broadcast %384 : f32 to vector<16x32xf32>
    %386 = arith.mulf %385, %383 : vector<16x32xf32>
    %387 = arith.addf %369, %386 : vector<16x32xf32>
    %c85 = arith.constant 85 : index
    %388 = memref.load %arg2[%c85] : memref<144xf32, #tpu.memory_space<smem>>
    %389 = vector.broadcast %388 : f32 to vector<16x32xf32>
    %390 = arith.mulf %389, %383 : vector<16x32xf32>
    %391 = arith.addf %373, %390 : vector<16x32xf32>
    %c86 = arith.constant 86 : index
    %392 = memref.load %arg2[%c86] : memref<144xf32, #tpu.memory_space<smem>>
    %393 = vector.broadcast %392 : f32 to vector<16x32xf32>
    %394 = arith.mulf %393, %383 : vector<16x32xf32>
    %395 = arith.addf %377, %394 : vector<16x32xf32>
    %c87 = arith.constant 87 : index
    %396 = memref.load %arg2[%c87] : memref<144xf32, #tpu.memory_space<smem>>
    %397 = vector.broadcast %396 : f32 to vector<16x32xf32>
    %398 = arith.mulf %397, %383 : vector<16x32xf32>
    %399 = arith.addf %381, %398 : vector<16x32xf32>
    %c0_113 = arith.constant 0 : index
    %c2_114 = arith.constant 2 : index
    %c0_115 = arith.constant 0 : index
    %c1_116 = arith.constant 1 : index
    %c2_117 = arith.constant 2 : index
    %400 = vector.load %arg4[%c0_113, %c2_114, %c0_115, %c1_116, %c2_117] : memref<1x4x1x18x34xf32, #tpu.memory_space<vmem>>, vector<1x1x1x16x32xf32>
    %401 = vector.shape_cast %400 : vector<1x1x1x16x32xf32> to vector<16x32xf32>
    %c88 = arith.constant 88 : index
    %402 = memref.load %arg2[%c88] : memref<144xf32, #tpu.memory_space<smem>>
    %403 = vector.broadcast %402 : f32 to vector<16x32xf32>
    %404 = arith.mulf %403, %401 : vector<16x32xf32>
    %405 = arith.addf %387, %404 : vector<16x32xf32>
    %c89 = arith.constant 89 : index
    %406 = memref.load %arg2[%c89] : memref<144xf32, #tpu.memory_space<smem>>
    %407 = vector.broadcast %406 : f32 to vector<16x32xf32>
    %408 = arith.mulf %407, %401 : vector<16x32xf32>
    %409 = arith.addf %391, %408 : vector<16x32xf32>
    %c90 = arith.constant 90 : index
    %410 = memref.load %arg2[%c90] : memref<144xf32, #tpu.memory_space<smem>>
    %411 = vector.broadcast %410 : f32 to vector<16x32xf32>
    %412 = arith.mulf %411, %401 : vector<16x32xf32>
    %413 = arith.addf %395, %412 : vector<16x32xf32>
    %c91 = arith.constant 91 : index
    %414 = memref.load %arg2[%c91] : memref<144xf32, #tpu.memory_space<smem>>
    %415 = vector.broadcast %414 : f32 to vector<16x32xf32>
    %416 = arith.mulf %415, %401 : vector<16x32xf32>
    %417 = arith.addf %399, %416 : vector<16x32xf32>
    %c0_118 = arith.constant 0 : index
    %c3_119 = arith.constant 3 : index
    %c0_120 = arith.constant 0 : index
    %c1_121 = arith.constant 1 : index
    %c2_122 = arith.constant 2 : index
    %418 = vector.load %arg4[%c0_118, %c3_119, %c0_120, %c1_121, %c2_122] : memref<1x4x1x18x34xf32, #tpu.memory_space<vmem>>, vector<1x1x1x16x32xf32>
    %419 = vector.shape_cast %418 : vector<1x1x1x16x32xf32> to vector<16x32xf32>
    %c92 = arith.constant 92 : index
    %420 = memref.load %arg2[%c92] : memref<144xf32, #tpu.memory_space<smem>>
    %421 = vector.broadcast %420 : f32 to vector<16x32xf32>
    %422 = arith.mulf %421, %419 : vector<16x32xf32>
    %423 = arith.addf %405, %422 : vector<16x32xf32>
    %c93 = arith.constant 93 : index
    %424 = memref.load %arg2[%c93] : memref<144xf32, #tpu.memory_space<smem>>
    %425 = vector.broadcast %424 : f32 to vector<16x32xf32>
    %426 = arith.mulf %425, %419 : vector<16x32xf32>
    %427 = arith.addf %409, %426 : vector<16x32xf32>
    %c94 = arith.constant 94 : index
    %428 = memref.load %arg2[%c94] : memref<144xf32, #tpu.memory_space<smem>>
    %429 = vector.broadcast %428 : f32 to vector<16x32xf32>
    %430 = arith.mulf %429, %419 : vector<16x32xf32>
    %431 = arith.addf %413, %430 : vector<16x32xf32>
    %c95 = arith.constant 95 : index
    %432 = memref.load %arg2[%c95] : memref<144xf32, #tpu.memory_space<smem>>
    %433 = vector.broadcast %432 : f32 to vector<16x32xf32>
    %434 = arith.mulf %433, %419 : vector<16x32xf32>
    %435 = arith.addf %417, %434 : vector<16x32xf32>
    %c0_123 = arith.constant 0 : index
    %c0_124 = arith.constant 0 : index
    %c0_125 = arith.constant 0 : index
    %c2_126 = arith.constant 2 : index
    %c0_127 = arith.constant 0 : index
    %436 = vector.load %arg4[%c0_123, %c0_124, %c0_125, %c2_126, %c0_127] : memref<1x4x1x18x34xf32, #tpu.memory_space<vmem>>, vector<1x1x1x16x32xf32>
    %437 = vector.shape_cast %436 : vector<1x1x1x16x32xf32> to vector<16x32xf32>
    %c96 = arith.constant 96 : index
    %438 = memref.load %arg2[%c96] : memref<144xf32, #tpu.memory_space<smem>>
    %439 = vector.broadcast %438 : f32 to vector<16x32xf32>
    %440 = arith.mulf %439, %437 : vector<16x32xf32>
    %441 = arith.addf %423, %440 : vector<16x32xf32>
    %c97 = arith.constant 97 : index
    %442 = memref.load %arg2[%c97] : memref<144xf32, #tpu.memory_space<smem>>
    %443 = vector.broadcast %442 : f32 to vector<16x32xf32>
    %444 = arith.mulf %443, %437 : vector<16x32xf32>
    %445 = arith.addf %427, %444 : vector<16x32xf32>
    %c98 = arith.constant 98 : index
    %446 = memref.load %arg2[%c98] : memref<144xf32, #tpu.memory_space<smem>>
    %447 = vector.broadcast %446 : f32 to vector<16x32xf32>
    %448 = arith.mulf %447, %437 : vector<16x32xf32>
    %449 = arith.addf %431, %448 : vector<16x32xf32>
    %c99 = arith.constant 99 : index
    %450 = memref.load %arg2[%c99] : memref<144xf32, #tpu.memory_space<smem>>
    %451 = vector.broadcast %450 : f32 to vector<16x32xf32>
    %452 = arith.mulf %451, %437 : vector<16x32xf32>
    %453 = arith.addf %435, %452 : vector<16x32xf32>
    %c0_128 = arith.constant 0 : index
    %c1_129 = arith.constant 1 : index
    %c0_130 = arith.constant 0 : index
    %c2_131 = arith.constant 2 : index
    %c0_132 = arith.constant 0 : index
    %454 = vector.load %arg4[%c0_128, %c1_129, %c0_130, %c2_131, %c0_132] : memref<1x4x1x18x34xf32, #tpu.memory_space<vmem>>, vector<1x1x1x16x32xf32>
    %455 = vector.shape_cast %454 : vector<1x1x1x16x32xf32> to vector<16x32xf32>
    %c100 = arith.constant 100 : index
    %456 = memref.load %arg2[%c100] : memref<144xf32, #tpu.memory_space<smem>>
    %457 = vector.broadcast %456 : f32 to vector<16x32xf32>
    %458 = arith.mulf %457, %455 : vector<16x32xf32>
    %459 = arith.addf %441, %458 : vector<16x32xf32>
    %c101 = arith.constant 101 : index
    %460 = memref.load %arg2[%c101] : memref<144xf32, #tpu.memory_space<smem>>
    %461 = vector.broadcast %460 : f32 to vector<16x32xf32>
    %462 = arith.mulf %461, %455 : vector<16x32xf32>
    %463 = arith.addf %445, %462 : vector<16x32xf32>
    %c102 = arith.constant 102 : index
    %464 = memref.load %arg2[%c102] : memref<144xf32, #tpu.memory_space<smem>>
    %465 = vector.broadcast %464 : f32 to vector<16x32xf32>
    %466 = arith.mulf %465, %455 : vector<16x32xf32>
    %467 = arith.addf %449, %466 : vector<16x32xf32>
    %c103 = arith.constant 103 : index
    %468 = memref.load %arg2[%c103] : memref<144xf32, #tpu.memory_space<smem>>
    %469 = vector.broadcast %468 : f32 to vector<16x32xf32>
    %470 = arith.mulf %469, %455 : vector<16x32xf32>
    %471 = arith.addf %453, %470 : vector<16x32xf32>
    %c0_133 = arith.constant 0 : index
    %c2_134 = arith.constant 2 : index
    %c0_135 = arith.constant 0 : index
    %c2_136 = arith.constant 2 : index
    %c0_137 = arith.constant 0 : index
    %472 = vector.load %arg4[%c0_133, %c2_134, %c0_135, %c2_136, %c0_137] : memref<1x4x1x18x34xf32, #tpu.memory_space<vmem>>, vector<1x1x1x16x32xf32>
    %473 = vector.shape_cast %472 : vector<1x1x1x16x32xf32> to vector<16x32xf32>
    %c104 = arith.constant 104 : index
    %474 = memref.load %arg2[%c104] : memref<144xf32, #tpu.memory_space<smem>>
    %475 = vector.broadcast %474 : f32 to vector<16x32xf32>
    %476 = arith.mulf %475, %473 : vector<16x32xf32>
    %477 = arith.addf %459, %476 : vector<16x32xf32>
    %c105 = arith.constant 105 : index
    %478 = memref.load %arg2[%c105] : memref<144xf32, #tpu.memory_space<smem>>
    %479 = vector.broadcast %478 : f32 to vector<16x32xf32>
    %480 = arith.mulf %479, %473 : vector<16x32xf32>
    %481 = arith.addf %463, %480 : vector<16x32xf32>
    %c106 = arith.constant 106 : index
    %482 = memref.load %arg2[%c106] : memref<144xf32, #tpu.memory_space<smem>>
    %483 = vector.broadcast %482 : f32 to vector<16x32xf32>
    %484 = arith.mulf %483, %473 : vector<16x32xf32>
    %485 = arith.addf %467, %484 : vector<16x32xf32>
    %c107 = arith.constant 107 : index
    %486 = memref.load %arg2[%c107] : memref<144xf32, #tpu.memory_space<smem>>
    %487 = vector.broadcast %486 : f32 to vector<16x32xf32>
    %488 = arith.mulf %487, %473 : vector<16x32xf32>
    %489 = arith.addf %471, %488 : vector<16x32xf32>
    %c0_138 = arith.constant 0 : index
    %c3_139 = arith.constant 3 : index
    %c0_140 = arith.constant 0 : index
    %c2_141 = arith.constant 2 : index
    %c0_142 = arith.constant 0 : index
    %490 = vector.load %arg4[%c0_138, %c3_139, %c0_140, %c2_141, %c0_142] : memref<1x4x1x18x34xf32, #tpu.memory_space<vmem>>, vector<1x1x1x16x32xf32>
    %491 = vector.shape_cast %490 : vector<1x1x1x16x32xf32> to vector<16x32xf32>
    %c108 = arith.constant 108 : index
    %492 = memref.load %arg2[%c108] : memref<144xf32, #tpu.memory_space<smem>>
    %493 = vector.broadcast %492 : f32 to vector<16x32xf32>
    %494 = arith.mulf %493, %491 : vector<16x32xf32>
    %495 = arith.addf %477, %494 : vector<16x32xf32>
    %c109 = arith.constant 109 : index
    %496 = memref.load %arg2[%c109] : memref<144xf32, #tpu.memory_space<smem>>
    %497 = vector.broadcast %496 : f32 to vector<16x32xf32>
    %498 = arith.mulf %497, %491 : vector<16x32xf32>
    %499 = arith.addf %481, %498 : vector<16x32xf32>
    %c110 = arith.constant 110 : index
    %500 = memref.load %arg2[%c110] : memref<144xf32, #tpu.memory_space<smem>>
    %501 = vector.broadcast %500 : f32 to vector<16x32xf32>
    %502 = arith.mulf %501, %491 : vector<16x32xf32>
    %503 = arith.addf %485, %502 : vector<16x32xf32>
    %c111 = arith.constant 111 : index
    %504 = memref.load %arg2[%c111] : memref<144xf32, #tpu.memory_space<smem>>
    %505 = vector.broadcast %504 : f32 to vector<16x32xf32>
    %506 = arith.mulf %505, %491 : vector<16x32xf32>
    %507 = arith.addf %489, %506 : vector<16x32xf32>
    %c0_143 = arith.constant 0 : index
    %c0_144 = arith.constant 0 : index
    %c0_145 = arith.constant 0 : index
    %c2_146 = arith.constant 2 : index
    %c1_147 = arith.constant 1 : index
    %508 = vector.load %arg4[%c0_143, %c0_144, %c0_145, %c2_146, %c1_147] : memref<1x4x1x18x34xf32, #tpu.memory_space<vmem>>, vector<1x1x1x16x32xf32>
    %509 = vector.shape_cast %508 : vector<1x1x1x16x32xf32> to vector<16x32xf32>
    %c112 = arith.constant 112 : index
    %510 = memref.load %arg2[%c112] : memref<144xf32, #tpu.memory_space<smem>>
    %511 = vector.broadcast %510 : f32 to vector<16x32xf32>
    %512 = arith.mulf %511, %509 : vector<16x32xf32>
    %513 = arith.addf %495, %512 : vector<16x32xf32>
    %c113 = arith.constant 113 : index
    %514 = memref.load %arg2[%c113] : memref<144xf32, #tpu.memory_space<smem>>
    %515 = vector.broadcast %514 : f32 to vector<16x32xf32>
    %516 = arith.mulf %515, %509 : vector<16x32xf32>
    %517 = arith.addf %499, %516 : vector<16x32xf32>
    %c114 = arith.constant 114 : index
    %518 = memref.load %arg2[%c114] : memref<144xf32, #tpu.memory_space<smem>>
    %519 = vector.broadcast %518 : f32 to vector<16x32xf32>
    %520 = arith.mulf %519, %509 : vector<16x32xf32>
    %521 = arith.addf %503, %520 : vector<16x32xf32>
    %c115 = arith.constant 115 : index
    %522 = memref.load %arg2[%c115] : memref<144xf32, #tpu.memory_space<smem>>
    %523 = vector.broadcast %522 : f32 to vector<16x32xf32>
    %524 = arith.mulf %523, %509 : vector<16x32xf32>
    %525 = arith.addf %507, %524 : vector<16x32xf32>
    %c0_148 = arith.constant 0 : index
    %c1_149 = arith.constant 1 : index
    %c0_150 = arith.constant 0 : index
    %c2_151 = arith.constant 2 : index
    %c1_152 = arith.constant 1 : index
    %526 = vector.load %arg4[%c0_148, %c1_149, %c0_150, %c2_151, %c1_152] : memref<1x4x1x18x34xf32, #tpu.memory_space<vmem>>, vector<1x1x1x16x32xf32>
    %527 = vector.shape_cast %526 : vector<1x1x1x16x32xf32> to vector<16x32xf32>
    %c116 = arith.constant 116 : index
    %528 = memref.load %arg2[%c116] : memref<144xf32, #tpu.memory_space<smem>>
    %529 = vector.broadcast %528 : f32 to vector<16x32xf32>
    %530 = arith.mulf %529, %527 : vector<16x32xf32>
    %531 = arith.addf %513, %530 : vector<16x32xf32>
    %c117 = arith.constant 117 : index
    %532 = memref.load %arg2[%c117] : memref<144xf32, #tpu.memory_space<smem>>
    %533 = vector.broadcast %532 : f32 to vector<16x32xf32>
    %534 = arith.mulf %533, %527 : vector<16x32xf32>
    %535 = arith.addf %517, %534 : vector<16x32xf32>
    %c118 = arith.constant 118 : index
    %536 = memref.load %arg2[%c118] : memref<144xf32, #tpu.memory_space<smem>>
    %537 = vector.broadcast %536 : f32 to vector<16x32xf32>
    %538 = arith.mulf %537, %527 : vector<16x32xf32>
    %539 = arith.addf %521, %538 : vector<16x32xf32>
    %c119 = arith.constant 119 : index
    %540 = memref.load %arg2[%c119] : memref<144xf32, #tpu.memory_space<smem>>
    %541 = vector.broadcast %540 : f32 to vector<16x32xf32>
    %542 = arith.mulf %541, %527 : vector<16x32xf32>
    %543 = arith.addf %525, %542 : vector<16x32xf32>
    %c0_153 = arith.constant 0 : index
    %c2_154 = arith.constant 2 : index
    %c0_155 = arith.constant 0 : index
    %c2_156 = arith.constant 2 : index
    %c1_157 = arith.constant 1 : index
    %544 = vector.load %arg4[%c0_153, %c2_154, %c0_155, %c2_156, %c1_157] : memref<1x4x1x18x34xf32, #tpu.memory_space<vmem>>, vector<1x1x1x16x32xf32>
    %545 = vector.shape_cast %544 : vector<1x1x1x16x32xf32> to vector<16x32xf32>
    %c120 = arith.constant 120 : index
    %546 = memref.load %arg2[%c120] : memref<144xf32, #tpu.memory_space<smem>>
    %547 = vector.broadcast %546 : f32 to vector<16x32xf32>
    %548 = arith.mulf %547, %545 : vector<16x32xf32>
    %549 = arith.addf %531, %548 : vector<16x32xf32>
    %c121 = arith.constant 121 : index
    %550 = memref.load %arg2[%c121] : memref<144xf32, #tpu.memory_space<smem>>
    %551 = vector.broadcast %550 : f32 to vector<16x32xf32>
    %552 = arith.mulf %551, %545 : vector<16x32xf32>
    %553 = arith.addf %535, %552 : vector<16x32xf32>
    %c122 = arith.constant 122 : index
    %554 = memref.load %arg2[%c122] : memref<144xf32, #tpu.memory_space<smem>>
    %555 = vector.broadcast %554 : f32 to vector<16x32xf32>
    %556 = arith.mulf %555, %545 : vector<16x32xf32>
    %557 = arith.addf %539, %556 : vector<16x32xf32>
    %c123 = arith.constant 123 : index
    %558 = memref.load %arg2[%c123] : memref<144xf32, #tpu.memory_space<smem>>
    %559 = vector.broadcast %558 : f32 to vector<16x32xf32>
    %560 = arith.mulf %559, %545 : vector<16x32xf32>
    %561 = arith.addf %543, %560 : vector<16x32xf32>
    %c0_158 = arith.constant 0 : index
    %c3_159 = arith.constant 3 : index
    %c0_160 = arith.constant 0 : index
    %c2_161 = arith.constant 2 : index
    %c1_162 = arith.constant 1 : index
    %562 = vector.load %arg4[%c0_158, %c3_159, %c0_160, %c2_161, %c1_162] : memref<1x4x1x18x34xf32, #tpu.memory_space<vmem>>, vector<1x1x1x16x32xf32>
    %563 = vector.shape_cast %562 : vector<1x1x1x16x32xf32> to vector<16x32xf32>
    %c124 = arith.constant 124 : index
    %564 = memref.load %arg2[%c124] : memref<144xf32, #tpu.memory_space<smem>>
    %565 = vector.broadcast %564 : f32 to vector<16x32xf32>
    %566 = arith.mulf %565, %563 : vector<16x32xf32>
    %567 = arith.addf %549, %566 : vector<16x32xf32>
    %c125 = arith.constant 125 : index
    %568 = memref.load %arg2[%c125] : memref<144xf32, #tpu.memory_space<smem>>
    %569 = vector.broadcast %568 : f32 to vector<16x32xf32>
    %570 = arith.mulf %569, %563 : vector<16x32xf32>
    %571 = arith.addf %553, %570 : vector<16x32xf32>
    %c126 = arith.constant 126 : index
    %572 = memref.load %arg2[%c126] : memref<144xf32, #tpu.memory_space<smem>>
    %573 = vector.broadcast %572 : f32 to vector<16x32xf32>
    %574 = arith.mulf %573, %563 : vector<16x32xf32>
    %575 = arith.addf %557, %574 : vector<16x32xf32>
    %c127 = arith.constant 127 : index
    %576 = memref.load %arg2[%c127] : memref<144xf32, #tpu.memory_space<smem>>
    %577 = vector.broadcast %576 : f32 to vector<16x32xf32>
    %578 = arith.mulf %577, %563 : vector<16x32xf32>
    %579 = arith.addf %561, %578 : vector<16x32xf32>
    %c0_163 = arith.constant 0 : index
    %c0_164 = arith.constant 0 : index
    %c0_165 = arith.constant 0 : index
    %c2_166 = arith.constant 2 : index
    %c2_167 = arith.constant 2 : index
    %580 = vector.load %arg4[%c0_163, %c0_164, %c0_165, %c2_166, %c2_167] : memref<1x4x1x18x34xf32, #tpu.memory_space<vmem>>, vector<1x1x1x16x32xf32>
    %581 = vector.shape_cast %580 : vector<1x1x1x16x32xf32> to vector<16x32xf32>
    %c128 = arith.constant 128 : index
    %582 = memref.load %arg2[%c128] : memref<144xf32, #tpu.memory_space<smem>>
    %583 = vector.broadcast %582 : f32 to vector<16x32xf32>
    %584 = arith.mulf %583, %581 : vector<16x32xf32>
    %585 = arith.addf %567, %584 : vector<16x32xf32>
    %c129 = arith.constant 129 : index
    %586 = memref.load %arg2[%c129] : memref<144xf32, #tpu.memory_space<smem>>
    %587 = vector.broadcast %586 : f32 to vector<16x32xf32>
    %588 = arith.mulf %587, %581 : vector<16x32xf32>
    %589 = arith.addf %571, %588 : vector<16x32xf32>
    %c130 = arith.constant 130 : index
    %590 = memref.load %arg2[%c130] : memref<144xf32, #tpu.memory_space<smem>>
    %591 = vector.broadcast %590 : f32 to vector<16x32xf32>
    %592 = arith.mulf %591, %581 : vector<16x32xf32>
    %593 = arith.addf %575, %592 : vector<16x32xf32>
    %c131 = arith.constant 131 : index
    %594 = memref.load %arg2[%c131] : memref<144xf32, #tpu.memory_space<smem>>
    %595 = vector.broadcast %594 : f32 to vector<16x32xf32>
    %596 = arith.mulf %595, %581 : vector<16x32xf32>
    %597 = arith.addf %579, %596 : vector<16x32xf32>
    %c0_168 = arith.constant 0 : index
    %c1_169 = arith.constant 1 : index
    %c0_170 = arith.constant 0 : index
    %c2_171 = arith.constant 2 : index
    %c2_172 = arith.constant 2 : index
    %598 = vector.load %arg4[%c0_168, %c1_169, %c0_170, %c2_171, %c2_172] : memref<1x4x1x18x34xf32, #tpu.memory_space<vmem>>, vector<1x1x1x16x32xf32>
    %599 = vector.shape_cast %598 : vector<1x1x1x16x32xf32> to vector<16x32xf32>
    %c132 = arith.constant 132 : index
    %600 = memref.load %arg2[%c132] : memref<144xf32, #tpu.memory_space<smem>>
    %601 = vector.broadcast %600 : f32 to vector<16x32xf32>
    %602 = arith.mulf %601, %599 : vector<16x32xf32>
    %603 = arith.addf %585, %602 : vector<16x32xf32>
    %c133 = arith.constant 133 : index
    %604 = memref.load %arg2[%c133] : memref<144xf32, #tpu.memory_space<smem>>
    %605 = vector.broadcast %604 : f32 to vector<16x32xf32>
    %606 = arith.mulf %605, %599 : vector<16x32xf32>
    %607 = arith.addf %589, %606 : vector<16x32xf32>
    %c134 = arith.constant 134 : index
    %608 = memref.load %arg2[%c134] : memref<144xf32, #tpu.memory_space<smem>>
    %609 = vector.broadcast %608 : f32 to vector<16x32xf32>
    %610 = arith.mulf %609, %599 : vector<16x32xf32>
    %611 = arith.addf %593, %610 : vector<16x32xf32>
    %c135 = arith.constant 135 : index
    %612 = memref.load %arg2[%c135] : memref<144xf32, #tpu.memory_space<smem>>
    %613 = vector.broadcast %612 : f32 to vector<16x32xf32>
    %614 = arith.mulf %613, %599 : vector<16x32xf32>
    %615 = arith.addf %597, %614 : vector<16x32xf32>
    %c0_173 = arith.constant 0 : index
    %c2_174 = arith.constant 2 : index
    %c0_175 = arith.constant 0 : index
    %c2_176 = arith.constant 2 : index
    %c2_177 = arith.constant 2 : index
    %616 = vector.load %arg4[%c0_173, %c2_174, %c0_175, %c2_176, %c2_177] : memref<1x4x1x18x34xf32, #tpu.memory_space<vmem>>, vector<1x1x1x16x32xf32>
    %617 = vector.shape_cast %616 : vector<1x1x1x16x32xf32> to vector<16x32xf32>
    %c136 = arith.constant 136 : index
    %618 = memref.load %arg2[%c136] : memref<144xf32, #tpu.memory_space<smem>>
    %619 = vector.broadcast %618 : f32 to vector<16x32xf32>
    %620 = arith.mulf %619, %617 : vector<16x32xf32>
    %621 = arith.addf %603, %620 : vector<16x32xf32>
    %c137 = arith.constant 137 : index
    %622 = memref.load %arg2[%c137] : memref<144xf32, #tpu.memory_space<smem>>
    %623 = vector.broadcast %622 : f32 to vector<16x32xf32>
    %624 = arith.mulf %623, %617 : vector<16x32xf32>
    %625 = arith.addf %607, %624 : vector<16x32xf32>
    %c138 = arith.constant 138 : index
    %626 = memref.load %arg2[%c138] : memref<144xf32, #tpu.memory_space<smem>>
    %627 = vector.broadcast %626 : f32 to vector<16x32xf32>
    %628 = arith.mulf %627, %617 : vector<16x32xf32>
    %629 = arith.addf %611, %628 : vector<16x32xf32>
    %c139 = arith.constant 139 : index
    %630 = memref.load %arg2[%c139] : memref<144xf32, #tpu.memory_space<smem>>
    %631 = vector.broadcast %630 : f32 to vector<16x32xf32>
    %632 = arith.mulf %631, %617 : vector<16x32xf32>
    %633 = arith.addf %615, %632 : vector<16x32xf32>
    %c0_178 = arith.constant 0 : index
    %c3_179 = arith.constant 3 : index
    %c0_180 = arith.constant 0 : index
    %c2_181 = arith.constant 2 : index
    %c2_182 = arith.constant 2 : index
    %634 = vector.load %arg4[%c0_178, %c3_179, %c0_180, %c2_181, %c2_182] : memref<1x4x1x18x34xf32, #tpu.memory_space<vmem>>, vector<1x1x1x16x32xf32>
    %635 = vector.shape_cast %634 : vector<1x1x1x16x32xf32> to vector<16x32xf32>
    %c140 = arith.constant 140 : index
    %636 = memref.load %arg2[%c140] : memref<144xf32, #tpu.memory_space<smem>>
    %637 = vector.broadcast %636 : f32 to vector<16x32xf32>
    %638 = arith.mulf %637, %635 : vector<16x32xf32>
    %639 = arith.addf %621, %638 : vector<16x32xf32>
    %c141 = arith.constant 141 : index
    %640 = memref.load %arg2[%c141] : memref<144xf32, #tpu.memory_space<smem>>
    %641 = vector.broadcast %640 : f32 to vector<16x32xf32>
    %642 = arith.mulf %641, %635 : vector<16x32xf32>
    %643 = arith.addf %625, %642 : vector<16x32xf32>
    %c142 = arith.constant 142 : index
    %644 = memref.load %arg2[%c142] : memref<144xf32, #tpu.memory_space<smem>>
    %645 = vector.broadcast %644 : f32 to vector<16x32xf32>
    %646 = arith.mulf %645, %635 : vector<16x32xf32>
    %647 = arith.addf %629, %646 : vector<16x32xf32>
    %c143 = arith.constant 143 : index
    %648 = memref.load %arg2[%c143] : memref<144xf32, #tpu.memory_space<smem>>
    %649 = vector.broadcast %648 : f32 to vector<16x32xf32>
    %650 = arith.mulf %649, %635 : vector<16x32xf32>
    %651 = arith.addf %633, %650 : vector<16x32xf32>
    %c0_183 = arith.constant 0 : index
    %652 = memref.load %arg3[%c0_183] : memref<4xf32, #tpu.memory_space<smem>>
    %653 = vector.broadcast %652 : f32 to vector<16x32xf32>
    %654 = arith.addf %639, %653 : vector<16x32xf32>
    %c0_184 = arith.constant 0 : index
    %c0_185 = arith.constant 0 : index
    %c0_186 = arith.constant 0 : index
    %c0_187 = arith.constant 0 : index
    %655 = vector.load %arg5[%c0_184, %c0_185, %c0_186, %c0_187] : memref<1x4x16x32xf32, #tpu.memory_space<vmem>>, vector<1x1x16x32xf32>
    %656 = vector.shape_cast %655 : vector<1x1x16x32xf32> to vector<16x32xf32>
    %657 = vector.shape_cast %654 : vector<16x32xf32> to vector<1x1x16x32xf32>
    tpu.vector_store %arg5[%c0_184, %c0_185, %c0_186, %c0_187], %657 {strides = array<i32>} : memref<1x4x16x32xf32, #tpu.memory_space<vmem>>, vector<1x1x16x32xf32>,
    %c1_188 = arith.constant 1 : index
    %658 = memref.load %arg3[%c1_188] : memref<4xf32, #tpu.memory_space<smem>>
    %659 = vector.broadcast %658 : f32 to vector<16x32xf32>
    %660 = arith.addf %643, %659 : vector<16x32xf32>
    %c0_189 = arith.constant 0 : index
    %c1_190 = arith.constant 1 : index
    %c0_191 = arith.constant 0 : index
    %c0_192 = arith.constant 0 : index
    %661 = vector.load %arg5[%c0_189, %c1_190, %c0_191, %c0_192] : memref<1x4x16x32xf32, #tpu.memory_space<vmem>>, vector<1x1x16x32xf32>
    %662 = vector.shape_cast %661 : vector<1x1x16x32xf32> to vector<16x32xf32>
    %663 = vector.shape_cast %660 : vector<16x32xf32> to vector<1x1x16x32xf32>
    tpu.vector_store %arg5[%c0_189, %c1_190, %c0_191, %c0_192], %663 {strides = array<i32>} : memref<1x4x16x32xf32, #tpu.memory_space<vmem>>, vector<1x1x16x32xf32>,
    %c2_193 = arith.constant 2 : index
    %664 = memref.load %arg3[%c2_193] : memref<4xf32, #tpu.memory_space<smem>>
    %665 = vector.broadcast %664 : f32 to vector<16x32xf32>
    %666 = arith.addf %647, %665 : vector<16x32xf32>
    %c0_194 = arith.constant 0 : index
    %c2_195 = arith.constant 2 : index
    %c0_196 = arith.constant 0 : index
    %c0_197 = arith.constant 0 : index
    %667 = vector.load %arg5[%c0_194, %c2_195, %c0_196, %c0_197] : memref<1x4x16x32xf32, #tpu.memory_space<vmem>>, vector<1x1x16x32xf32>
    %668 = vector.shape_cast %667 : vector<1x1x16x32xf32> to vector<16x32xf32>
    %669 = vector.shape_cast %666 : vector<16x32xf32> to vector<1x1x16x32xf32>
    tpu.vector_store %arg5[%c0_194, %c2_195, %c0_196, %c0_197], %669 {strides = array<i32>} : memref<1x4x16x32xf32, #tpu.memory_space<vmem>>, vector<1x1x16x32xf32>,
    %c3_198 = arith.constant 3 : index
    %670 = memref.load %arg3[%c3_198] : memref<4xf32, #tpu.memory_space<smem>>
    %671 = vector.broadcast %670 : f32 to vector<16x32xf32>
    %672 = arith.addf %651, %671 : vector<16x32xf32>
    %c0_199 = arith.constant 0 : index
    %c3_200 = arith.constant 3 : index
    %c0_201 = arith.constant 0 : index
    %c0_202 = arith.constant 0 : index
    %673 = vector.load %arg5[%c0_199, %c3_200, %c0_201, %c0_202] : memref<1x4x16x32xf32, #tpu.memory_space<vmem>>, vector<1x1x16x32xf32>
    %674 = vector.shape_cast %673 : vector<1x1x16x32xf32> to vector<16x32xf32>
    %675 = vector.shape_cast %672 : vector<16x32xf32> to vector<1x1x16x32xf32>
    tpu.vector_store %arg5[%c0_199, %c3_200, %c0_201, %c0_202], %675 {strides = array<i32>} : memref<1x4x16x32xf32, #tpu.memory_space<vmem>>, vector<1x1x16x32xf32>,
    return
  }
  func.func @transform_0(%arg0: i32, %arg1: i32) -> i32 {
    %c0_i32 = arith.constant 0 : i32
    %c0_i32_0 = arith.constant 0 : i32
    return %c0_i32 : i32
  }
  func.func @transform_1(%arg0: i32, %arg1: i32) -> i32 {
    %c0_i32 = arith.constant 0 : i32
    %c0_i32_0 = arith.constant 0 : i32
    return %c0_i32 : i32
  }
  func.func @transform_2(%arg0: i32, %arg1: i32) -> (i32, i32, i32, i32, i32) {
    %c0_i32 = arith.constant 0 : i32
    %c0_i32_0 = arith.constant 0 : i32
    %c0_i32_1 = arith.constant 0 : i32
    %c0_i32_2 = arith.constant 0 : i32
    return %arg0, %c0_i32, %arg1, %c0_i32_0, %c0_i32_1 : i32, i32, i32, i32, i32
  }
  func.func @transform_3(%arg0: i32, %arg1: i32) -> (i32, i32, i32, i32) {
    %c0_i32 = arith.constant 0 : i32
    %c0_i32_0 = arith.constant 0 : i32
    %c0_i32_1 = arith.constant 0 : i32
    return %arg0, %c0_i32, %arg1, %c0_i32_0 : i32, i32, i32, i32
  }
}

</mosaic_0001>

<bundles_post_ra>
// kernel: tpu_custom_call.1
= control target key start
LH: loop header
LB: loop body
LE: loop exit
PB: predicated region body
PF: predicated region fallthrough
CT: control target
= control target key end

     0   :  { %s4045_s0 = inlined_call_operand.vmem [shape: f32[144], index: 0, kind: input, shape index: {}]   ;;  %s4046_s1 = inlined_call_operand.vmem [shape: f32[4], index: 1, kind: input, shape index: {}]   ;;  %s4047_s2 = inlined_call_operand.vmem [shape: f32[2,4,2,18,34], index: 2, kind: input, shape index: {}]   ;;  %s4048_s3 = inlined_call_operand.hbm [shape: f32[2,4,32,32], index: 3, kind: output, shape index: {}]  }
   0x1   :  { %4056 = sst [smem:[#allocation56_spill]] %s4045_s0 }
   0x2   :  { %4057 = sst [smem:[#allocation57_spill]] %s4046_s1 }
   0x3   :  { %4058 = sst [smem:[#allocation58_spill]] %s4047_s2 }
   0x4   :  { %8 = vsyncpa [#allocation4], 0 }
   0x5   :  { %9 = vsyncpa [#allocation6], 0 }
   0x6   :  { %10 = vsyncpa [#allocation3], 0 }
   0x7   :  { %12 = vsyncpa [#allocation3 + $0x1], 0  ;;  %s2563_s12 = smov 0   ;;  %s2565_s13 = smov 0  }
   0x8   :  { %s2567_s14 = smov 0   ;;  %s2569_s15 = smov 0  }
   0x9   :  { %s2571_s16 = smov 0   ;;  %s2573_s17 = smov 0  }
   0xa   :  { %s2575_s18 = smov 0   ;;  %s2577_s19 = smov 0  }
   0xb LB: > { %s2128_s20 = sadd.s32 4294967295, %s2530_s19   ;;  %s2129_s21 = sadd.s32 4294967294, %s2530_s19   ;;  %s2530_s19 = sphi %s2577_s19, %s18_s19   ;;  %s2526_s18 = sphi %s2575_s18, %s4164_s18   ;;  %s2522_s17 = sphi %s2573_s17, %s4163_s17   ;;  %s2518_s16 = sphi %s2571_s16, %s4162_s16   ;;  %s2514_s15 = sphi %s2569_s15, %s4161_s15   ;;  %s2510_s14 = sphi %s2567_s14, %s4160_s14   ;;  %s2506_s13 = sphi %s2565_s13, %s4159_s13   ;;  %s2502_s12 = sphi %s2563_s12, %s4158_s12  }
   0xc   : > { %s27_s22 = sadd.s32 1, %s2522_s17  ;;  %s30_s23 = sadd.s32 1, %s2526_s18 }
   0xd   : > { %p28_p0 = scmp.ge.s32.totalorder %s27_s22, 2  ;;  %s81_s24 = sadd.s32 1, %s2510_s14 }
   0xe   : > { %p88_p1 = scmp.ne.s32.totalorder %s2510_s14, %s2506_s13  ;;  %p89_p2 = scmp.eq.s32.totalorder %s2530_s19, 0 }
   0xf   : > { %s4166_s22 = smov (%p28_p0, %s27_s22), 0  ;;  %s4168_s23 = smov (!%p28_p0, %s30_s23), %s2526_s18 }
  0x10   : > { %s77_s25 = ssub.s32 %s2522_s17, %s4166_s22  ;;  %p2616_p3 = por %p89_p2, %p88_p1 }
  0x11   : > { %p32_p4 = scmp.ge.s32.totalorder %s4168_s23, 2  ;;  %p120_p5 = scmp.eq.s32.totalorder %s2128_s20, 3 }
  0x12   : > { %s4059_s26 = scalar_select %p2616_p3, 1, 0 }
  0x13   : > { %p125_p6 = scmp.ne.s32.totalorder %s2506_s13, %s2502_s12  ;;  %p126_p7 = scmp.eq.s32.totalorder %s2129_s21, 3 }
  0x14   : > { %s4170_s23 = smov (%p32_p4, %s4168_s23), 0  ;;  %p2624_p8 = por %p120_p5, %p88_p1 }
  0x15   : > { %4060 = sst [smem:[#allocation14_spill]] %s4170_s23  ;;  %p2628_p9 = por %p126_p7, %p125_p6 }
  0x16   : > { %s4061_s27 = scalar_select %p2624_p8, 1, 0 }
  0x17   : > { %s4062_s28 = scalar_select %p2628_p9, 1, 0 }
  0x18   : > { %s76_s29 = ssub.s32 %s2526_s18, %s4170_s23  ;;  %p2130_p10 = scmp.ge.s32.totalorder %s2530_s19, 1 }
  0x19   : > { %s78_s30 = sor.u32 %s77_s25, %s76_s29  ;;  %p133_p11 = scmp.lt.s32.totalorder %s2530_s19, 5 }
  0x1a   : > { %p79_p12 = scmp.eq.s32.totalorder %s78_s30, 0  ;;  %p2640_p0 = scmp.eq.s32.totalorder %s2128_s20, 0 }
  0x1b   : > { %p2636_p13 = pnand %p2130_p10, %p133_p11  ;;  %s4065_s0 = sld [smem:[#allocation56_spill]] }
  0x1c   : > { %s4064_s5 = scalar_select %p2640_p0, 1, 0 }
  0x1d   : > { %s4063_s4 = scalar_select %p2636_p13, 1, 0 }
  0x1e   : > { %s2645_s6 = scalar_select %p79_p12, %s2510_s14, %s81_s24  }
  0x1f   : > { %p2335_p1 = pneg %p2636_p13  ;;  %s4067_s1 = sld [smem:[#allocation57_spill]] }
  0x21   : > { %s146_s9 = sshll.u32 %s4065_s0, 4  ;;  %p2654_p2 = pnand %p2640_p0, %p2335_p1  ;;  %s147_s9 = int_to_ptr.vmem [resolvable:$true] %s146_s9 }
  0x22   : > { %s2426_s24 = scalar_lea.vmem %s147_s9, 32  ;;  %p2434_p10 = scmp.lt.s32.totalorder %s147_s9, %s147_s9 }
  0x23   : > { %p2427_p4 = scmp.ne.s32.totalorder %s147_s9, %s2426_s24  ;;  %p2428_p5 = pneg %p2654_p2 }
  0x24   : > { %p2435_p11 = scmp.lt.s32.totalorder %s2426_s24, %s2426_s24 }
  0x25   : > { %s157_s21 = sshll.u32 %s4067_s1, 4  ;;  %p2429_p6 = pnand %p2428_p5, %p2427_p4  ;;  %s158_s21 = int_to_ptr.vmem [resolvable:$true] %s157_s21 }
  0x26   : > { %p2436_p12 = por %p2435_p11, %p2434_p10 }
  0x27   : > { %p2430_p7 = pneg %p2429_p6 }
  0x29   : > { %p2437_p9 = pnand %p2436_p12, %p2430_p7 }
  0x2b   : > { %2440 = shalt.err (!%p2437_p9)
}
  0x2c   : > { %s2532_s25 = smov [#allocation2]   ;;  %s2441_s29 = scalar_lea.vmem %s158_s21, 16 }
  0x2d   : > { %2338 = dma.vmem_to_smem (!%p2654_p2), %s147_s9, 32, %s2532_s25, [#allocation4]  }
  0x2e   : > { %p2442_p1 = scmp.ne.s32.totalorder %s158_s21, %s2441_s29  ;;  %p2449_p13 = scmp.lt.s32.totalorder %s158_s21, %s158_s21 }
  0x2f   : > { %p2450_p3 = scmp.lt.s32.totalorder %s2441_s29, %s2441_s29 }
  0x30   : > { %p2444_p8 = pnand %p2442_p1, %p2428_p5 }
  0x31   : > { %p2451_p4 = por %p2450_p3, %p2449_p13 }
  0x32   : > { %p2445_p0 = pneg %p2444_p8 }
  0x34   : > { %p2452_p6 = pnand %p2451_p4, %p2445_p0 }
  0x36   : > { %2455 = shalt.err (!%p2452_p6)
}
  0x37   : > { %s2533_s30 = smov [#allocation5]   ;;  %p2133_p7 = scmp.ge.s32.totalorder %s2530_s19, 4 }
  0x38   : > { %2341 = dma.vmem_to_smem (!%p2654_p2), %s158_s21, 16, %s2533_s30, [#allocation6]  }
  0x39   : > { %164 = sbr.rel (%p2133_p7) target bundleno = 77 (0x4d), region = 24  ;;  %p4068_p9 = scmp.ne.s32.totalorder (!%p2133_p7), %s4059_s26, 0 }
  0x3e   : > { %167 = sbr.rel (!%p4068_p9) target bundleno = 77 (0x4d), region = 28  ;;  %s169_s7 = sand.u32 (%p4068_p9), 1, %s2510_s14  }
  0x3f   : > { %s2316_s8 = smul.u32 (%p4068_p9), 3, %s2522_s17  ;;  %s4069_s2 = sld [smem:[#allocation58_spill]] (%p4068_p9) }
  0x40   : > { %s2315_s9 = smul.u32 (%p4068_p9), 96, %s169_s7 }
  0x41   : > { %s2317_s11 = smul.u32 (%p4068_p9), 24, %s2526_s18 }
  0x42   : > { %s171_s21 = scalar_lea.vmem (%p4068_p9), [#allocation7], %s2315_s9 }
  0x43   : > { %s174_s20 = sadd.s32 %s2317_s11, %s2316_s8 }
  0x44   : > { %s2134_s24 = sshll.u32 %s174_s20, 3 }
  0x45   : > { %s176_s10 = scalar_lea.vmem %s4069_s2, %s2134_s24 }
  0x46   : > { %v227_v0 = vld [vmem:[%s176_s10] sm:$0xff]  ;;  %v229_v1 = vld [vmem:[%s176_s10 + $0x8] sm:$0xff]  ;;  %v231_v2 = vld [vmem:[%s176_s10 + $0x10] sm:$0xff] }
  0x47   : > { %228 = vst [vmem:[%s171_s21] sm:$0xff] %v227_v0  ;;  %230 = vst [vmem:[%s171_s21 + $0x8] sm:$0xff] %v229_v1  ;;  %v233_v3 = vld [vmem:[%s176_s10 + $0x30] sm:$0xff]  ;;  %v235_v4 = vld [vmem:[%s176_s10 + $0x38] sm:$0xff] }
  0x48   : > { %232 = vst [vmem:[%s171_s21 + $0x10] sm:$0xff] %v231_v2  ;;  %v237_v5 = vld [vmem:[%s176_s10 + $0x40] sm:$0xff]  ;;  %234 = vst [vmem:[%s171_s21 + $0x18] sm:$0xff] %v233_v3  ;;  %v241_v7 = vld [vmem:[%s176_s10 + $0x68] sm:$0xff] }
  0x49   : > { %236 = vst [vmem:[%s171_s21 + $0x20] sm:$0xff] %v235_v4  ;;  %238 = vst [vmem:[%s171_s21 + $0x28] sm:$0xff] %v237_v5  ;;  %v239_v6 = vld [vmem:[%s176_s10 + $0x60] sm:$0xff]  ;;  %v243_v8 = vld [vmem:[%s176_s10 + $0x70] sm:$0xff] }
  0x4a   : > { %240 = vst [vmem:[%s171_s21 + $0x30] sm:$0xff] %v239_v6  ;;  %242 = vst [vmem:[%s171_s21 + $0x38] sm:$0xff] %v241_v7  ;;  %v245_v9 = vld [vmem:[%s176_s10 + $0x90] sm:$0xff]  ;;  %v247_v10 = vld [vmem:[%s176_s10 + $0x98] sm:$0xff] }
  0x4b   : > { %244 = vst [vmem:[%s171_s21 + $0x40] sm:$0xff] %v243_v8  ;;  %v249_v11 = vld [vmem:[%s176_s10 + $0xa0] sm:$0xff]  ;;  %246 = vst [vmem:[%s171_s21 + $0x48] sm:$0xff] %v245_v9 }
  0x4c   : > { %248 = vst [vmem:[%s171_s21 + $0x50] sm:$0xff] %v247_v10  ;;  %250 = vst [vmem:[%s171_s21 + $0x58] sm:$0xff] %v249_v11 }
  0x4d PF: > { %p4070_p3 = scmp.ne.s32.totalorder %s4063_s4, 0 }
  0x4f   : > { %259 = sbr.rel (%p4070_p3) target bundleno = 616 (0x268), region = 66 }
  0x54   : > { %p4071_p8 = scmp.ne.s32.totalorder %s4064_s5, 0 }
  0x56   : > { %2489 = dma.done.wait (%p4071_p8), [#allocation4], 32  }
  0x57   : > { %2491 = vsyncadd (%p4071_p8), [#allocation4], 4294967264 }
  0x58   : > { %2493 = dma.done.wait (%p4071_p8), [#allocation6], 16  }
  0x59   : > { %2495 = vsyncadd (%p4071_p8), [#allocation6], 4294967280  ;;  %s2687_s26 = sand.u32 1, %s2506_s13  }
  0x5a   : > { %s2318_s30 = smul.u32 96, %s2687_s26 }
  0x5c   : > { %s2690_s7 = scalar_lea.vmem [#allocation7], %s2318_s30 }
  0x5d   : > { %276 = sfence }
  0x5e   : > { %s2161_s4 = sld [smem:[#allocation2 + $0x11]]  ;;  %v2693_v12 = vld [vmem:[%s2690_s7] sm:$0xff]  ;;  %v2696_v13 = vld [vmem:[%s2690_s7 + $0x8] sm:$0xff]  ;;  %s4053_s11 = smov 127   ;;  %v2716_v28 = vld [vmem:[%s2690_s7 + $0x18] sm:$0xff]  ;;  %vm1958_vm0 = vcmask 261120  }
  0x5f   : > { %s2160_s8 = sld [smem:[#allocation2 + $0x10]]  ;;  %v2713_v26 = vld [vmem:[%s2690_s7 + $0x20] sm:$0xff]  ;;  %v2737_v38 = vld [vmem:[%s2690_s7 + $0x38] sm:$0xff]  ;;  %v2740_v40 = vld [vmem:[%s2690_s7 + $0x30] sm:$0xff] }
  0x60   : > { %s2162_s9 = sld [smem:[#allocation2 + $0x12]]  ;;  %v2774_v56 = vld [vmem:[%s2690_s7 + $0x48] sm:$0xff]  ;;  %v2780_v60 = vld [vmem:[%s2690_s7 + $0x50] sm:$0xff] }
  0x61   : > { %s2163_s5 = sld [smem:[#allocation2 + $0x13]] }
  0x62   : > { %s2164_s20 = sld [smem:[#allocation2 + $0x14]] }
  0x63   : > { %s2165_s24 = sld [smem:[#allocation2 + $0x15]] }
  0x64   : > { %v417_v14 = vstv %s2161_s4  ;;  %s2166_s25 = sld [smem:[#allocation2 + $0x16]] }
  0x65   : > { %v418_v15 = vmul.f32 %v417_v14, %v2693_v12  ;;  %v403_v16 = vstv %s2160_s8  ;;  %v419_v18 = vmul.f32 %v417_v14, %v2696_v13  ;;  %s2167_s29 = sld [smem:[#allocation2 + $0x17]] }
  0x66   : > { %v404_v17 = vmul.f32 %v403_v16, %v2693_v12  ;;  %v405_v19 = vmul.f32 %v403_v16, %v2696_v13  ;;  %v431_v20 = vstv %s2162_s9  ;;  %s2168_s10 = sld [smem:[#allocation2 + $0x18]] }
  0x67   : > { %422 = vrot.lane.b32.xlu1 %v418_v15, %s4053_s11  ;;  %v433_v21 = vmul.f32 %v431_v20, %v2696_v13  ;;  %v432_v22 = vmul.f32 %v431_v20, %v2693_v12  ;;  %v445_v23 = vstv %s2163_s5  ;;  %s2724_s21 = sld [smem:[#allocation2 + $0x19]] }
  0x68   : > { %408 = vrot.lane.b32.xlu0 %v404_v17, %s4053_s11  ;;  %v447_v24 = vmul.f32 %v445_v23, %v2696_v13  ;;  %v446_v25 = vmul.f32 %v445_v23, %v2693_v12  ;;  %v459_v27 = vstv %s2164_s20  ;;  %s2728_s30 = sld [smem:[#allocation2 + $0x1a]] }
  0x69   : > { %v461_v29 = vmul.f32 %v2713_v26, %v459_v27  ;;  %v460_v30 = vmul.f32 %v2716_v28, %v459_v27  ;;  %v473_v31 = vstv %s2165_s24  ;;  %s2139_s4 = sld [smem:[#allocation2 + $0x1]] }
  0x6a   : > { %v475_v32 = vmul.f32 %v2713_v26, %v473_v31  ;;  %v474_v33 = vmul.f32 %v2716_v28, %v473_v31  ;;  %v487_v34 = vstv %s2166_s25  ;;  %s2145_s8 = sld [smem:[#allocation2 + $0x5]] }
  0x6b   : > { %424 = vrot.lane.b32.xlu1 %v419_v18, %s4053_s11  ;;  %v489_v35 = vmul.f32 %v2713_v26, %v487_v34  ;;  %v488_v36 = vmul.f32 %v2716_v28, %v487_v34  ;;  %v501_v37 = vstv %s2167_s29  ;;  %s2734_s9 = sld [smem:[#allocation2 + $0x9]] }
  0x6c   : > { %410 = vrot.lane.b32.xlu0 %v405_v19, %s4053_s11  ;;  %v515_v39 = vstv %s2168_s10  ;;  %s2742_s5 = sld [smem:[#allocation2 + $0xd]]  ;;  %v503_v41 = vmul.f32 %v2713_v26, %v501_v37  ;;  %v502_v43 = vmul.f32 %v2716_v28, %v501_v37 }
  0x6d   : > { %v529_v42 = vstv %s2724_s21  ;;  %s2747_s20 = sld [smem:[#allocation2]]  ;;  %v517_v44 = vmul.f32 %v2737_v38, %v515_v39  ;;  %v516_v45 = vmul.f32 %v2740_v40, %v515_v39 }
  0x6e   : > { %s2751_s24 = sld [smem:[#allocation2 + $0x4]]  ;;  %v531_v47 = vmul.f32 %v2737_v38, %v529_v42  ;;  %v530_v51 = vmul.f32 %v2740_v40, %v529_v42  ;;  %v543_v55 = vstv %s2728_s30 }
  0x6f   : > { %438 = vrot.lane.b32.xlu1 %v433_v21, %s4053_s11  ;;  %v304_v46 = vstv %s2139_s4  ;;  %s2755_s25 = sld [smem:[#allocation2 + $0x8]]  ;;  %v545_v18 = vmul.f32 %v2737_v38, %v543_v55  ;;  %v544_v21 = vmul.f32 %v2740_v40, %v543_v55 }
  0x70   : > { %436 = vrot.lane.b32.xlu0 %v432_v22, %s4053_s11  ;;  %v331_v48 = vstv %s2145_s8  ;;  %v305_v49 = vmul.f32 %v304_v46, %v2693_v12  ;;  %s2759_s29 = sld [smem:[#allocation2 + $0xc]]  ;;  %v306_v50 = vmul.f32 %v304_v46, %v2696_v13 }
  0x71   : > { %s2764_s10 = sld [smem:[#allocation2 + $0x1b]]  ;;  %v332_v52 = vmul.f32 %v2716_v28, %v331_v48  ;;  %v358_v53 = vstv %s2734_s9  ;;  %v333_v54 = vmul.f32 %v2713_v26, %v331_v48 }
  0x72   : > { %s2771_s21 = sld [smem:[#allocation2 + $0x1c]]  ;;  %v359_v57 = vmul.f32 %v2740_v40, %v358_v53  ;;  %v385_v58 = vstv %s2742_s5  ;;  %v360_v59 = vmul.f32 %v2737_v38, %v358_v53 }
  0x73   : > { %452 = vrot.lane.b32.xlu1 %v447_v24, %s4053_s11  ;;  %v386_v61 = vmul.f32 %v2774_v56, %v385_v58  ;;  %v334_v62 = vadd.f32 %v332_v52, %v305_v49  ;;  %v298_v63 = vstv %s2747_s20  ;;  %v335_v0 = vadd.f32 %v333_v54, %v306_v50  ;;  %s2784_s4 = sld [smem:[#allocation2 + $0x2]] }
  0x74   : > { %450 = vrot.lane.b32.xlu0 %v446_v25, %s4053_s11  ;;  %v325_v1 = vstv %s2751_s24  ;;  %v299_v2 = vmul.f32 %v298_v63, %v2693_v12  ;;  %v387_v3 = vmul.f32 %v2780_v60, %v385_v58  ;;  %v300_v4 = vmul.f32 %v298_v63, %v2696_v13  ;;  %s2790_s30 = sld [smem:[#allocation2 + $0x6]] }
  0x75   : > { %v361_v5 = vadd.f32 %v359_v57, %v334_v62  ;;  %v326_v6 = vmul.f32 %v2716_v28, %v325_v1  ;;  %v352_v7 = vstv %s2755_s25  ;;  %v362_v8 = vadd.f32 %v360_v59, %v335_v0  ;;  %s2795_s8 = sld [smem:[#allocation2 + $0xa]] }
  0x76   : > { %v353_v9 = vmul.f32 %v2740_v40, %v352_v7  ;;  %v379_v10 = vstv %s2759_s29  ;;  %v327_v11 = vmul.f32 %v2713_v26, %v325_v1  ;;  %v354_v14 = vmul.f32 %v2737_v38, %v352_v7  ;;  %s2802_s9 = sld [smem:[#allocation2 + $0xe]] }
  0x77   : > { %466 = vrot.lane.b32.xlu1 %v461_v29, %s4053_s11  ;;  %s2804_s5 = sld [smem:[#allocation2 + $0x1d]]  ;;  %v2806_v15 = vadd.f32 %v386_v61, %v361_v5  ;;  %v380_v16 = vmul.f32 %v2774_v56, %v379_v10  ;;  %v328_v17 = vadd.f32 %v326_v6, %v299_v2  ;;  %v2810_v19 = vadd.f32 %v387_v3, %v362_v8 }
  0x78   : > { %464 = vrot.lane.b32.xlu0 %v460_v30, %s4053_s11  ;;  %v329_v20 = vadd.f32 %v327_v11, %v300_v4  ;;  %s2812_s20 = sld [smem:[#allocation2 + $0x3]]  ;;  %v381_v23 = vmul.f32 %v2780_v60, %v379_v10  ;;  %v557_v25 = vstv %s2764_s10  ;;  %v571_v27 = vstv %s2771_s21 }
  0x79   : > { %v355_v22 = vadd.f32 %v353_v9, %v328_v17  ;;  %v310_v24 = vstv %s2784_s4  ;;  %s2818_s24 = sld [smem:[#allocation2 + $0x7]]  ;;  %v558_v42 = vmul.f32 %v2740_v40, %v557_v25  ;;  %v572_v49 = vmul.f32 %v2774_v56, %v571_v27 }
  0x7a   : > { %v356_v29 = vadd.f32 %v354_v14, %v329_v20  ;;  %v312_v30 = vmul.f32 %v310_v24, %v2696_v13  ;;  %s2824_s25 = sld [smem:[#allocation2 + $0xb]]  ;;  %v311_v34 = vmul.f32 %v310_v24, %v2693_v12 }
  0x7b   : > { %480 = vrot.lane.b32.xlu1 %v475_v32, %s4053_s11  ;;  %v2826_v31 = vadd.f32 %v380_v16, %v355_v22  ;;  %v337_v32 = vstv %s2790_s30  ;;  %s2831_s29 = sld [smem:[#allocation2 + $0xf]] }
  0x7c   : > { %478 = vrot.lane.b32.xlu0 %v474_v33, %s4053_s11  ;;  %v364_v33 = vstv %s2795_s8  ;;  %v391_v39 = vstv %s2802_s9  ;;  %s2845_s10 = sld [smem:[#allocation2 + $0x1e]] }
  0x7d   : > { %v366_v37 = vmul.f32 %v2737_v38, %v364_v33  ;;  %v392_v50 = vmul.f32 %v2774_v56, %v391_v39  ;;  %v585_v63 = vstv %s2804_s5  ;;  %s2175_s21 = sld [smem:[#allocation2 + $0x1f]]  ;;  %s2535_s5 = smov 126  }
  0x7e   : > { %v316_v48 = vstv %s2812_s20  ;;  %v587_v8 = vmul.f32 %v2780_v60, %v585_v63  ;;  %v586_v10 = vmul.f32 %v2774_v56, %v585_v63  ;;  %s2176_s4 = sld [smem:[#allocation2 + $0x20]] }
  0x7f   : > { %494 = vrot.lane.b32.xlu1 %v489_v35, %s4053_s11  ;;  %v2833_v35 = vadd.f32 %v381_v23, %v356_v29  ;;  %v318_v52 = vmul.f32 %v316_v48, %v2696_v13  ;;  %v343_v54 = vstv %s2818_s24  ;;  %v317_v57 = vmul.f32 %v316_v48, %v2693_v12  ;;  %s2177_s30 = sld [smem:[#allocation2 + $0x21]] }
  0x80   : > { %492 = vrot.lane.b32.xlu0 %v488_v36, %s4053_s11  ;;  %v339_v36 = vmul.f32 %v2713_v26, %v337_v32  ;;  %v370_v55 = vstv %s2824_s25  ;;  %v345_v59 = vmul.f32 %v2713_v26, %v343_v54  ;;  %v344_v1 = vmul.f32 %v2716_v28, %v343_v54  ;;  %s2178_s8 = sld [smem:[#allocation2 + $0x22]] }
  0x81   : > { %v372_v61 = vmul.f32 %v2737_v38, %v370_v55  ;;  %v397_v62 = vstv %s2831_s29  ;;  %v371_v2 = vmul.f32 %v2740_v40, %v370_v55  ;;  %s2179_s9 = sld [smem:[#allocation2 + $0x23]] }
  0x82   : > { %v341_v46 = vadd.f32 %v339_v36, %v312_v30  ;;  %v347_v4 = vadd.f32 %v345_v59, %v318_v52  ;;  %v399_v5 = vmul.f32 %v2780_v60, %v397_v62  ;;  %v398_v6 = vmul.f32 %v2774_v56, %v397_v62  ;;  %s2180_s20 = sld [smem:[#allocation2 + $0x24]] }
  0x83   : > { %508 = vrot.lane.b32.xlu1 %v503_v41, %s4053_s11  ;;  %v559_v41 = vmul.f32 %v2737_v38, %v557_v25  ;;  %v346_v7 = vadd.f32 %v344_v1, %v317_v57  ;;  %v599_v11 = vstv %s2845_s10  ;;  %s2181_s24 = sld [smem:[#allocation2 + $0x25]] }
  0x84   : > { %506 = vrot.lane.b32.xlu0 %v502_v43, %s4053_s11  ;;  %v338_v43 = vmul.f32 %v2716_v28, %v337_v32  ;;  %v368_v53 = vadd.f32 %v366_v37, %v341_v46  ;;  %v374_v9 = vadd.f32 %v372_v61, %v347_v4  ;;  %v600_v20 = vmul.f32 %v2774_v56, %v599_v11  ;;  %s2182_s25 = sld [smem:[#allocation2 + $0x26]] }
  0x85   : > { %v373_v14 = vadd.f32 %v371_v2, %v346_v7  ;;  %v627_v24 = vstv %s2176_s4  ;;  %v641_v29 = vstv %s2177_s30  ;;  %s2183_s29 = sld [smem:[#allocation2 + $0x27]] }
  0x86   : > { %v2874_v16 = vadd.f32 %v399_v5, %v374_v9  ;;  %v629_v25 = vmul.f32 %v627_v24, %v2696_v13  ;;  %v643_v30 = vmul.f32 %v641_v29, %v2696_v13  ;;  %v642_v32 = vmul.f32 %v641_v29, %v2693_v12  ;;  %s2184_s10 = sld [smem:[#allocation2 + $0x28]] }
  0x87   : > { %522 = vrot.lane.b32.xlu1 %v517_v44, %s4053_s11  ;;  %v365_v44 = vmul.f32 %v2740_v40, %v364_v33  ;;  %v2876_v17 = vadd.f32 %v398_v6, %v373_v14  ;;  %v655_v33 = vstv %s2178_s8  ;;  %v669_v37 = vstv %s2179_s9  ;;  %s2186_s4 = sld [smem:[#allocation2 + $0x2a]] }
  0x88   : > { %520 = vrot.lane.b32.xlu0 %v516_v45, %s4053_s11  ;;  %v573_v45 = vmul.f32 %v2780_v60, %v571_v27  ;;  %v628_v27 = vmul.f32 %v627_v24, %v2693_v12  ;;  %v656_v36 = vmul.f32 %v655_v33, %v2693_v12  ;;  %s2187_s30 = sld [smem:[#allocation2 + $0x2b]] }
  0x89   : > { %4072 = vst [vmem:[#allocation15_spill] sm:$0xff] %v2876_v17  ;;  %s2188_s8 = sld [smem:[#allocation2 + $0x2c]] }
  0x8a   : > { %v711_v46 = vstv %s2182_s25  ;;  %s2189_s9 = sld [smem:[#allocation2 + $0x2d]] }
  0x8b   : > { %536 = vrot.lane.b32.xlu1 %v531_v47, %s4053_s11  ;;  %v393_v47 = vmul.f32 %v2780_v60, %v391_v39  ;;  %v671_v39 = vmul.f32 %v669_v37, %v2696_v13  ;;  %v712_v48 = vmul.f32 %v2716_v28, %v711_v46  ;;  %s2214_s25 = sld [smem:[#allocation2 + $0x40]] }
  0x8c   : > { %534 = vrot.lane.b32.xlu0 %v530_v51, %s4053_s11  ;;  %v340_v51 = vadd.f32 %v338_v43, %v311_v34  ;;  %v657_v34 = vmul.f32 %v655_v33, %v2696_v13  ;;  %v739_v52 = vstv %s2184_s10  ;;  %s2216_s10 = sld [smem:[#allocation2 + $0x42]] }
  0x8d   : > { %v2861_v0 = vadd.f32 %v393_v47, %v368_v53  ;;  %v713_v47 = vmul.f32 %v2713_v26, %v711_v46  ;;  %v741_v53 = vmul.f32 %v2737_v38, %v739_v52  ;;  %v740_v54 = vmul.f32 %v2740_v40, %v739_v52  ;;  %v2997_v46 = vld [vmem:[%s2690_s7 + $0x21] sm:$0xff]  ;;  %s3155_s0 = sld [smem:[#allocation2 + $0x31]] }
  0x8e   : > { %v367_v58 = vadd.f32 %v365_v44, %v340_v51  ;;  %v767_v57 = vstv %s2186_s4  ;;  %v781_v61 = vstv %s2187_s30  ;;  %s2218_s4 = sld [smem:[#allocation2 + $0x44]] }
  0x8f   : > { %550 = vrot.lane.b32.xlu1 %v545_v18, %s4053_s11  ;;  %v601_v18 = vmul.f32 %v2780_v60, %v599_v11  ;;  %v768_v59 = vmul.f32 %v2740_v40, %v767_v57  ;;  %v783_v62 = vmul.f32 %v2737_v38, %v781_v61  ;;  %v782_v63 = vmul.f32 %v2740_v40, %v781_v61  ;;  %s2219_s30 = sld [smem:[#allocation2 + $0x45]] }
  0x90   : > { %548 = vrot.lane.b32.xlu0 %v544_v21, %s4053_s11  ;;  %v2865_v3 = vadd.f32 %v392_v50, %v367_v58  ;;  %v613_v21 = vstv %s2175_s21  ;;  %s2185_s21 = sld [smem:[#allocation2 + $0x29]]  ;;  %v769_v58 = vmul.f32 %v2737_v38, %v767_v57  ;;  %v795_v1 = vstv %s2188_s8 }
  0x91   : > { %v615_v22 = vmul.f32 %v2780_v60, %v613_v21  ;;  %v614_v23 = vmul.f32 %v2774_v56, %v613_v21  ;;  %v797_v2 = vmul.f32 %v2780_v60, %v795_v1  ;;  %v796_v4 = vmul.f32 %v2774_v56, %v795_v1  ;;  %s2220_s8 = sld [smem:[#allocation2 + $0x46]] }
  0x92   : > { %v809_v5 = vstv %s2189_s9  ;;  %s2221_s9 = sld [smem:[#allocation2 + $0x47]] }
  0x93   : > { %564 = vrot.lane.b32.xlu1 %v559_v41, %s4053_s11  ;;  %v670_v41 = vmul.f32 %v669_v37, %v2693_v12  ;;  %s3164_s1 = sld [smem:[#allocation2 + $0x35]] }
  0x94   : > { %562 = vrot.lane.b32.xlu0 %v558_v42, %s4053_s11  ;;  %v683_v42 = vstv %s2180_s20  ;;  %s2190_s20 = sld [smem:[#allocation2 + $0x2e]] }
  0x95   : > { %v685_v43 = vmul.f32 %v2713_v26, %v683_v42  ;;  %v684_v44 = vmul.f32 %v2716_v28, %v683_v42  ;;  %s3169_s2 = sld [smem:[#allocation2 + $0x5b]] }
  0x96   : > { %v753_v55 = vstv %s2185_s21  ;;  %s2217_s21 = sld [smem:[#allocation2 + $0x43]] }
  0x97   : > { %578 = vrot.lane.b32.xlu1 %v573_v45, %s4053_s11  ;;  %v697_v45 = vstv %s2181_s24  ;;  %s2191_s24 = sld [smem:[#allocation2 + $0x2f]]  ;;  %v1039_v57 = vstv %s2220_s8 }
  0x98   : > { %576 = vrot.lane.b32.xlu0 %v572_v49, %s4053_s11  ;;  %v699_v13 = vmul.f32 %v2713_v26, %v697_v45  ;;  %v698_v12 = vmul.f32 %v2716_v28, %v697_v45  ;;  %v725_v49 = vstv %s2183_s29  ;;  %s2215_s29 = sld [smem:[#allocation2 + $0x41]]  ;;  %v1041_v61 = vmul.f32 %v2997_v46, %v1039_v57 }
  0x99   : > { %v727_v50 = vmul.f32 %v2713_v26, %v725_v49  ;;  %v726_v51 = vmul.f32 %v2716_v28, %v725_v49  ;;  %v755_v26 = vmul.f32 %v2737_v38, %v753_v55  ;;  %v754_v28 = vmul.f32 %v2740_v40, %v753_v55  ;;  %v3002_v49 = vld [vmem:[%s2690_s7 + $0x19] sm:$0xff]  ;;  %s2230_s8 = sld [smem:[#allocation2 + $0x50]] }
  0x9a   : > { %v811_v38 = vmul.f32 %v2780_v60, %v809_v5  ;;  %v810_v40 = vmul.f32 %v2774_v56, %v809_v5  ;;  %v823_v6 = vstv %s2190_s20  ;;  %s2222_s20 = sld [smem:[#allocation2 + $0x48]] }
  0x9b   : > { %592 = vrot.lane.b32.xlu1 %v587_v8, %s4053_s11  ;;  %v825_v9 = vmul.f32 %v2780_v60, %v823_v6  ;;  %s3174_s23 = sld [smem:[#allocation2 + $0x32]] }
  0x9c   : > { %590 = vrot.lane.b32.xlu0 %v586_v10, %s4053_s11  ;;  %v824_v10 = vmul.f32 %v2774_v56, %v823_v6 }
  0x9d   : > { %v837_v11 = vstv %s2191_s24  ;;  %s2223_s24 = sld [smem:[#allocation2 + $0x49]] }
  0x9e   : > { %v838_v21 = vmul.f32 %v2774_v56, %v837_v11 }
  0x9f   : > { %606 = vrot.lane.b32.xlu1 %v601_v18, %s4053_s11 }
  0xa0   : > { %604 = vrot.lane.b32.xlu0 %v600_v20, %s4053_s11  ;;  %v839_v20 = vmul.f32 %v2780_v60, %v837_v11 }
  0xa3   : > { %620 = vrot.lane.b32.xlu1 %v615_v22, %s4053_s11  ;;  %v2959_v22 = vld [vmem:[%s2690_s7 + $0x9] sm:$0xff] }
  0xa4   : > { %618 = vrot.lane.b32.xlu0 %v614_v23, %s4053_s11  ;;  %v955_v23 = vstv %s2214_s25  ;;  %s2224_s25 = sld [smem:[#allocation2 + $0x4a]] }
  0xa5   : > { %v957_v29 = vmul.f32 %v955_v23, %v2959_v22 }
  0xa7   : > { %634 = vrot.lane.b32.xlu1 %v629_v25, %s2535_s5  ;;  %v2964_v25 = vld [vmem:[%s2690_s7 + $0x1] sm:$0xff] }
  0xa8   : > { %632 = vrot.lane.b32.xlu0 %v628_v27, %s2535_s5  ;;  %v956_v60 = vmul.f32 %v955_v23, %v2964_v25 }
  0xab   : > { %648 = vrot.lane.b32.xlu1 %v643_v30, %s2535_s5  ;;  %v969_v30 = vstv %s2215_s29  ;;  %s2225_s29 = sld [smem:[#allocation2 + $0x4b]] }
  0xac   : > { %646 = vrot.lane.b32.xlu0 %v642_v32, %s2535_s5  ;;  %v971_v33 = vmul.f32 %v969_v30, %v2959_v22 }
  0xaf   : > { %662 = vrot.lane.b32.xlu1 %v657_v34, %s2535_s5  ;;  %v970_v34 = vmul.f32 %v969_v30, %v2964_v25 }
  0xb0   : > { %660 = vrot.lane.b32.xlu0 %v656_v36, %s2535_s5  ;;  %v983_v36 = vstv %s2216_s10  ;;  %s2226_s10 = sld [smem:[#allocation2 + $0x4c]] }
  0xb1   : > { %v984_v42 = vmul.f32 %v983_v36, %v2964_v25 }
  0xb3   : > { %676 = vrot.lane.b32.xlu1 %v671_v39, %s2535_s5 }
  0xb4   : > { %674 = vrot.lane.b32.xlu0 %v670_v41, %s2535_s5  ;;  %v985_v41 = vmul.f32 %v983_v36, %v2959_v22 }
  0xb7   : > { %690 = vrot.lane.b32.xlu1 %v685_v43, %s2535_s5  ;;  %v997_v43 = vstv %s2217_s21  ;;  %s2227_s21 = sld [smem:[#allocation2 + $0x4d]] }
  0xb8   : > { %688 = vrot.lane.b32.xlu0 %v684_v44, %s2535_s5 }
  0xbb   : > { %704 = vrot.lane.b32.xlu1 %v699_v13, %s2535_s5  ;;  %v999_v13 = vmul.f32 %v997_v43, %v2959_v22 }
  0xbc   : > { %702 = vrot.lane.b32.xlu0 %v698_v12, %s2535_s5  ;;  %v998_v12 = vmul.f32 %v997_v43, %v2964_v25  ;;  %v1109_v43 = vstv %s2225_s29  ;;  %s3122_s29 = sld [smem:[#allocation2 + $0x55]] }
  0xbf   : > { %718 = vrot.lane.b32.xlu1 %v713_v47, %s2535_s5  ;;  %v1011_v47 = vstv %s2218_s4  ;;  %s2228_s4 = sld [smem:[#allocation2 + $0x4e]] }
  0xc0   : > { %716 = vrot.lane.b32.xlu0 %v712_v48, %s2535_s5  ;;  %v1012_v52 = vmul.f32 %v3002_v49, %v1011_v47 }
  0xc3   : > { %732 = vrot.lane.b32.xlu1 %v727_v50, %s2535_s5 }
  0xc4   : > { %730 = vrot.lane.b32.xlu0 %v726_v51, %s2535_s5  ;;  %v1013_v51 = vmul.f32 %v2997_v46, %v1011_v47 }
  0xc7   : > { %746 = vrot.lane.b32.xlu1 %v741_v53, %s2535_s5  ;;  %v1025_v53 = vstv %s2219_s30  ;;  %s2229_s30 = sld [smem:[#allocation2 + $0x4f]] }
  0xc8   : > { %744 = vrot.lane.b32.xlu0 %v740_v54, %s2535_s5 }
  0xcb   : > { %760 = vrot.lane.b32.xlu1 %v755_v26, %s2535_s5  ;;  %v1027_v26 = vmul.f32 %v2997_v46, %v1025_v53 }
  0xcc   : > { %758 = vrot.lane.b32.xlu0 %v754_v28, %s2535_s5  ;;  %v1026_v28 = vmul.f32 %v3002_v49, %v1025_v53  ;;  %v1123_v53 = vstv %s2226_s10  ;;  %s3126_s10 = sld [smem:[#allocation2 + $0x56]] }
  0xcf   : > { %774 = vrot.lane.b32.xlu1 %v769_v58, %s2535_s5 }
  0xd0   : > { %772 = vrot.lane.b32.xlu0 %v768_v59, %s2535_s5 }
  0xd3   : > { %788 = vrot.lane.b32.xlu1 %v783_v62, %s2535_s5  ;;  %v1040_v62 = vmul.f32 %v3002_v49, %v1039_v57 }
  0xd4   : > { %786 = vrot.lane.b32.xlu0 %v782_v63, %s2535_s5  ;;  %v1053_v63 = vstv %s2221_s9  ;;  %s2231_s9 = sld [smem:[#allocation2 + $0x51]] }
  0xd5   : > { %v1054_v5 = vmul.f32 %v3002_v49, %v1053_v63 }
  0xd7   : > { %802 = vrot.lane.b32.xlu1 %v797_v2, %s2535_s5 }
  0xd8   : > { %800 = vrot.lane.b32.xlu0 %v796_v4, %s2535_s5  ;;  %v1055_v4 = vmul.f32 %v2997_v46, %v1053_v63  ;;  %v1137_v63 = vstv %s2227_s21  ;;  %s3130_s21 = sld [smem:[#allocation2 + $0x57]] }
  0xd9   : > { %v2942_v7 = vpop.permute.xlu1 %422 }
  0xda   : > { %v2944_v8 = vpop.permute.xlu0 %408 }
  0xdb   : > { %816 = vrot.lane.b32.xlu1 %v811_v38, %s2535_s5  ;;  %v3035_v38 = vld [vmem:[%s2690_s7 + $0x39] sm:$0xff] }
  0xdc   : > { %814 = vrot.lane.b32.xlu0 %v810_v40, %s2535_s5  ;;  %v1067_v40 = vstv %s2222_s20  ;;  %v1111_v47 = vmul.f32 %v3035_v38, %v1109_v43  ;;  %s3110_s20 = sld [smem:[#allocation2 + $0x52]] }
  0xdd   : > { %v2950_v14 = vpop.permute.xlu1 %424  ;;  %v1069_v11 = vmul.f32 %v3035_v38, %v1067_v40 }
  0xde   : > { %v2952_v18 = vpop.permute.xlu0 %410 }
  0xdf   : > { %830 = vrot.lane.b32.xlu1 %v825_v9, %s2535_s5  ;;  %v3040_v9 = vld [vmem:[%s2690_s7 + $0x31] sm:$0xff] }
  0xe0   : > { %828 = vrot.lane.b32.xlu0 %v824_v10, %s2535_s5 }
  0xe1   : > { %v2961_v24 = vpop.permute.xlu1 %438 }
  0xe2   : > { %v2966_v27 = vpop.permute.xlu0 %436 }
  0xe3   : > { %844 = vrot.lane.b32.xlu1 %v839_v20, %s2535_s5  ;;  %v1068_v20 = vmul.f32 %v3040_v9, %v1067_v40 }
  0xe4   : > { %842 = vrot.lane.b32.xlu0 %v838_v21, %s2535_s5  ;;  %v1081_v21 = vstv %s2223_s24  ;;  %s3114_s24 = sld [smem:[#allocation2 + $0x53]] }
  0xe5   : > { %v2972_v56 = vpop.permute.xlu1 %452  ;;  %v1082_v30 = vmul.f32 %v3040_v9, %v1081_v21 }
  0xe6   : > { %v2974_v32 = vpop.permute.xlu0 %450 }
  0xe7   : > { %4073 = vst [vmem:[#allocation16_spill] sm:$0xff] %v2974_v32  ;;  %962 = vrot.lane.b32.xlu1 %v957_v29, %s4053_s11 }
  0xe8   : > { %960 = vrot.lane.b32.xlu0 %v956_v60, %s4053_s11  ;;  %v1083_v60 = vmul.f32 %v3035_v38, %v1081_v21 }
  0xe9   : > { %v2980_v37 = vpop.permute.xlu1 %466 }
  0xea   : > { %v2982_v39 = vpop.permute.xlu0 %464 }
  0xeb   : > { %976 = vrot.lane.b32.xlu1 %v971_v33, %s4053_s11  ;;  %v1095_v33 = vstv %s2224_s25  ;;  %s3118_s25 = sld [smem:[#allocation2 + $0x54]] }
  0xec   : > { %974 = vrot.lane.b32.xlu0 %v970_v34, %s4053_s11 }
  0xed   : > { %v2988_v44 = vpop.permute.xlu1 %480 }
  0xee   : > { %v2990_v45 = vpop.permute.xlu0 %478 }
  0xef   : > { %990 = vrot.lane.b32.xlu1 %v985_v41, %s4053_s11  ;;  %v1097_v41 = vmul.f32 %v3035_v38, %v1095_v33 }
  0xf0   : > { %988 = vrot.lane.b32.xlu0 %v984_v42, %s4053_s11  ;;  %v1096_v42 = vmul.f32 %v3040_v9, %v1095_v33 }
  0xf1   : > { %v2999_v48 = vpop.permute.xlu1 %494 }
  0xf2   : > { %v3004_v50 = vpop.permute.xlu0 %492 }
  0xf3   : > { %1004 = vrot.lane.b32.xlu1 %v999_v13, %s4053_s11 }
  0xf4   : > { %1002 = vrot.lane.b32.xlu0 %v998_v12, %s4053_s11 }
  0xf5   : > { %v3010_v54 = vpop.permute.xlu1 %508 }
  0xf6   : > { %4074 = vst [vmem:[#allocation17_spill] sm:$0xff] %v3010_v54  ;;  %v3012_v55 = vpop.permute.xlu0 %506 }
  0xf7   : > { %4075 = vst [vmem:[#allocation18_spill] sm:$0xff] %v3012_v55  ;;  %1018 = vrot.lane.b32.xlu1 %v1013_v51, %s4053_s11  ;;  %v1110_v51 = vmul.f32 %v3040_v9, %v1109_v43 }
  0xf8   : > { %1016 = vrot.lane.b32.xlu0 %v1012_v52, %s4053_s11  ;;  %v3073_v52 = vld [vmem:[%s2690_s7 + $0x51] sm:$0xff] }
  0xf9   : > { %v3018_v58 = vpop.permute.xlu1 %522  ;;  %v1139_v40 = vmul.f32 %v3073_v52, %v1137_v63 }
  0xfa   : > { %v3020_v59 = vpop.permute.xlu0 %520 }
  0xfb   : > { %1032 = vrot.lane.b32.xlu1 %v1027_v26, %s4053_s11 }
  0xfc   : > { %1030 = vrot.lane.b32.xlu0 %v1026_v28, %s4053_s11  ;;  %v3078_v28 = vld [vmem:[%s2690_s7 + $0x49] sm:$0xff] }
  0xfd   : > { %v3026_v1 = vpop.permute.xlu1 %536 }
  0xfe   : > { %v3028_v2 = vpop.permute.xlu0 %534 }
  0xff   : > { %1046 = vrot.lane.b32.xlu1 %v1041_v61, %s4053_s11  ;;  %v1125_v61 = vmul.f32 %v3073_v52, %v1123_v53 }
 0x100   : > { %1044 = vrot.lane.b32.xlu0 %v1040_v62, %s4053_s11  ;;  %v1124_v62 = vmul.f32 %v3078_v28, %v1123_v53  ;;  %v1179_v53 = vstv %s2230_s8  ;;  %s3143_s8 = sld [smem:[#allocation2 + $0x30]] }
 0x101   : > { %v3037_v6 = vpop.permute.xlu1 %550 }
 0x102   : > { %v3042_v10 = vpop.permute.xlu0 %548 }
 0x103   : > { %4076 = vst [vmem:[#allocation19_spill] sm:$0xff] %v3042_v10  ;;  %1060 = vrot.lane.b32.xlu1 %v1055_v4, %s4053_s11 }
 0x104   : > { %1058 = vrot.lane.b32.xlu0 %v1054_v5, %s4053_s11 }
 0x105   : > { %v3048_v23 = vpop.permute.xlu1 %564 }
 0x106   : > { %4077 = vst [vmem:[#allocation20_spill] sm:$0xff] %v3048_v23  ;;  %v3050_v29 = vpop.permute.xlu0 %562 }
 0x107   : > { %4078 = vst [vmem:[#allocation21_spill] sm:$0xff] %v3050_v29  ;;  %1074 = vrot.lane.b32.xlu1 %v1069_v11, %s4053_s11  ;;  %v1138_v11 = vmul.f32 %v3078_v28, %v1137_v63  ;;  %v1181_v63 = vmul.f32 %v1179_v53, %v2959_v22 }
 0x108   : > { %1072 = vrot.lane.b32.xlu0 %v1068_v20, %s4053_s11  ;;  %v1151_v20 = vstv %s2228_s4  ;;  %s3134_s4 = sld [smem:[#allocation2 + $0x58]] }
 0x109   : > { %v3056_v34 = vpop.permute.xlu1 %578  ;;  %v1152_v33 = vmul.f32 %v3078_v28, %v1151_v20 }
 0x10a   : > { %v3058_v36 = vpop.permute.xlu0 %576 }
 0x10b   : > { %1088 = vrot.lane.b32.xlu1 %v1083_v60, %s4053_s11 }
 0x10c   : > { %1086 = vrot.lane.b32.xlu0 %v1082_v30, %s4053_s11  ;;  %v1153_v30 = vmul.f32 %v3073_v52, %v1151_v20 }
 0x10d   : > { %v3064_v13 = vpop.permute.xlu1 %592 }
 0x10e   : > { %v3066_v12 = vpop.permute.xlu0 %590 }
 0x10f   : > { %1102 = vrot.lane.b32.xlu1 %v1097_v41, %s4053_s11  ;;  %v1165_v41 = vstv %s2229_s30  ;;  %s3138_s30 = sld [smem:[#allocation2 + $0x59]] }
 0x110   : > { %1100 = vrot.lane.b32.xlu0 %v1096_v42, %s4053_s11 }
 0x111   : > { %v3075_v26 = vpop.permute.xlu1 %606 }
 0x112   : > { %4079 = vst [vmem:[#allocation22_spill] sm:$0xff] %v3075_v26  ;;  %v3080_v57 = vpop.permute.xlu0 %604 }
 0x113   : > { %4080 = vst [vmem:[#allocation23_spill] sm:$0xff] %v3080_v57  ;;  %1116 = vrot.lane.b32.xlu1 %v1111_v47, %s4053_s11  ;;  %v1167_v47 = vmul.f32 %v3073_v52, %v1165_v41 }
 0x114   : > { %1114 = vrot.lane.b32.xlu0 %v1110_v51, %s4053_s11  ;;  %v1166_v51 = vmul.f32 %v3078_v28, %v1165_v41 }
 0x115   : > { %v3086_v4 = vpop.permute.xlu1 %620  ;;  %v1305_v57 = vstv %s3138_s30  ;;  %s3460_s30 = sld [smem:[#allocation2 + $0x3f]] }
 0x116   : > { %4081 = vst [vmem:[#allocation24_spill] sm:$0xff] %v3086_v4  ;;  %v3088_v5 = vpop.permute.xlu0 %618  ;;  %v1263_v4 = vstv %s3126_s10  ;;  %s3207_s10 = sld [smem:[#allocation2 + $0x33]] }
 0x117   : > { %4082 = vst [vmem:[#allocation25_spill] sm:$0xff] %v3088_v5  ;;  %1130 = vrot.lane.b32.xlu1 %v1125_v61, %s4053_s11  ;;  %v1249_v5 = vstv %s3122_s29  ;;  %s3194_s29 = sld [smem:[#allocation2 + $0x5c]]  ;;  %v3201_v55 = vmul.f32 %v3002_v49, %v1263_v4 }
 0x118   : > { %1128 = vrot.lane.b32.xlu0 %v1124_v62, %s4053_s11 }
 0x119   : > { %v3094_v21 = vpop.permute.xlu1 %634 }
 0x11a   : > { %v3096_v60 = vpop.permute.xlu0 %632 }
 0x11b   : > { %1144 = vrot.lane.b32.xlu1 %v1139_v40, %s4053_s11  ;;  %v1180_v40 = vmul.f32 %v1179_v53, %v2964_v25 }
 0x11c   : > { %1142 = vrot.lane.b32.xlu0 %v1138_v11, %s4053_s11  ;;  %v1193_v11 = vstv %s2231_s9  ;;  %s3147_s9 = sld [smem:[#allocation2 + $0x34]] }
 0x11d   : > { %v3102_v42 = vpop.permute.xlu1 %648  ;;  %v1194_v41 = vmul.f32 %v1193_v11, %v2964_v25 }
 0x11e   : > { %v3104_v43 = vpop.permute.xlu0 %646 }
 0x11f   : > { %4083 = vst [vmem:[#allocation26_spill] sm:$0xff] %v3104_v43  ;;  %1158 = vrot.lane.b32.xlu1 %v1153_v30, %s4053_s11  ;;  %v3226_v43 = vmul.f32 %v3035_v38, %v1305_v57 }
 0x120   : > { %1156 = vrot.lane.b32.xlu0 %v1152_v33, %s4053_s11  ;;  %v1195_v33 = vmul.f32 %v1193_v11, %v2959_v22  ;;  %v1221_v11 = vstv %s3114_s24  ;;  %s3180_s24 = sld [smem:[#allocation2 + $0x3c]] }
 0x121   : > { %v3112_v61 = vpop.permute.xlu1 %662  ;;  %4093 = vst [vmem:[#allocation36_spill] sm:$0xff] %v3226_v43  ;;  %v1347_v43 = vstv %s3194_s29  ;;  %s2271_s29 = sld [smem:[#allocation2 + $0x73]] }
 0x122   : > { %4084 = vst [vmem:[#allocation27_spill] sm:$0xff] %v3112_v61  ;;  %v3116_v62 = vpop.permute.xlu0 %660 }
 0x123   : > { %4085 = vst [vmem:[#allocation28_spill] sm:$0xff] %v3116_v62  ;;  %1172 = vrot.lane.b32.xlu1 %v1167_v47, %s4053_s11  ;;  %v1207_v47 = vstv %s3110_s20  ;;  %s3160_s20 = sld [smem:[#allocation2 + $0x38]]  ;;  %v1277_v62 = vstv %s3130_s21 }
 0x124   : > { %1170 = vrot.lane.b32.xlu0 %v1166_v51, %s4053_s11  ;;  %s3151_s11 = sld [smem:[#allocation2 + $0x5a]] }
 0x125   : > { %v3128_v20 = vpop.permute.xlu1 %676  ;;  %s3218_s21 = sld [smem:[#allocation2 + $0x39]] }
 0x126   : > { %4086 = vst [vmem:[#allocation29_spill] sm:$0xff] %v3128_v20  ;;  %v3132_v30 = vpop.permute.xlu0 %674 }
 0x127   : > { %4087 = vst [vmem:[#allocation30_spill] sm:$0xff] %v3132_v30  ;;  %1186 = vrot.lane.b32.xlu1 %v1181_v63, %s2535_s5  ;;  %v1209_v63 = vmul.f32 %v1207_v47, %v2959_v22 }
 0x128   : > { %1184 = vrot.lane.b32.xlu0 %v1180_v40, %s2535_s5  ;;  %v1208_v40 = vmul.f32 %v1207_v47, %v2964_v25  ;;  %v1222_v47 = vmul.f32 %v1221_v11, %v2964_v25 }
 0x129   : > { %v3145_v51 = vpop.permute.xlu1 %690 }
 0x12a   : > { %v3149_v53 = vpop.permute.xlu0 %688  ;;  %v1319_v26 = vstv %s3151_s11  ;;  %s3241_s11 = sld [smem:[#allocation2 + $0x37]] }
 0x12b   : > { %1200 = vrot.lane.b32.xlu1 %v1195_v33, %s2535_s5  ;;  %v1235_v33 = vstv %s3118_s25  ;;  %s3186_s25 = sld [smem:[#allocation2 + $0x36]] }
 0x12c   : > { %1198 = vrot.lane.b32.xlu0 %v1194_v41, %s2535_s5  ;;  %v1223_v41 = vmul.f32 %v1221_v11, %v2959_v22  ;;  %v1237_v61 = vmul.f32 %v2997_v46, %v1235_v33  ;;  %v1251_v11 = vmul.f32 %v2997_v46, %v1249_v5 }
 0x12d   : > { %v3162_v30 = vpop.permute.xlu1 %704 }
 0x12e   : > { %4088 = vst [vmem:[#allocation31_spill] sm:$0xff] %v3162_v30  ;;  %v3166_v20 = vpop.permute.xlu0 %702  ;;  %v879_v30 = vstv %s3147_s9  ;;  %s3494_s9 = sld [smem:[#allocation2 + $0x5f]] }
 0x12f   : > { %4089 = vst [vmem:[#allocation32_spill] sm:$0xff] %v3166_v20  ;;  %1214 = vrot.lane.b32.xlu1 %v1209_v63, %s2535_s5  ;;  %v1291_v63 = vstv %s3134_s4  ;;  %v1250_v20 = vmul.f32 %v3002_v49, %v1249_v5  ;;  %v3211_v5 = vmul.f32 %v3002_v49, %v1277_v62  ;;  %s3450_s4 = sld [smem:[#allocation2 + $0x3b]] }
 0x130   : > { %1212 = vrot.lane.b32.xlu0 %v1208_v40, %s2535_s5  ;;  %v1236_v40 = vmul.f32 %v3002_v49, %v1235_v33  ;;  %v853_v33 = vstv %s3143_s8  ;;  %v3223_v54 = vmul.f32 %v3040_v9, %v1291_v63  ;;  %s3468_s8 = sld [smem:[#allocation2 + $0x5e]] }
 0x131   : > { %v3182_v29 = vpop.permute.xlu1 %718  ;;  %v3235_v32 = vmul.f32 %v853_v33, %v2959_v22  ;;  %v3238_v17 = vmul.f32 %v853_v33, %v2964_v25 }
 0x132   : > { %4090 = vst [vmem:[#allocation33_spill] sm:$0xff] %v3182_v29  ;;  %v3188_v23 = vpop.permute.xlu0 %716  ;;  %v3198_v29 = vmul.f32 %v2997_v46, %v1263_v4 }
 0x133   : > { %4091 = vst [vmem:[#allocation34_spill] sm:$0xff] %v3188_v23  ;;  %1228 = vrot.lane.b32.xlu1 %v1223_v41, %s2535_s5  ;;  %v3204_v23 = vmul.f32 %v2997_v46, %v1277_v62  ;;  %v3214_v41 = vmul.f32 %v3035_v38, %v1291_v63  ;;  %v859_v62 = vstv %s3155_s0  ;;  %4096 = vst [vmem:[#allocation39_spill] sm:$0xff] %v3235_v32  ;;  %v905_v63 = vstv %s3160_s20  ;;  %s3255_s0 = sld [smem:[#allocation2 + $0x5d]] }
 0x134   : > { %1226 = vrot.lane.b32.xlu0 %v1222_v47, %s2535_s5  ;;  %v3229_v47 = vmul.f32 %v3040_v9, %v1305_v57  ;;  %4097 = vst [vmem:[#allocation40_spill] sm:$0xff] %v3238_v17  ;;  %v3246_v57 = vmul.f32 %v2997_v46, %v879_v30  ;;  %v1333_v32 = vstv %s3169_s2  ;;  %v3259_v33 = vmul.f32 %v859_v62, %v2959_v22  ;;  %s3292_s2 = sld [smem:[#allocation2 + $0x3a]] }
 0x135   : > { %v3220_v4 = vpop.permute.xlu1 %732  ;;  %v931_v17 = vstv %s3180_s24  ;;  %s3520_s20 = sld [smem:[#allocation2 + $0x70]] }
 0x136   : > { %4092 = vst [vmem:[#allocation35_spill] sm:$0xff] %v3220_v4  ;;  %4094 = vst [vmem:[#allocation37_spill] sm:$0xff] %v3229_v47  ;;  %v3232_v10 = vpop.permute.xlu0 %730  ;;  %v885_v4 = vstv %s3164_s1  ;;  %v3249_v47 = vmul.f32 %v3002_v49, %v879_v30  ;;  %v865_v30 = vstv %s3174_s23  ;;  %s3268_s1 = sld [smem:[#allocation2 + $0x3d]] }
 0x137   : > { %4095 = vst [vmem:[#allocation38_spill] sm:$0xff] %v3232_v10  ;;  %1242 = vrot.lane.b32.xlu1 %v1237_v61, %s2535_s5  ;;  %4098 = vst [vmem:[#allocation41_spill] sm:$0xff] %v3246_v57  ;;  %v3252_v10 = vmul.f32 %v3035_v38, %v1319_v26  ;;  %v3262_v61 = vmul.f32 %v859_v62, %v2964_v25  ;;  %v3265_v57 = vmul.f32 %v3040_v9, %v1319_v26  ;;  %s3338_s23 = sld [smem:[#allocation2 + $0x3e]] }
 0x138   : > { %4099 = vst [vmem:[#allocation42_spill] sm:$0xff] %v3249_v47  ;;  %1240 = vrot.lane.b32.xlu0 %v1236_v40, %s2535_s5  ;;  %4101 = vst [vmem:[#allocation44_spill] sm:$0xff] %v3259_v33  ;;  %v3273_v47 = vmul.f32 %v2997_v46, %v885_v4  ;;  %v3276_v40 = vmul.f32 %v3035_v38, %v905_v63  ;;  %v3280_v33 = vmul.f32 %v3040_v9, %v905_v63  ;;  %s2269_s24 = sld [smem:[#allocation2 + $0x71]] }
 0x139   : > { %4100 = vst [vmem:[#allocation43_spill] sm:$0xff] %v3252_v10  ;;  %4102 = vst [vmem:[#allocation45_spill] sm:$0xff] %v3262_v61  ;;  %v3270_v10 = vpop.permute.xlu1 %746  ;;  %v3285_v26 = vmul.f32 %v3002_v49, %v885_v4  ;;  %v891_v61 = vstv %s3186_s25  ;;  %v3299_v63 = vmul.f32 %v865_v30, %v2964_v25  ;;  %v871_v4 = vstv %s3207_s10  ;;  %s2270_s25 = sld [smem:[#allocation2 + $0x72]]  ;;  %s4154_s10 = smov 127  }
 0x13a   : > { %4103 = vst [vmem:[#allocation46_spill] sm:$0xff] %v3265_v57  ;;  %4104 = vst [vmem:[#allocation47_spill] sm:$0xff] %v3273_v47  ;;  %v3282_v62 = vpop.permute.xlu0 %744  ;;  %v3289_v57 = vmul.f32 %v3035_v38, %v1333_v32  ;;  %v3296_v47 = vmul.f32 %v865_v30, %v2959_v22  ;;  %v414_v30 = vadd.f32 %v2944_v8, %v2826_v31  ;;  %v897_v31 = vstv %s3241_s11  ;;  %s2273_s11 = sld [smem:[#allocation2 + $0x75]] }
 0x13b   : > { %4105 = vst [vmem:[#allocation48_spill] sm:$0xff] %v3280_v33  ;;  %4106 = vst [vmem:[#allocation49_spill] sm:$0xff] %v3285_v26  ;;  %1256 = vrot.lane.b32.xlu1 %v1251_v11, %s2535_s5  ;;  %v3302_v33 = vmul.f32 %v3040_v9, %v1333_v32  ;;  %v415_v26 = vadd.f32 %v2952_v18, %v2833_v35  ;;  %v3312_v11 = vmul.f32 %v3078_v28, %v931_v17 }
 0x13c   : > { %4107 = vst [vmem:[#allocation50_spill] sm:$0xff] %v3289_v57  ;;  %4108 = vst [vmem:[#allocation51_spill] sm:$0xff] %v3296_v47  ;;  %1254 = vrot.lane.b32.xlu0 %v1250_v20, %s2535_s5  ;;  %v3309_v57 = vmul.f32 %v3073_v52, %v931_v17  ;;  %v911_v47 = vstv %s3218_s21  ;;  %v3320_v32 = vmul.f32 %v2997_v46, %v891_v61  ;;  %s2272_s21 = sld [smem:[#allocation2 + $0x74]] }
 0x13d   : > { %4109 = vst [vmem:[#allocation52_spill] sm:$0xff] %v3299_v63  ;;  %4110 = vst [vmem:[#allocation53_spill] sm:$0xff] %v3302_v33  ;;  %v3317_v63 = vpop.permute.xlu1 %760  ;;  %v3323_v35 = vmul.f32 %v3002_v49, %v891_v61  ;;  %v3326_v18 = vmul.f32 %v3073_v52, %v1347_v43  ;;  %v471_v17 = vadd.f32 %v2980_v37, %v415_v26  ;;  %v1361_v37 = vstv %s3255_s0  ;;  %s2274_s0 = sld [smem:[#allocation2 + $0x76]] }
 0x13e   : > { %v3329_v20 = vpop.permute.xlu0 %758  ;;  %v3332_v33 = vmul.f32 %v871_v4, %v2959_v22  ;;  %v3336_v8 = vmul.f32 %v3078_v28, %v1347_v43  ;;  %v470_v61 = vadd.f32 %v2982_v39, %v414_v30  ;;  %v3348_v26 = vmul.f32 %v3035_v38, %v911_v47 }
 0x13f   : > { %4111 = vst [vmem:[#allocation54_spill] sm:$0xff] %v3326_v18  ;;  %1270 = vrot.lane.b32.xlu1 %v3198_v29, %s2535_s5  ;;  %v3344_v18 = vmul.f32 %v871_v4, %v2964_v25  ;;  %v429_v22 = vadd.f32 %v2950_v14, %v2810_v19  ;;  %v527_v43 = vadd.f32 %v3018_v58, %v471_v17  ;;  %v937_v39 = vstv %s3268_s1  ;;  %s2275_s1 = sld [smem:[#allocation2 + $0x77]] }
 0x140   : > { %1268 = vrot.lane.b32.xlu0 %v3201_v55, %s2535_s5  ;;  %v3357_v30 = vmul.f32 %v3040_v9, %v911_v47  ;;  %v428_v25 = vadd.f32 %v2942_v7, %v2806_v15  ;;  %v526_v29 = vadd.f32 %v3020_v59, %v470_v61  ;;  %v3368_v19 = vmul.f32 %v3002_v49, %v897_v31 }
 0x141   : > { %4112 = vst [vmem:[#allocation55_spill] sm:$0xff] %v3344_v18  ;;  %v3362_v4 = vpop.permute.xlu1 %774  ;;  %v3365_v18 = vmul.f32 %v2997_v46, %v897_v31  ;;  %v485_v14 = vadd.f32 %v2988_v44, %v429_v22  ;;  %v583_v55 = vadd.f32 %v3056_v34, %v527_v43  ;;  %v3375_v47 = vmul.f32 %v3073_v52, %v1361_v37  ;;  %v4115_v43 = vld [vmem:[#allocation19_spill] sm:$0xff] }
 0x142   : > { %v3372_v58 = vpop.permute.xlu0 %772  ;;  %v917_v15 = vstv %s3292_s2  ;;  %v484_v7 = vadd.f32 %v2990_v45, %v428_v25  ;;  %v582_v59 = vadd.f32 %v3058_v36, %v526_v29  ;;  %v3383_v46 = vmul.f32 %v3078_v28, %v1361_v37  ;;  %s2276_s2 = sld [smem:[#allocation2 + $0x78]] }
 0x143   : > { %1284 = vrot.lane.b32.xlu1 %v3204_v23, %s2535_s5  ;;  %v3386_v44 = vmul.f32 %v3073_v52, %v937_v39  ;;  %v443_v49 = vadd.f32 %v2961_v24, %v2861_v0  ;;  %v541_v34 = vadd.f32 %v3026_v1, %v485_v14  ;;  %v639_v17 = vadd.f32 %v3094_v21, %v583_v55 }
 0x144   : > { %1282 = vrot.lane.b32.xlu0 %v3211_v5, %s2535_s5  ;;  %v3395_v45 = vmul.f32 %v3078_v28, %v937_v39  ;;  %v442_v23 = vadd.f32 %v2966_v27, %v2865_v3  ;;  %v540_v36 = vadd.f32 %v3028_v2, %v484_v7  ;;  %v638_v31 = vadd.f32 %v3096_v60, %v582_v59  ;;  %v4116_v39 = vld [vmem:[#allocation26_spill] sm:$0xff] }
 0x145   : > { %v3401_v61 = vpop.permute.xlu1 %788  ;;  %v3404_v0 = vmul.f32 %v3035_v38, %v917_v15  ;;  %v499_v24 = vadd.f32 %v2999_v48, %v443_v49  ;;  %v597_v1 = vadd.f32 %v3064_v13, %v541_v34  ;;  %v695_v21 = vadd.f32 %v3145_v51, %v639_v17  ;;  %v4120_v59 = vld [vmem:[#allocation18_spill] sm:$0xff]  ;;  %v4121_v49 = vld [vmem:[#allocation23_spill] sm:$0xff]  ;;  %v4122_v17 = vld [vmem:[#allocation32_spill] sm:$0xff] }
 0x146   : > { %v3409_v5 = vpop.permute.xlu0 %786  ;;  %v943_v37 = vstv %s3338_s23  ;;  %v498_v3 = vadd.f32 %v3004_v50, %v442_v23  ;;  %v596_v27 = vadd.f32 %v3066_v12, %v540_v36  ;;  %v694_v2 = vadd.f32 %v3149_v53, %v638_v31  ;;  %v4113_v50 = vld [vmem:[#allocation15_spill] sm:$0xff]  ;;  %v4114_v12 = vld [vmem:[#allocation16_spill] sm:$0xff]  ;;  %s2277_s23 = sld [smem:[#allocation2 + $0x79]] }
 0x147   : > { %1298 = vrot.lane.b32.xlu1 %v3214_v41, %s2535_s5  ;;  %v3418_v60 = vmul.f32 %v3040_v9, %v917_v15  ;;  %v457_v48 = vadd.f32 %v2972_v56, %v2874_v16  ;;  %v555_v13 = vadd.f32 %v3037_v6, %v499_v24  ;;  %v653_v51 = vadd.f32 %v3102_v42, %v597_v1  ;;  %v4117_v16 = vld [vmem:[#allocation17_spill] sm:$0xff]  ;;  %v4118_v6 = vld [vmem:[#allocation22_spill] sm:$0xff]  ;;  %v4119_v42 = vld [vmem:[#allocation31_spill] sm:$0xff] }
 0x148   : > { %v751_v22 = vadd.f32 %v3270_v10, %v695_v21  ;;  %1296 = vrot.lane.b32.xlu0 %v3223_v54, %s2535_s5  ;;  %v456_v53 = vadd.f32 %v4114_v12, %v4113_v50  ;;  %v554_v41 = vadd.f32 %v4115_v43, %v498_v3  ;;  %v652_v25 = vadd.f32 %v4116_v39, %v596_v27  ;;  %v4123_v31 = vld [vmem:[#allocation36_spill] sm:$0xff]  ;;  %v4125_v1 = vld [vmem:[#allocation27_spill] sm:$0xff] }
 0x149   : > { %v750_v29 = vadd.f32 %v3282_v62, %v694_v2  ;;  %v803_v14 = vpop.permute.xlu1 %802  ;;  %v513_v56 = vadd.f32 %v4117_v16, %v457_v48  ;;  %v611_v55 = vadd.f32 %v4118_v6, %v555_v13  ;;  %v709_v15 = vadd.f32 %v4119_v42, %v653_v51  ;;  %v4124_v62 = vld [vmem:[#allocation20_spill] sm:$0xff]  ;;  %v4126_v27 = vld [vmem:[#allocation39_spill] sm:$0xff]  ;;  %v4127_v48 = vld [vmem:[#allocation37_spill] sm:$0xff] }
 0x14a   : > { %v807_v10 = vadd.f32 %v803_v14, %v751_v22  ;;  %v801_v7 = vpop.permute.xlu0 %800  ;;  %v512_v54 = vadd.f32 %v4120_v59, %v456_v53  ;;  %v610_v34 = vadd.f32 %v4121_v49, %v554_v41  ;;  %v708_v23 = vadd.f32 %v4122_v17, %v652_v25  ;;  %v4128_v13 = vld [vmem:[#allocation21_spill] sm:$0xff]  ;;  %v4129_v22 = vld [vmem:[#allocation28_spill] sm:$0xff] }
 0x14b   : > { %v806_v36 = vadd.f32 %v801_v7, %v750_v29  ;;  %1312 = vrot.lane.b32.xlu1 %v4123_v31, %s2535_s5  ;;  %v569_v24 = vadd.f32 %v4124_v62, %v513_v56  ;;  %v667_v21 = vadd.f32 %v4125_v1, %v611_v55  ;;  %v765_v3 = vadd.f32 %v3317_v63, %v709_v15  ;;  %v4130_v53 = vld [vmem:[#allocation40_spill] sm:$0xff]  ;;  %v4132_v29 = vld [vmem:[#allocation33_spill] sm:$0xff]  ;;  %v4135_v15 = vld [vmem:[#allocation34_spill] sm:$0xff] }
 0x14c   : > { %v857_v2 = vadd.f32 %v4126_v27, %v807_v10  ;;  %1310 = vrot.lane.b32.xlu0 %v4127_v48, %s2535_s5  ;;  %v568_v51 = vadd.f32 %v4128_v13, %v512_v54  ;;  %v666_v50 = vadd.f32 %v4129_v22, %v610_v34  ;;  %v764_v12 = vadd.f32 %v3329_v20, %v708_v23  ;;  %v4131_v39 = vld [vmem:[#allocation24_spill] sm:$0xff]  ;;  %v4133_v14 = vld [vmem:[#allocation41_spill] sm:$0xff]  ;;  %v4136_v7 = vld [vmem:[#allocation42_spill] sm:$0xff] }
 0x14d   : > { %v856_v43 = vadd.f32 %v4130_v53, %v806_v36  ;;  %v817_v41 = vpop.permute.xlu1 %816  ;;  %v625_v25 = vadd.f32 %v4131_v39, %v569_v24  ;;  %v723_v63 = vadd.f32 %v4132_v29, %v667_v21  ;;  %v4134_v55 = vld [vmem:[#allocation25_spill] sm:$0xff]  ;;  %v4137_v54 = vld [vmem:[#allocation43_spill] sm:$0xff]  ;;  %v4139_v23 = vld [vmem:[#allocation44_spill] sm:$0xff] }
 0x14e   : > { %v883_v16 = vadd.f32 %v4133_v14, %v857_v2  ;;  %v821_v56 = vadd.f32 %v817_v41, %v765_v3  ;;  %v815_v6 = vpop.permute.xlu0 %814  ;;  %v624_v42 = vadd.f32 %v4134_v55, %v568_v51  ;;  %v722_v10 = vadd.f32 %v4135_v15, %v666_v50  ;;  %v4138_v49 = vld [vmem:[#allocation29_spill] sm:$0xff]  ;;  %v4140_v31 = vld [vmem:[#allocation46_spill] sm:$0xff]  ;;  %v4143_v48 = vld [vmem:[#allocation48_spill] sm:$0xff] }
 0x14f   : > { %v882_v59 = vadd.f32 %v4136_v7, %v856_v43  ;;  %v820_v20 = vadd.f32 %v815_v6, %v764_v12  ;;  %1326 = vrot.lane.b32.xlu1 %v4137_v54, %s2535_s5  ;;  %v681_v34 = vadd.f32 %v4138_v49, %v625_v25  ;;  %v779_v17 = vadd.f32 %v3362_v4, %v723_v63  ;;  %v4141_v24 = vld [vmem:[#allocation30_spill] sm:$0xff]  ;;  %v4142_v3 = vld [vmem:[#allocation45_spill] sm:$0xff]  ;;  %v4144_v4 = vld [vmem:[#allocation35_spill] sm:$0xff] }
 0x150   : > { %v863_v36 = vadd.f32 %v4139_v23, %v821_v56  ;;  %1324 = vrot.lane.b32.xlu0 %v4140_v31, %s2535_s5  ;;  %v909_v62 = vadd.f32 %v3276_v40, %v883_v16  ;;  %v680_v1 = vadd.f32 %v4141_v24, %v624_v42  ;;  %v778_v21 = vadd.f32 %v3372_v58, %v722_v10  ;;  %v4145_v22 = vld [vmem:[#allocation47_spill] sm:$0xff]  ;;  %v4146_v43 = vld [vmem:[#allocation38_spill] sm:$0xff]  ;;  %v4147_v39 = vld [vmem:[#allocation49_spill] sm:$0xff] }
 0x151   : > { %v862_v27 = vadd.f32 %v4142_v3, %v820_v20  ;;  %v831_v2 = vpop.permute.xlu1 %830  ;;  %v908_v13 = vadd.f32 %v4143_v48, %v882_v59  ;;  %v737_v51 = vadd.f32 %v4144_v4, %v681_v34  ;;  %v4148_v29 = vld [vmem:[#allocation50_spill] sm:$0xff]  ;;  %v4149_v16 = vld [vmem:[#allocation51_spill] sm:$0xff]  ;;  %v945_v55 = vmul.f32 %v3073_v52, %v943_v37 }
 0x152   : > { %v889_v50 = vadd.f32 %v4145_v22, %v863_v36  ;;  %v835_v12 = vadd.f32 %v831_v2, %v779_v17  ;;  %v829_v53 = vpop.permute.xlu0 %828  ;;  %v3477_v40 = vadd.f32 %v3309_v57, %v909_v62  ;;  %v736_v41 = vadd.f32 %v4146_v43, %v680_v1  ;;  %v4150_v57 = vld [vmem:[#allocation53_spill] sm:$0xff]  ;;  %v4152_v17 = vld [vmem:[#allocation54_spill] sm:$0xff] }
 0x153   : > { %v888_v58 = vadd.f32 %v4147_v39, %v862_v27  ;;  %v834_v25 = vadd.f32 %v829_v53, %v778_v21  ;;  %1340 = vrot.lane.b32.xlu1 %v4148_v29, %s2535_s5  ;;  %v3484_v63 = vadd.f32 %v3312_v11, %v908_v13  ;;  %v793_v14 = vadd.f32 %v3401_v61, %v737_v51  ;;  %v4151_v11 = vld [vmem:[#allocation52_spill] sm:$0xff] }
 0x154   : > { %v869_v56 = vadd.f32 %v4149_v16, %v835_v12  ;;  %1338 = vrot.lane.b32.xlu0 %v4150_v57, %s2535_s5  ;;  %v915_v6 = vadd.f32 %v3348_v26, %v889_v50  ;;  %v792_v42 = vadd.f32 %v3409_v5, %v736_v41  ;;  %v923_v7 = vstv %s3450_s4  ;;  %v3557_v51 = vld [vmem:[%s2690_s7 + $0xa] sm:$0xff]  ;;  %v3563_v12 = vld [vmem:[%s2690_s7 + $0x2] sm:$0xff]  ;;  %s2278_s4 = sld [smem:[#allocation2 + $0x7a]] }
 0x155   : > { %v868_v15 = vadd.f32 %v4151_v11, %v834_v25  ;;  %v845_v10 = vpop.permute.xlu1 %844  ;;  %v914_v61 = vadd.f32 %v3357_v30, %v888_v58  ;;  %v944_v49 = vmul.f32 %v3078_v28, %v943_v37  ;;  %v949_v30 = vstv %s3460_s30  ;;  %s2279_s30 = sld [smem:[#allocation2 + $0x7b]] }
 0x156   : > { %v895_v59 = vadd.f32 %v3320_v32, %v869_v56  ;;  %v849_v20 = vadd.f32 %v845_v10, %v793_v14  ;;  %v843_v54 = vpop.permute.xlu0 %842  ;;  %v3502_v26 = vadd.f32 %v3386_v44, %v915_v6  ;;  %v1375_v44 = vstv %s3468_s8  ;;  %v3596_v10 = vld [vmem:[%s2690_s7 + $0x22] sm:$0xff]  ;;  %s3651_s8 = sld [smem:[#allocation2 + $0x7c]] }
 0x157   : > { %v894_v34 = vadd.f32 %v3323_v35, %v868_v15  ;;  %v848_v5 = vadd.f32 %v843_v54, %v792_v42  ;;  %1354 = vrot.lane.b32.xlu1 %v4152_v17, %s2535_s5  ;;  %v3511_v23 = vadd.f32 %v3395_v45, %v914_v61  ;;  %v925_v37 = vmul.f32 %v3035_v38, %v923_v7  ;;  %v4153_v35 = vld [vmem:[#allocation55_spill] sm:$0xff] }
 0x158   : > { %v875_v32 = vadd.f32 %v3332_v33, %v849_v20  ;;  %1352 = vrot.lane.b32.xlu0 %v3336_v8, %s2535_s5  ;;  %v921_v36 = vadd.f32 %v3404_v0, %v895_v59  ;;  %v924_v24 = vmul.f32 %v3040_v9, %v923_v7  ;;  %v951_v0 = vmul.f32 %v3073_v52, %v949_v30  ;;  %v3601_v59 = vld [vmem:[%s2690_s7 + $0x1a] sm:$0xff] }
 0x159   : > { %v874_v31 = vadd.f32 %v4153_v35, %v848_v5  ;;  %v3523_v62 = vpop.permute.xlu1 %962  ;;  %v920_v45 = vadd.f32 %v3418_v60, %v894_v34  ;;  %v1377_v21 = vmul.f32 %v3073_v52, %v1375_v44  ;;  %v950_v9 = vmul.f32 %v3078_v28, %v949_v30 }
 0x15a   : > { %v901_v33 = vadd.f32 %v3365_v18, %v875_v32  ;;  %v3528_v1 = vpop.permute.xlu0 %960  ;;  %v3530_v8 = vadd.f32 %v945_v55, %v921_v36  ;;  %v1376_v18 = vmul.f32 %v3078_v28, %v1375_v44  ;;  %v1389_v60 = vstv %s3494_s9  ;;  %s3657_s9 = sld [smem:[#allocation2 + $0x7d]] }
 0x15b   : > { %v900_v38 = vadd.f32 %v3368_v19, %v874_v31  ;;  %1368 = vrot.lane.b32.xlu1 %v3375_v47, %s2535_s5  ;;  %v3537_v3 = vadd.f32 %v944_v49, %v920_v45  ;;  %v1391_v13 = vmul.f32 %v3073_v52, %v1389_v60  ;;  %v1507_v22 = vstv %s3520_s20  ;;  %s3669_s20 = sld [smem:[#allocation2 + $0x7e]] }
 0x15c   : > { %1366 = vrot.lane.b32.xlu0 %v3383_v46, %s2535_s5  ;;  %v927_v27 = vadd.f32 %v925_v37, %v901_v33  ;;  %v1390_v46 = vmul.f32 %v3078_v28, %v1389_v60  ;;  %v1509_v52 = vmul.f32 %v1507_v22, %v3557_v51  ;;  %v1508_v43 = vmul.f32 %v1507_v22, %v3563_v12  ;;  %v3639_v60 = vld [vmem:[%s2690_s7 + $0x32] sm:$0xff] }
 0x15d   : > { %v3544_v19 = vpop.permute.xlu1 %976  ;;  %v926_v47 = vadd.f32 %v924_v24, %v900_v38  ;;  %v1521_v41 = vstv %s2269_s24  ;;  %v1535_v29 = vstv %s2270_s25  ;;  %v1549_v6 = vstv %s2271_s29  ;;  %s3703_s24 = sld [smem:[#allocation2 + $0x80]] }
 0x15e   : > { %v3546_v2 = vpop.permute.xlu0 %974  ;;  %v3548_v48 = vadd.f32 %v951_v0, %v927_v27  ;;  %v1523_v58 = vmul.f32 %v1521_v41, %v3557_v51  ;;  %v1522_v25 = vmul.f32 %v1521_v41, %v3563_v12  ;;  %v1537_v56 = vmul.f32 %v1535_v29, %v3557_v51  ;;  %s3718_s25 = sld [smem:[#allocation2 + $0x81]] }
 0x15f   : > { %1382 = vrot.lane.b32.xlu1 %v1377_v21, %s2535_s5  ;;  %v3552_v4 = vadd.f32 %v950_v9, %v926_v47  ;;  %v1536_v57 = vmul.f32 %v1535_v29, %v3563_v12  ;;  %v1551_v11 = vmul.f32 %v1549_v6, %v3557_v51  ;;  %v1550_v15 = vmul.f32 %v1549_v6, %v3563_v12  ;;  %v3634_v21 = vld [vmem:[%s2690_s7 + $0x3a] sm:$0xff]  ;;  %s2286_s29 = sld [smem:[#allocation2 + $0x82]] }
 0x160   : > { %1380 = vrot.lane.b32.xlu0 %v1376_v18, %s2535_s5  ;;  %v1563_v61 = vstv %s2272_s21  ;;  %v1577_v34 = vstv %s2273_s11  ;;  %v1591_v44 = vstv %s2274_s0  ;;  %s2287_s21 = sld [smem:[#allocation2 + $0x83]] }
 0x161   : > { %v3560_v50 = vpop.permute.xlu1 %990  ;;  %v1565_v54 = vmul.f32 %v3596_v10, %v1563_v61  ;;  %v1564_v49 = vmul.f32 %v3601_v59, %v1563_v61  ;;  %v1579_v30 = vmul.f32 %v3596_v10, %v1577_v34  ;;  %v1578_v32 = vmul.f32 %v3601_v59, %v1577_v34  ;;  %v3666_v34 = vld [vmem:[%s2690_s7 + $0x52] sm:$0xff]  ;;  %s2288_s11 = sld [smem:[#allocation2 + $0x84]] }
 0x162   : > { %v3565_v53 = vpop.permute.xlu0 %988  ;;  %v1593_v35 = vmul.f32 %v3596_v10, %v1591_v44  ;;  %v1592_v31 = vmul.f32 %v3601_v59, %v1591_v44  ;;  %v1605_v45 = vstv %s2275_s1  ;;  %v1619_v9 = vstv %s2276_s2  ;;  %s3745_s0 = sld [smem:[#allocation2 + $0x86]] }
 0x163   : > { %1396 = vrot.lane.b32.xlu1 %v1391_v13, %s2535_s5  ;;  %v1607_v0 = vmul.f32 %v3596_v10, %v1605_v45  ;;  %v1606_v38 = vmul.f32 %v3601_v59, %v1605_v45  ;;  %v1621_v47 = vmul.f32 %v3634_v21, %v1619_v9  ;;  %v1620_v13 = vmul.f32 %v3639_v60, %v1619_v9  ;;  %s3751_s1 = sld [smem:[#allocation2 + $0x87]] }
 0x164   : > { %1394 = vrot.lane.b32.xlu0 %v1390_v46, %s2535_s5  ;;  %v1633_v46 = vstv %s2277_s23  ;;  %v1661_v6 = vstv %s2279_s30  ;;  %v966_v45 = vadd.f32 %v3528_v1, %v3484_v63  ;;  %s3755_s2 = sld [smem:[#allocation2 + $0x88]] }
 0x165   : > { %v3571_v28 = vpop.permute.xlu1 %1004  ;;  %v1634_v41 = vmul.f32 %v3639_v60, %v1633_v46  ;;  %v1663_v61 = vmul.f32 %v3634_v21, %v1661_v6  ;;  %s3760_s23 = sld [smem:[#allocation2 + $0x89]] }
 0x166   : > { %v3573_v39 = vpop.permute.xlu0 %1002  ;;  %s3766_s30 = sld [smem:[#allocation2 + $0x64]] }
 0x167   : > { %1514 = vrot.lane.b32.xlu1 %v1509_v52, %s4154_s10 }
 0x168   : > { %1512 = vrot.lane.b32.xlu0 %v1508_v43, %s4154_s10  ;;  %v1635_v43 = vmul.f32 %v3634_v21, %v1633_v46 }
 0x169   : > { %v3579_v14 = vpop.permute.xlu1 %1018 }
 0x16a   : > { %v3581_v16 = vpop.permute.xlu0 %1016 }
 0x16b   : > { %1528 = vrot.lane.b32.xlu1 %v1523_v58, %s4154_s10  ;;  %v1647_v58 = vstv %s2278_s4  ;;  %s3762_s4 = sld [smem:[#allocation2 + $0x60]] }
 0x16c   : > { %1526 = vrot.lane.b32.xlu0 %v1522_v25, %s4154_s10 }
 0x16d   : > { %v3587_v55 = vpop.permute.xlu1 %1032 }
 0x16e   : > { %v3589_v42 = vpop.permute.xlu0 %1030 }
 0x16f   : > { %1542 = vrot.lane.b32.xlu1 %v1537_v56, %s4154_s10  ;;  %v1649_v56 = vmul.f32 %v3634_v21, %v1647_v58 }
 0x170   : > { %1540 = vrot.lane.b32.xlu0 %v1536_v57, %s4154_s10  ;;  %v1648_v57 = vmul.f32 %v3639_v60, %v1647_v58 }
 0x171   : > { %v3598_v7 = vpop.permute.xlu1 %1046 }
 0x172   : > { %v3603_v20 = vpop.permute.xlu0 %1044 }
 0x173   : > { %1556 = vrot.lane.b32.xlu1 %v1551_v11, %s4154_s10 }
 0x174   : > { %1554 = vrot.lane.b32.xlu0 %v1550_v15, %s4154_s10 }
 0x175   : > { %v3609_v5 = vpop.permute.xlu1 %1060 }
 0x176   : > { %v3611_v17 = vpop.permute.xlu0 %1058 }
 0x177   : > { %1570 = vrot.lane.b32.xlu1 %v1565_v54, %s4154_s10  ;;  %v1009_v54 = vadd.f32 %v3571_v28, %v3548_v48 }
 0x178   : > { %1568 = vrot.lane.b32.xlu0 %v1564_v49, %s4154_s10  ;;  %v1662_v49 = vmul.f32 %v3639_v60, %v1661_v6 }
 0x179   : > { %v3617_v36 = vpop.permute.xlu1 %1074  ;;  %v1065_v48 = vadd.f32 %v3609_v5, %v1009_v54  ;;  %v981_v5 = vadd.f32 %v3544_v19, %v3502_v26  ;;  %v1703_v19 = vstv %s3669_s20  ;;  %s3779_s20 = sld [smem:[#allocation2 + $0x65]] }
 0x17a   : > { %v3619_v37 = vpop.permute.xlu0 %1072 }
 0x17b   : > { %1584 = vrot.lane.b32.xlu1 %v1579_v30, %s4154_s10  ;;  %v1675_v30 = vstv %s3651_s8  ;;  %s3772_s8 = sld [smem:[#allocation2 + $0x8a]] }
 0x17c   : > { %1582 = vrot.lane.b32.xlu0 %v1578_v32, %s4154_s10  ;;  %v1008_v32 = vadd.f32 %v3573_v39, %v3552_v4 }
 0x17d   : > { %v3625_v24 = vpop.permute.xlu1 %1088 }
 0x17e   : > { %v3627_v33 = vpop.permute.xlu0 %1086 }
 0x17f   : > { %1598 = vrot.lane.b32.xlu1 %v1593_v35, %s4154_s10  ;;  %v3674_v35 = vld [vmem:[%s2690_s7 + $0x4a] sm:$0xff]  ;;  %s3688_s7 = sld [smem:[#allocation2 + $0x7f]] }
 0x180   : > { %1596 = vrot.lane.b32.xlu0 %v1592_v31, %s4154_s10  ;;  %v967_v31 = vadd.f32 %v3523_v62, %v3477_v40  ;;  %v1676_v9 = vmul.f32 %v3674_v35, %v1675_v30  ;;  %v1689_v40 = vstv %s3657_s9  ;;  %v1022_v62 = vadd.f32 %v3581_v16, %v966_v45  ;;  %s3777_s9 = sld [smem:[#allocation2 + $0x61]] }
 0x181   : > { %v3636_v18 = vpop.permute.xlu1 %1102  ;;  %v1691_v16 = vmul.f32 %v3666_v34, %v1689_v40  ;;  %v1690_v26 = vmul.f32 %v3674_v35, %v1689_v40 }
 0x182   : > { %v3641_v27 = vpop.permute.xlu0 %1100  ;;  %v1023_v4 = vadd.f32 %v3579_v14, %v967_v31  ;;  %v1078_v46 = vadd.f32 %v3619_v37, %v1022_v62  ;;  %v995_v37 = vadd.f32 %v3560_v50, %v3530_v8  ;;  %v1704_v8 = vmul.f32 %v3674_v35, %v1703_v19 }
 0x183   : > { %1612 = vrot.lane.b32.xlu1 %v1607_v0, %s4154_s10  ;;  %v1064_v0 = vadd.f32 %v3611_v17, %v1008_v32  ;;  %v1759_v62 = vstv %s2286_s29  ;;  %s3796_s29 = sld [smem:[#allocation2 + $0x63]] }
 0x184   : > { %1610 = vrot.lane.b32.xlu0 %v1606_v38, %s4154_s10  ;;  %v1677_v38 = vmul.f32 %v3666_v34, %v1675_v30  ;;  %v1079_v17 = vadd.f32 %v3617_v36, %v1023_v4 }
 0x185   : > { %v1117_v22 = vpop.permute.xlu1 %1116  ;;  %v1717_v50 = vstv %s3688_s7  ;;  %s3783_s7 = sld [smem:[#allocation2 + $0x8b]] }
 0x186   : > { %v1115_v52 = vpop.permute.xlu0 %1114  ;;  %v1121_v39 = vadd.f32 %v1117_v22, %v1065_v48  ;;  %v1718_v32 = vmul.f32 %v3674_v35, %v1717_v50 }
 0x187   : > { %1626 = vrot.lane.b32.xlu1 %v1621_v47, %s4154_s10  ;;  %v1120_v63 = vadd.f32 %v1115_v52, %v1064_v0  ;;  %v1037_v52 = vadd.f32 %v3587_v55, %v981_v5 }
 0x188   : > { %1624 = vrot.lane.b32.xlu0 %v1620_v13, %s4154_s10  ;;  %v980_v13 = vadd.f32 %v3546_v2, %v3511_v23 }
 0x189   : > { %v1131_v25 = vpop.permute.xlu1 %1130 }
 0x18a   : > { %v1129_v29 = vpop.permute.xlu0 %1128  ;;  %v1036_v36 = vadd.f32 %v3589_v42, %v980_v13  ;;  %v1705_v42 = vmul.f32 %v3666_v34, %v1703_v19  ;;  %v1773_v13 = vstv %s2287_s21  ;;  %v1787_v19 = vstv %s2288_s11  ;;  %s3801_s21 = sld [smem:[#allocation2 + $0x67]] }
 0x18b   : > { %1640 = vrot.lane.b32.xlu1 %v1635_v43, %s4154_s10  ;;  %v1135_v43 = vadd.f32 %v1131_v25, %v1079_v17  ;;  %v1134_v23 = vadd.f32 %v1129_v29, %v1078_v46  ;;  %v994_v25 = vadd.f32 %v3565_v53, %v3537_v3  ;;  %v1051_v29 = vadd.f32 %v3598_v7, %v995_v37  ;;  %s3808_s11 = sld [smem:[#allocation2 + $0x8c]] }
 0x18c   : > { %1638 = vrot.lane.b32.xlu0 %v1634_v41, %s4154_s10  ;;  %v1093_v41 = vadd.f32 %v3625_v24, %v1037_v52 }
 0x18d   : > { %v1145_v11 = vpop.permute.xlu1 %1144  ;;  %v1050_v3 = vadd.f32 %v3603_v20, %v994_v25  ;;  %v1731_v20 = vstv %s3703_s24  ;;  %s3789_s24 = sld [smem:[#allocation2 + $0x62]] }
 0x18e   : > { %v1143_v15 = vpop.permute.xlu0 %1142  ;;  %v1149_v6 = vadd.f32 %v1145_v11, %v1093_v41  ;;  %v1719_v11 = vmul.f32 %v3666_v34, %v1717_v50  ;;  %v1732_v0 = vmul.f32 %v1731_v20, %v3563_v12  ;;  %v1789_v41 = vmul.f32 %v3596_v10, %v1787_v19 }
 0x18f   : > { %1654 = vrot.lane.b32.xlu1 %v1649_v56, %s4154_s10  ;;  %v1092_v56 = vadd.f32 %v3627_v33, %v1036_v36  ;;  %v1107_v33 = vadd.f32 %v3636_v18, %v1051_v29 }
 0x190   : > { %1652 = vrot.lane.b32.xlu0 %v1648_v57, %s4154_s10 }
 0x191   : > { %v1159_v44 = vpop.permute.xlu1 %1158  ;;  %v1148_v53 = vadd.f32 %v1143_v15, %v1092_v56 }
 0x192   : > { %v1157_v28 = vpop.permute.xlu0 %1156  ;;  %v1163_v30 = vadd.f32 %v1159_v44, %v1107_v33  ;;  %v1745_v44 = vstv %s3718_s25  ;;  %s3794_s25 = sld [smem:[#allocation2 + $0x66]] }
 0x193   : > { %1668 = vrot.lane.b32.xlu1 %v1663_v61, %s4154_s10  ;;  %v1746_v40 = vmul.f32 %v1745_v44, %v3563_v12 }
 0x194   : > { %1666 = vrot.lane.b32.xlu0 %v1662_v49, %s4154_s10  ;;  %v1106_v49 = vadd.f32 %v3641_v27, %v1050_v3  ;;  %v1733_v27 = vmul.f32 %v1731_v20, %v3557_v51 }
 0x195   : > { %v1173_v1 = vpop.permute.xlu1 %1172 }
 0x196   : > { %v1177_v47 = vadd.f32 %v1173_v1, %v1121_v39  ;;  %v1171_v14 = vpop.permute.xlu0 %1170  ;;  %v1162_v15 = vadd.f32 %v1157_v28, %v1106_v49  ;;  %v1747_v28 = vmul.f32 %v1745_v44, %v3557_v51  ;;  %v1405_v44 = vstv %s3762_s4  ;;  %s3860_s4 = sld [smem:[#allocation2 + $0x6a]] }
 0x197   : > { %v1176_v22 = vadd.f32 %v1171_v14, %v1120_v63  ;;  %1682 = vrot.lane.b32.xlu1 %v1677_v38, %s4154_s10  ;;  %v1760_v14 = vmul.f32 %v1759_v62, %v3563_v12 }
 0x198   : > { %1680 = vrot.lane.b32.xlu0 %v1676_v9, %s4154_s10 }
 0x199   : > { %v1187_v2 = vpop.permute.xlu1 %1186 }
 0x19a   : > { %v1191_v58 = vadd.f32 %v1187_v2, %v1135_v43  ;;  %v1185_v55 = vpop.permute.xlu0 %1184  ;;  %v1775_v43 = vmul.f32 %v1773_v13, %v3557_v51 }
 0x19b   : > { %v1190_v57 = vadd.f32 %v1185_v55, %v1134_v23  ;;  %1696 = vrot.lane.b32.xlu1 %v1691_v16, %s4154_s10 }
 0x19c   : > { %1694 = vrot.lane.b32.xlu0 %v1690_v26, %s4154_s10  ;;  %v1774_v26 = vmul.f32 %v1773_v13, %v3563_v12 }
 0x19d   : > { %v1201_v24 = vpop.permute.xlu1 %1200 }
 0x19e   : > { %v1205_v61 = vadd.f32 %v1201_v24, %v1149_v6  ;;  %v1199_v54 = vpop.permute.xlu0 %1198 }
 0x19f   : > { %v1204_v7 = vadd.f32 %v1199_v54, %v1148_v53  ;;  %1710 = vrot.lane.b32.xlu1 %v1705_v42, %s4154_s10  ;;  %v1829_v54 = vstv %s3751_s1  ;;  %s3832_s1 = sld [smem:[#allocation2 + $0x8d]] }
 0x1a0   : > { %1708 = vrot.lane.b32.xlu0 %v1704_v8, %s4154_s10  ;;  %v1815_v8 = vstv %s3745_s0  ;;  %v1830_v20 = vmul.f32 %v3601_v59, %v1829_v54  ;;  %s3824_s0 = sld [smem:[#allocation2 + $0x6c]] }
 0x1a1   : > { %v1215_v31 = vpop.permute.xlu1 %1214  ;;  %v1817_v33 = vmul.f32 %v3596_v10, %v1815_v8 }
 0x1a2   : > { %v1219_v18 = vadd.f32 %v1215_v31, %v1163_v30  ;;  %v1213_v48 = vpop.permute.xlu0 %1212 }
 0x1a3   : > { %v1218_v45 = vadd.f32 %v1213_v48, %v1162_v15  ;;  %1724 = vrot.lane.b32.xlu1 %v1719_v11, %s4154_s10  ;;  %v1843_v15 = vstv %s3755_s2  ;;  %s3839_s2 = sld [smem:[#allocation2 + $0x69]] }
 0x1a4   : > { %1722 = vrot.lane.b32.xlu0 %v1718_v32, %s4154_s10  ;;  %s2289_s10 = sld [smem:[#allocation2 + $0x85]]  ;;  %v1831_v32 = vmul.f32 %v3596_v10, %v1829_v54 }
 0x1a5   : > { %v1229_v38 = vpop.permute.xlu1 %1228 }
 0x1a6   : > { %v1233_v4 = vadd.f32 %v1229_v38, %v1177_v47  ;;  %v1227_v39 = vpop.permute.xlu0 %1226  ;;  %v1761_v47 = vmul.f32 %v1759_v62, %v3557_v51  ;;  %v1844_v38 = vmul.f32 %v3639_v60, %v1843_v15  ;;  %v1871_v62 = vstv %s3772_s8  ;;  %s3881_s8 = sld [smem:[#allocation2 + $0x8e]] }
 0x1a7   : > { %v1232_v9 = vadd.f32 %v1227_v39, %v1176_v22  ;;  %1738 = vrot.lane.b32.xlu1 %v1733_v27, %s2535_s5 }
 0x1a8   : > { %1736 = vrot.lane.b32.xlu0 %v1732_v0, %s2535_s5  ;;  %v1845_v0 = vmul.f32 %v3634_v21, %v1843_v15 }
 0x1a9   : > { %v1243_v63 = vpop.permute.xlu1 %1242 }
 0x1aa   : > { %v1247_v1 = vadd.f32 %v1243_v63, %v1191_v58  ;;  %v1241_v5 = vpop.permute.xlu0 %1240  ;;  %v1788_v58 = vmul.f32 %v3601_v59, %v1787_v19  ;;  %v1801_v55 = vstv %s2289_s10  ;;  %s3817_s10 = sld [smem:[#allocation2 + $0x68]] }
 0x1ab   : > { %v1246_v17 = vadd.f32 %v1241_v5, %v1190_v57  ;;  %1752 = vrot.lane.b32.xlu1 %v1747_v28, %s2535_s5  ;;  %v1803_v29 = vmul.f32 %v3596_v10, %v1801_v55  ;;  %v1802_v6 = vmul.f32 %v3601_v59, %v1801_v55  ;;  %v1407_v5 = vmul.f32 %v1405_v44, %v3557_v51 }
 0x1ac   : > { %1750 = vrot.lane.b32.xlu0 %v1746_v40, %s2535_s5  ;;  %v1411_v40 = vstv %s3777_s9  ;;  %s3888_s9 = sld [smem:[#allocation2 + $0x6b]] }
 0x1ad   : > { %v1257_v46 = vpop.permute.xlu1 %1256 }
 0x1ae   : > { %v1261_v22 = vadd.f32 %v1257_v46, %v1205_v61  ;;  %v1255_v16 = vpop.permute.xlu0 %1254  ;;  %v1816_v61 = vmul.f32 %v3601_v59, %v1815_v8 }
 0x1af   : > { %v1260_v52 = vadd.f32 %v1255_v16, %v1204_v7  ;;  %1766 = vrot.lane.b32.xlu1 %v1761_v47, %s2535_s5  ;;  %v1437_v47 = vstv %s3779_s20  ;;  %v1413_v16 = vmul.f32 %v1411_v40, %v3557_v51  ;;  %s3899_s20 = sld [smem:[#allocation2 + $0x8f]] }
 0x1b0   : > { %1764 = vrot.lane.b32.xlu0 %v1760_v14, %s2535_s5 }
 0x1b1   : > { %v1271_v36 = vpop.permute.xlu1 %1270 }
 0x1b2   : > { %v1275_v23 = vadd.f32 %v1271_v36, %v1219_v18  ;;  %v1269_v2 = vpop.permute.xlu0 %1268  ;;  %v1439_v36 = vmul.f32 %v3596_v10, %v1437_v47 }
 0x1b3   : > { %v1274_v37 = vadd.f32 %v1269_v2, %v1218_v45  ;;  %1780 = vrot.lane.b32.xlu1 %v1775_v43, %s2535_s5  ;;  %v1857_v45 = vstv %s3760_s23  ;;  %v1873_v43 = vmul.f32 %v3634_v21, %v1871_v62  ;;  %v1872_v2 = vmul.f32 %v3639_v60, %v1871_v62  ;;  %s3847_s23 = sld [smem:[#allocation2 + $0x6d]] }
 0x1b4   : > { %1778 = vrot.lane.b32.xlu0 %v1774_v26, %s2535_s5  ;;  %v1858_v28 = vmul.f32 %v3639_v60, %v1857_v45  ;;  %v1443_v26 = vstv %s3794_s25  ;;  %s2138_s25 = sshll.u32 %s2687_s26, 6 }
 0x1b5   : > { %v1285_v25 = vpop.permute.xlu1 %1284 }
 0x1b6   : > { %v1289_v56 = vadd.f32 %v1285_v25, %v1233_v4  ;;  %v1283_v57 = vpop.permute.xlu0 %1282  ;;  %v1431_v4 = vstv %s3766_s30  ;;  %v1423_v25 = vstv %s3796_s29  ;;  %s3873_s30 = sld [smem:[#allocation2 + $0x6e]] }
 0x1b7   : > { %v1288_v42 = vadd.f32 %v1283_v57, %v1232_v9  ;;  %1794 = vrot.lane.b32.xlu1 %v1789_v41, %s2535_s5  ;;  %v1859_v9 = vmul.f32 %v3634_v21, %v1857_v45  ;;  %v1433_v13 = vmul.f32 %v3596_v10, %v1431_v4  ;;  %v1432_v46 = vmul.f32 %v3601_v59, %v1431_v4  ;;  %s3964_s29 = sld [smem:[#allocation5 + $0x2]] }
 0x1b8   : > { %1792 = vrot.lane.b32.xlu0 %v1788_v58, %s2535_s5 }
 0x1b9   : > { %v1299_v50 = vpop.permute.xlu1 %1298 }
 0x1ba   : > { %v3764_v3 = vadd.f32 %v1299_v50, %v1247_v1  ;;  %v1297_v53 = vpop.permute.xlu0 %1296  ;;  %v3864_v50 = vmul.f32 %v3601_v59, %v1443_v26 }
 0x1bb   : > { %v3768_v24 = vadd.f32 %v1297_v53, %v1246_v17  ;;  %1808 = vrot.lane.b32.xlu1 %v1803_v29, %s2535_s5  ;;  %v1406_v17 = vmul.f32 %v1405_v44, %v3563_v12 }
 0x1bc   : > { %1806 = vrot.lane.b32.xlu0 %v1802_v6, %s2535_s5  ;;  %v1899_v6 = vstv %s3808_s11  ;;  %s3970_s11 = scalar_lea.vmem [#allocation8], %s2138_s25 }
 0x1bd   : > { %v1313_v49 = vpop.permute.xlu1 %1312 }
 0x1be   : > { %v3781_v7 = vadd.f32 %v1313_v49, %v1261_v22  ;;  %v1311_v11 = vpop.permute.xlu0 %1310  ;;  %v1417_v22 = vstv %s3789_s24  ;;  %v1457_v49 = vstv %s3817_s10  ;;  %s3960_s24 = sld [smem:[#allocation5 + $0x1]]  ;;  %s1983_s10 = scalar_lea.sflag [#allocation3], %s2687_s26 }
 0x1bf   : > { %v3785_v30 = vadd.f32 %v1311_v11, %v1260_v52  ;;  %1822 = vrot.lane.b32.xlu1 %v1817_v33, %s2535_s5  ;;  %v1412_v52 = vmul.f32 %v1411_v40, %v3563_v12  ;;  %v1419_v55 = vmul.f32 %v1417_v22, %v3557_v51  ;;  %v1418_v29 = vmul.f32 %v1417_v22, %v3563_v12 }
 0x1c0   : > { %1820 = vrot.lane.b32.xlu0 %v1816_v61, %s2535_s5  ;;  %v1425_v61 = vmul.f32 %v1423_v25, %v3557_v51 }
 0x1c1   : > { %v1327_v31 = vpop.permute.xlu1 %1326 }
 0x1c2   : > { %v3798_v18 = vadd.f32 %v1327_v31, %v1275_v23  ;;  %v1325_v48 = vpop.permute.xlu0 %1324  ;;  %v3843_v23 = vmul.f32 %v3601_v59, %v1437_v47  ;;  %v1901_v31 = vmul.f32 %v3666_v34, %v1899_v6 }
 0x1c3   : > { %v3803_v27 = vadd.f32 %v1325_v48, %v1274_v37  ;;  %1836 = vrot.lane.b32.xlu1 %v1831_v32, %s2535_s5  ;;  %v1885_v37 = vstv %s3783_s7  ;;  %v1483_v48 = vstv %s3824_s0  ;;  %s3906_s7 = sld [smem:[#allocation2 + $0x6f]] }
 0x1c4   : > { %1834 = vrot.lane.b32.xlu0 %v1830_v20, %s2535_s5  ;;  %v1886_v53 = vmul.f32 %v3639_v60, %v1885_v37  ;;  %v1424_v20 = vmul.f32 %v1423_v25, %v3563_v12  ;;  %v1485_v40 = vmul.f32 %v3666_v34, %v1483_v48  ;;  %v1484_v62 = vmul.f32 %v3674_v35, %v1483_v48 }
 0x1c5   : > { %v1341_v39 = vpop.permute.xlu1 %1340  ;;  %v1495_v25 = vstv %s3873_s30 }
 0x1c6   : > { %v3819_v63 = vadd.f32 %v1341_v39, %v1289_v56  ;;  %v1339_v1 = vpop.permute.xlu0 %1338  ;;  %v1449_v56 = vstv %s3801_s21  ;;  %v1489_v39 = vstv %s3847_s23  ;;  %s3967_s21 = sld [smem:[#allocation5 + $0x3]] }
 0x1c7   : > { %v3826_v14 = vadd.f32 %v1339_v1, %v1288_v42  ;;  %1850 = vrot.lane.b32.xlu1 %v1845_v0, %s2535_s5  ;;  %v3856_v42 = vmul.f32 %v3596_v10, %v1443_v26  ;;  %v3870_v54 = vmul.f32 %v3596_v10, %v1449_v56  ;;  %v3878_v15 = vmul.f32 %v3601_v59, %v1449_v56 }
 0x1c8   : > { %1848 = vrot.lane.b32.xlu0 %v1844_v38, %s2535_s5  ;;  %v1900_v10 = vmul.f32 %v3674_v35, %v1899_v6  ;;  %v1459_v59 = vmul.f32 %v3634_v21, %v1457_v49  ;;  %v1463_v0 = vstv %s3839_s2  ;;  %v1475_v56 = vstv %s3888_s9 }
 0x1c9   : > { %v1355_v19 = vpop.permute.xlu1 %1354  ;;  %v1465_v47 = vmul.f32 %v3634_v21, %v1463_v0 }
 0x1ca   : > { %v1359_v41 = vadd.f32 %v1355_v19, %v3764_v3  ;;  %v1353_v58 = vpop.permute.xlu0 %1352  ;;  %v1887_v3 = vmul.f32 %v3634_v21, %v1885_v37  ;;  %v1464_v19 = vmul.f32 %v3639_v60, %v1463_v0 }
 0x1cb   : > { %v1358_v57 = vadd.f32 %v1353_v58, %v3768_v24  ;;  %1864 = vrot.lane.b32.xlu1 %v1859_v9, %s2535_s5 }
 0x1cc   : > { %v1409_v8 = vadd.f32 %v1407_v5, %v1359_v41  ;;  %1862 = vrot.lane.b32.xlu0 %v1858_v28, %s2535_s5  ;;  %v1927_v41 = vstv %s3881_s8 }
 0x1cd   : > { %v1408_v24 = vadd.f32 %v1406_v17, %v1358_v57  ;;  %v1369_v33 = vpop.permute.xlu1 %1368 }
 0x1ce   : > { %v1373_v11 = vadd.f32 %v1369_v33, %v3781_v7  ;;  %v1367_v32 = vpop.permute.xlu0 %1366  ;;  %v1913_v7 = vstv %s3832_s1  ;;  %v1435_v45 = vadd.f32 %v1433_v13, %v1409_v8  ;;  %v1469_v13 = vstv %s3860_s4 }
 0x1cf   : > { %v1372_v51 = vadd.f32 %v1367_v32, %v3785_v30  ;;  %1878 = vrot.lane.b32.xlu1 %v1873_v43, %s2535_s5  ;;  %v1434_v44 = vadd.f32 %v1432_v46, %v1408_v24  ;;  %v1458_v30 = vmul.f32 %v3639_v60, %v1457_v49  ;;  %v1915_v1 = vmul.f32 %v3666_v34, %v1913_v7 }
 0x1d0   : > { %v1415_v12 = vadd.f32 %v1413_v16, %v1373_v11  ;;  %1876 = vrot.lane.b32.xlu0 %v1872_v2, %s2535_s5  ;;  %v1914_v17 = vmul.f32 %v3674_v35, %v1913_v7  ;;  %v1461_v22 = vadd.f32 %v1459_v59, %v1435_v45  ;;  %v1491_v16 = vmul.f32 %v3666_v34, %v1489_v39 }
 0x1d1   : > { %v1414_v38 = vadd.f32 %v1412_v52, %v1372_v51  ;;  %v1383_v4 = vpop.permute.xlu1 %1382  ;;  %v1460_v26 = vadd.f32 %v1458_v30, %v1434_v44  ;;  %v1471_v58 = vmul.f32 %v3634_v21, %v1469_v13  ;;  %v1929_v11 = vmul.f32 %v3666_v34, %v1927_v41 }
 0x1d2   : > { %v1387_v9 = vadd.f32 %v1383_v4, %v3798_v18  ;;  %v1381_v28 = vpop.permute.xlu0 %1380  ;;  %v1441_v18 = vadd.f32 %v1439_v36, %v1415_v12  ;;  %v1490_v36 = vmul.f32 %v3674_v35, %v1489_v39  ;;  %v1928_v32 = vmul.f32 %v3674_v35, %v1927_v41 }
 0x1d3   : > { %v1386_v5 = vadd.f32 %v1381_v28, %v3803_v27  ;;  %1892 = vrot.lane.b32.xlu1 %v1887_v3, %s2535_s5  ;;  %v1440_v27 = vadd.f32 %v3843_v23, %v1414_v38  ;;  %v1470_v23 = vmul.f32 %v3639_v60, %v1469_v13  ;;  %v1496_v51 = vmul.f32 %v3674_v35, %v1495_v25 }
 0x1d4   : > { %v1421_v46 = vadd.f32 %v1419_v55, %v1387_v9  ;;  %1890 = vrot.lane.b32.xlu0 %v1886_v53, %s2535_s5  ;;  %v1467_v6 = vadd.f32 %v1465_v47, %v1441_v18  ;;  %v1477_v7 = vmul.f32 %v3634_v21, %v1475_v56  ;;  %v1476_v44 = vmul.f32 %v3639_v60, %v1475_v56 }
 0x1d5   : > { %v1420_v52 = vadd.f32 %v1418_v29, %v1386_v5  ;;  %v1397_v43 = vpop.permute.xlu1 %1396  ;;  %v1466_v24 = vadd.f32 %v1464_v19, %v1440_v27 }
 0x1d6   : > { %v1401_v2 = vadd.f32 %v1397_v43, %v3819_v63  ;;  %v1395_v37 = vpop.permute.xlu0 %1394  ;;  %v1447_v57 = vadd.f32 %v3856_v42, %v1421_v46  ;;  %v1487_v63 = vadd.f32 %v1485_v40, %v1461_v22 }
 0x1d7   : > { %v1400_v55 = vadd.f32 %v1395_v37, %v3826_v14  ;;  %1906 = vrot.lane.b32.xlu1 %v1901_v31, %s2535_s5  ;;  %v1446_v8 = vadd.f32 %v3864_v50, %v1420_v52  ;;  %v1486_v14 = vadd.f32 %v1484_v62, %v1460_v26  ;;  %v1941_v31 = vstv %s3899_s20 }
 0x1d8   : > { %v1427_v29 = vadd.f32 %v1425_v61, %v1401_v2  ;;  %1904 = vrot.lane.b32.xlu0 %v1900_v10, %s2535_s5  ;;  %v1497_v61 = vmul.f32 %v3666_v34, %v1495_v25  ;;  %v1501_v10 = vstv %s3906_s7  ;;  %v1473_v48 = vadd.f32 %v1471_v58, %v1447_v57 }
 0x1d9   : > { %v1426_v3 = vadd.f32 %v1424_v20, %v1400_v55  ;;  %v1515_v53 = vpop.permute.xlu1 %1514  ;;  %v1493_v20 = vadd.f32 %v1491_v16, %v1467_v6  ;;  %v1492_v59 = vadd.f32 %v1490_v36, %v1466_v24  ;;  %v1472_v0 = vadd.f32 %v1470_v23, %v1446_v8 }
 0x1da   : > { %v1519_v33 = vadd.f32 %v1515_v53, %v1487_v63  ;;  %v1513_v49 = vpop.permute.xlu0 %1512  ;;  %v1453_v50 = vadd.f32 %v3870_v54, %v1427_v29  ;;  %v1943_v54 = vmul.f32 %v3666_v34, %v1941_v31  ;;  %v1499_v39 = vadd.f32 %v1497_v61, %v1473_v48 }
 0x1db   : > { %v1518_v42 = vadd.f32 %v1513_v49, %v1486_v14  ;;  %1920 = vrot.lane.b32.xlu1 %v1915_v1, %s2535_s5  ;;  %v1452_v45 = vadd.f32 %v3878_v15, %v1426_v3  ;;  %v1942_v9 = vmul.f32 %v3674_v35, %v1941_v31  ;;  %v1503_v15 = vmul.f32 %v3666_v34, %v1501_v10 }
 0x1dc   : > { %1918 = vrot.lane.b32.xlu0 %v1914_v17, %s2535_s5  ;;  %v1479_v21 = vadd.f32 %v1477_v7, %v1453_v50  ;;  %v1498_v40 = vadd.f32 %v1496_v51, %v1472_v0  ;;  %v1502_v62 = vmul.f32 %v3674_v35, %v1501_v10 }
 0x1dd   : > { %v1529_v12 = vpop.permute.xlu1 %1528  ;;  %v1478_v60 = vadd.f32 %v1476_v44, %v1452_v45 }
 0x1de   : > { %v1533_v38 = vadd.f32 %v1529_v12, %v1493_v20  ;;  %v1527_v4 = vpop.permute.xlu0 %1526  ;;  %v1505_v47 = vadd.f32 %v1503_v15, %v1479_v21 }
 0x1df   : > { %v1532_v30 = vadd.f32 %v1527_v4, %v1492_v59  ;;  %1934 = vrot.lane.b32.xlu1 %v1929_v11, %s2535_s5  ;;  %v1504_v18 = vadd.f32 %v1502_v62, %v1478_v60 }
 0x1e0   : > { %1932 = vrot.lane.b32.xlu0 %v1928_v32, %s2535_s5 }
 0x1e1   : > { %v1543_v28 = vpop.permute.xlu1 %1542 }
 0x1e2   : > { %v1547_v1 = vadd.f32 %v1543_v28, %v1499_v39  ;;  %v1541_v5 = vpop.permute.xlu0 %1540 }
 0x1e3   : > { %v1546_v17 = vadd.f32 %v1541_v5, %v1498_v40  ;;  %1948 = vrot.lane.b32.xlu1 %v1943_v54, %s2535_s5 }
 0x1e4   : > { %1946 = vrot.lane.b32.xlu0 %v1942_v9, %s2535_s5  ;;  %s3958_s5 = sld [smem:[#allocation5]] }
 0x1e5   : > { %v1557_v13 = vpop.permute.xlu1 %1556 }
 0x1e6   : > { %v1561_v46 = vadd.f32 %v1557_v13, %v1505_v47  ;;  %v1555_v22 = vpop.permute.xlu0 %1554 }
 0x1e7   : > { %v1560_v16 = vadd.f32 %v1555_v22, %v1504_v18 }
 0x1e9   : > { %v1571_v27 = vpop.permute.xlu1 %1570 }
 0x1ea   : > { %v1575_v34 = vadd.f32 %v1571_v27, %v1519_v33  ;;  %v1569_v52 = vpop.permute.xlu0 %1568 }
 0x1eb   : > { %v1574_v43 = vadd.f32 %v1569_v52, %v1518_v42 }
 0x1ed   : > { %v1585_v26 = vpop.permute.xlu1 %1584 }
 0x1ee   : > { %v1589_v35 = vadd.f32 %v1585_v26, %v1533_v38  ;;  %v1583_v19 = vpop.permute.xlu0 %1582 }
 0x1ef   : > { %v1588_v2 = vadd.f32 %v1583_v19, %v1532_v30 }
 0x1f1   : > { %v1599_v37 = vpop.permute.xlu1 %1598 }
 0x1f2   : > { %v1603_v36 = vadd.f32 %v1599_v37, %v1547_v1  ;;  %v1597_v41 = vpop.permute.xlu0 %1596 }
 0x1f3   : > { %v1602_v58 = vadd.f32 %v1597_v41, %v1546_v17 }
 0x1f5   : > { %v1613_v55 = vpop.permute.xlu1 %1612 }
 0x1f6   : > { %v1617_v25 = vadd.f32 %v1613_v55, %v1561_v46  ;;  %v1611_v23 = vpop.permute.xlu0 %1610  ;;  %v1955_v55 = vstv %s3958_s5 }
 0x1f7   : > { %v1616_v56 = vadd.f32 %v1611_v23, %v1560_v16 }
 0x1f9   : > { %v1627_v57 = vpop.permute.xlu1 %1626 }
 0x1fa   : > { %v1631_v29 = vadd.f32 %v1627_v57, %v1575_v34  ;;  %v1625_v63 = vpop.permute.xlu0 %1624 }
 0x1fb   : > { %v1630_v6 = vadd.f32 %v1625_v63, %v1574_v43 }
 0x1fd   : > { %v1641_v8 = vpop.permute.xlu1 %1640 }
 0x1fe   : > { %v1645_v3 = vadd.f32 %v1641_v8, %v1589_v35  ;;  %v1639_v53 = vpop.permute.xlu0 %1638 }
 0x1ff   : > { %v1644_v14 = vadd.f32 %v1639_v53, %v1588_v2 }
 0x201   : > { %v1655_v24 = vpop.permute.xlu1 %1654 }
 0x202   : > { %v1659_v33 = vadd.f32 %v1655_v24, %v1603_v36  ;;  %v1653_v49 = vpop.permute.xlu0 %1652 }
 0x203   : > { %v1658_v11 = vadd.f32 %v1653_v49, %v1602_v58 }
 0x205   : > { %v1669_v32 = vpop.permute.xlu1 %1668 }
 0x206   : > { %v3944_v31 = vadd.f32 %v1669_v32, %v1617_v25  ;;  %v1667_v42 = vpop.permute.xlu0 %1666 }
 0x207   : > { %v3946_v61 = vadd.f32 %v1667_v42, %v1616_v56  ;;  %v1962_v42 = vstv %s3960_s24 }
 0x209   : > { %v1683_v51 = vpop.permute.xlu1 %1682 }
 0x20a   : > { %v1681_v10 = vpop.permute.xlu0 %1680  ;;  %v1687_v46 = vadd.f32 %v1683_v51, %v1631_v29 }
 0x20b   : > { %v1686_v16 = vadd.f32 %v1681_v10, %v1630_v6 }
 0x20d   : > { %v1697_v50 = vpop.permute.xlu1 %1696 }
 0x20e   : > { %v1695_v20 = vpop.permute.xlu0 %1694  ;;  %v1701_v43 = vadd.f32 %v1697_v50, %v1645_v3 }
 0x20f   : > { %v1700_v19 = vadd.f32 %v1695_v20, %v1644_v14 }
 0x211   : > { %v1711_v48 = vpop.permute.xlu1 %1710 }
 0x212   : > { %v1709_v7 = vpop.permute.xlu0 %1708  ;;  %v1715_v23 = vadd.f32 %v1711_v48, %v1659_v33 }
 0x213   : > { %v1714_v63 = vadd.f32 %v1709_v7, %v1658_v11 }
 0x215   : > { %v1725_v45 = vpop.permute.xlu1 %1724 }
 0x216   : > { %v3948_v12 = vpop.permute.xlu0 %1722  ;;  %v1729_v10 = vadd.f32 %v1725_v45, %v3944_v31 }
 0x217   : > { %v1728_v20 = vadd.f32 %v3948_v12, %v3946_v61 }
 0x219   : > { %v1739_v59 = vpop.permute.xlu1 %1738 }
 0x21a   : > { %v1737_v0 = vpop.permute.xlu0 %1736  ;;  %v1743_v27 = vadd.f32 %v1739_v59, %v1687_v46 }
 0x21b   : > { %v1742_v34 = vadd.f32 %v1737_v0, %v1686_v16 }
 0x21d   : > { %v1753_v44 = vpop.permute.xlu1 %1752 }
 0x21e   : > { %v1751_v38 = vpop.permute.xlu0 %1750  ;;  %v1757_v37 = vadd.f32 %v1753_v44, %v1701_v43 }
 0x21f   : > { %v1756_v41 = vadd.f32 %v1751_v38, %v1700_v19 }
 0x221   : > { %v1767_v4 = vpop.permute.xlu1 %1766 }
 0x222   : > { %v1765_v30 = vpop.permute.xlu0 %1764  ;;  %v1771_v3 = vadd.f32 %v1767_v4, %v1715_v23  ;;  %v1969_v4 = vstv %s3964_s29 }
 0x223   : > { %v1770_v24 = vadd.f32 %v1765_v30, %v1714_v63 }
 0x225   : > { %v3950_v54 = vpop.permute.xlu1 %1780 }
 0x226   : > { %v3952_v39 = vpop.permute.xlu0 %1778  ;;  %v1785_v31 = vadd.f32 %v3950_v54, %v1729_v10 }
 0x227   : > { %v1784_v0 = vadd.f32 %v3952_v39, %v1728_v20 }
 0x229   : > { %v1795_v9 = vpop.permute.xlu1 %1794 }
 0x22a   : > { %v1793_v21 = vpop.permute.xlu0 %1792  ;;  %v1799_v26 = vadd.f32 %v1795_v9, %v1743_v27 }
 0x22b   : > { %v1798_v2 = vadd.f32 %v1793_v21, %v1742_v34 }
 0x22d   : > { %v1809_v15 = vpop.permute.xlu1 %1808 }
 0x22e   : > { %v1807_v28 = vpop.permute.xlu0 %1806  ;;  %v1813_v56 = vadd.f32 %v1809_v15, %v1757_v37 }
 0x22f   : > { %v1812_v6 = vadd.f32 %v1807_v28, %v1756_v41 }
 0x231   : > { %v1823_v40 = vpop.permute.xlu1 %1822 }
 0x232   : > { %v1821_v62 = vpop.permute.xlu0 %1820  ;;  %v1827_v33 = vadd.f32 %v1823_v40, %v1771_v3 }
 0x233   : > { %v1826_v48 = vadd.f32 %v1821_v62, %v1770_v24  ;;  %v1976_v62 = vstv %s3967_s21 }
 0x235   : > { %v3954_v60 = vpop.permute.xlu1 %1836 }
 0x236   : > { %v3956_v1 = vpop.permute.xlu0 %1834  ;;  %v1841_v9 = vadd.f32 %v3954_v60, %v1785_v31 }
 0x237   : > { %v1840_v21 = vadd.f32 %v3956_v1, %v1784_v0 }
 0x239   : > { %v1851_v5 = vpop.permute.xlu1 %1850 }
 0x23a   : > { %v1849_v17 = vpop.permute.xlu0 %1848  ;;  %v1855_v36 = vadd.f32 %v1851_v5, %v1799_v26 }
 0x23b   : > { %v1854_v58 = vadd.f32 %v1849_v17, %v1798_v2 }
 0x23d   : > { %v1865_v47 = vpop.permute.xlu1 %1864 }
 0x23e   : > { %v1863_v13 = vpop.permute.xlu0 %1862  ;;  %v1869_v53 = vadd.f32 %v1865_v47, %v1813_v56 }
 0x23f   : > { %v1868_v49 = vadd.f32 %v1863_v13, %v1812_v6 }
 0x241   : > { %v1879_v18 = vpop.permute.xlu1 %1878 }
 0x242   : > { %v1877_v22 = vpop.permute.xlu0 %1876  ;;  %v1883_v45 = vadd.f32 %v1879_v18, %v1827_v33 }
 0x243   : > { %v1882_v44 = vadd.f32 %v1877_v22, %v1826_v48 }
 0x245   : > { %v1893_v52 = vpop.permute.xlu1 %1892 }
 0x246   : > { %v1891_v35 = vpop.permute.xlu0 %1890  ;;  %v1897_v39 = vadd.f32 %v1893_v52, %v1841_v9 }
 0x247   : > { %v1896_v28 = vadd.f32 %v1891_v35, %v1840_v21 }
 0x249   : > { %v1907_v25 = vpop.permute.xlu1 %1906 }
 0x24a   : > { %v1911_v57 = vadd.f32 %v1907_v25, %v1855_v36  ;;  %v1905_v29 = vpop.permute.xlu0 %1904 }
 0x24b   : > { %v1910_v8 = vadd.f32 %v1905_v29, %v1854_v58 }
 0x24c   : > { %v1957_v14 = vadd.f32 %v1955_v55, %v1911_v57 }
 0x24d   : > { %v1956_v32 = vadd.f32 %v1955_v55, %v1910_v8  ;;  %v1921_v51 = vpop.permute.xlu1 %1920 }
 0x24e   : > { %1960 = vst.msk [vmem:[%s3970_s11 + $0x8] sm:$0xff] %vm1958_vm0, %v1957_v14  ;;  %v1925_v11 = vadd.f32 %v1921_v51, %v1869_v53  ;;  %v1919_v50 = vpop.permute.xlu0 %1918 }
 0x24f   : > { %1959 = vst.msk [vmem:[%s3970_s11] sm:$0xff] %vm1958_vm0, %v1956_v32  ;;  %v1924_v7 = vadd.f32 %v1919_v50, %v1868_v49 }
 0x250   : > { %v1964_v59 = vadd.f32 %v1962_v42, %v1925_v11 }
 0x251   : > { %v1963_v38 = vadd.f32 %v1962_v42, %v1924_v7  ;;  %v1935_v30 = vpop.permute.xlu1 %1934 }
 0x252   : > { %2302 = vst.msk [vmem:[%s3970_s11 + $0x18] sm:$0xff] %vm1958_vm0, %v1964_v59  ;;  %v1939_v61 = vadd.f32 %v1935_v30, %v1883_v45  ;;  %v1933_v12 = vpop.permute.xlu0 %1932 }
 0x253   : > { %2301 = vst.msk [vmem:[%s3970_s11 + $0x10] sm:$0xff] %vm1958_vm0, %v1963_v38  ;;  %v1938_v54 = vadd.f32 %v1933_v12, %v1882_v44 }
 0x254   : > { %v1971_v15 = vadd.f32 %v1969_v4, %v1939_v61 }
 0x255   : > { %v1970_v40 = vadd.f32 %v1969_v4, %v1938_v54  ;;  %v1949_v5 = vpop.permute.xlu1 %1948 }
 0x256   : > { %2305 = vst.msk [vmem:[%s3970_s11 + $0x28] sm:$0xff] %vm1958_vm0, %v1971_v15  ;;  %v1953_v60 = vadd.f32 %v1949_v5, %v1897_v39  ;;  %v1947_v17 = vpop.permute.xlu0 %1946 }
 0x257   : > { %2304 = vst.msk [vmem:[%s3970_s11 + $0x20] sm:$0xff] %vm1958_vm0, %v1970_v40  ;;  %v1952_v47 = vadd.f32 %v1947_v17, %v1896_v28 }
 0x258   : > { %v1978_v1 = vadd.f32 %v1976_v62, %v1953_v60 }
 0x259   : > { %v1977_v13 = vadd.f32 %v1976_v62, %v1952_v47 }
 0x25a   : > { %2308 = vst.msk [vmem:[%s3970_s11 + $0x38] sm:$0xff] %vm1958_vm0, %v1978_v1 }
 0x25b   : > { %2307 = vst.msk [vmem:[%s3970_s11 + $0x30] sm:$0xff] %vm1958_vm0, %v1977_v13 }
 0x25c   : > { %s2310_s0 = sshll.u32 %s2514_s15, 1  ;;  %s2311_s1 = sshll.u32 %s2518_s16, 4 }
 0x25d   : > { %s1995_s2 = sadd.s32 %s2311_s1, %s2310_s0  ;;  %s2008_s23 = sshll.u32 %s3970_s11, 4  ;;  %s2009_s23 = int_to_ptr.vmem [resolvable:$true] %s2008_s23 }
 0x25e   : > { %s2312_s4 = sshll.u32 %s1995_s2, 7  ;;  %s2536_s9 = smov 256  }
 0x25f   : > { %s1997_s26 = scalar_lea.hbm %s4048_s3, %s2312_s4  ;;  %p4155_p13 = scmp.ne.s32.totalorder %s4061_s27, 0 }
 0x260   : > { %s2537_s20 = smov 512   ;;  %s2538_s7 = smov 2  }
 0x261   : > { %2327 = sst [smem:[#allocation10]] (%p4155_p13), %s2536_s9  ;;  %s2539_s15 = smov 128  }
 0x262   : > { %2328 = sst [smem:[#allocation10 + $0x1]] (%p4155_p13), %s2537_s20  ;;  %s2540_s16 = smov 8  }
 0x263   : > { %2329 = sst [smem:[#allocation10 + $0x2]] (%p4155_p13), %s2538_s7  ;;  %s2541_s5 = smov 131072  }
 0x264   : > { %2330 = sst [smem:[#allocation10 + $0x3]] (%p4155_p13), %s2539_s15  ;;  %s2542_s24 = smov 0  }
 0x265   : > { %2331 = sst [smem:[#allocation10 + $0x4]] (%p4155_p13), %s2539_s15 }
 0x266   : > { %2332 = sst [smem:[#allocation10 + $0x5]] (%p4155_p13), %s2540_s16 }
 0x267   : > { %2333 = dma.general (%p4155_p13), %s2009_s23, 1024, %s1997_s26, %s1983_s10, %s2541_s5, [#allocation10], %s2542_s24, 0  }
 0x268 PF: > { %p2350_p0 = scmp.ge.s32.totalorder %s2530_s19, 2  ;;  %s2036_s25 = sand.u32 1, %s2502_s12  }
 0x269   : > { %p4156_p2 = scmp.ne.s32.totalorder %s4062_s28, 0  ;;  %s2037_s29 = scalar_lea.sflag [#allocation3], %s2036_s25 }
 0x26b   : > { %p2343_p5 = pnand %p2350_p0, %p4156_p2 }
 0x26d   : > { %p2344_p10 = pneg %p2343_p5 }
 0x26f   : > { %2497 = dma.done.wait (%p2344_p10), %s2037_s29, 1024  }
 0x270   : > { %2499 = vsyncadd (%p2344_p10), %s2037_s29, 4294966272  ;;  %s18_s19 = sadd.s32 1, %s2530_s19   ;;  %s4157_s27 = sld [smem:[#allocation14_spill]] }
 0x271   : > { %p15_p11 = scmp.ge.s32.totalorder %s18_s19, 6   ;;  %s4158_s12 = smov %s2506_s13 }
 0x272   : > { %s4159_s13 = smov %s2510_s14  ;;  %s4160_s14 = smov %s2645_s6 }
 0x273   : > { %s4161_s15 = smov %s2522_s17  ;;  %s4162_s16 = smov %s2526_s18 }
 0x274   : > { %s4163_s17 = smov %s4166_s22  ;;  %17 = sbr.rel (!%p15_p11) target bundleno = 11 (0xb), region = 130 }
 0x276   : > { %s4164_s18 = smov %s4157_s27 }
 0x279   :  { %2042 = vsyncpa [#allocation3], 1 }
 0x27a   :  { %2044 = vsyncpa [#allocation3 + $0x1], 1 }
 0x27b   :  { %2045 = vsyncpa [#allocation4], 1 }
 0x27c   :  { %2047 = vsyncpa [#allocation4 + $0x1], 1 }
 0x27d   :  { %2048 = vsyncpa [#allocation6], 1 }

</bundles_post_ra>
